<compile_context>
chip_gen: v7x
topology: tpu7x:2x2x1
jax: 0.10.0
libtpu: 0.0.40
codegen_flags: <defaults>
</compile_context>

<pallas_src>
import functools
import math

import jax
import jax.numpy as jnp
from jax.experimental import pallas as pl
from jax.experimental.pallas import tpu as pltpu


def _round_up(n: int, m: int) -> int:
    return ((n + m - 1) // m) * m


def _pick_layers_per_step(num_hidden: int, hp: int, max_bytes: int = 2 * 1024 * 1024) -> int:
    """Largest divisor of num_hidden whose bf16 (d, Hp, Hp) weight block fits max_bytes."""
    best = 1
    for d in range(1, num_hidden + 1):
        if num_hidden % d == 0 and d * hp * hp * 2 <= max_bytes:
            best = d
    return best


# -----------------------------------------------------------------------------
# Kernel: one grid step == one GROUP of `layers_per_step` hidden Linear(H,H)+LeakyReLU
# layers.  grid = (num_batch_tiles, num_hidden // layers_per_step),
# semantics = ("parallel", "arbitrary").  The first Linear(input,H) runs at group==0,
# the final Linear(H,C) at the last group.  Activation carried in `h_ref` (VMEM).
# -----------------------------------------------------------------------------
def _mlp_kernel(x_ref, w0_ref, b0_ref, wh_ref, bh_ref, wf_ref, bf_ref,
                o_ref, h_ref, *, neg_slope: float, layers_per_step: int):
    group = pl.program_id(1)
    n_groups = pl.num_programs(1)

    # --- first layer: (bm, Kp) @ (Kp, Hp) + bias, LeakyReLU ------------------
    # TODO(synk): Dropout is implemented as eval-mode identity (no train-mode masking).
    @pl.when(group == 0)
    def _():
        h0 = jnp.dot(x_ref[...], w0_ref[...], preferred_element_type=jnp.float32)
        h0 = h0 + b0_ref[...]
        h_ref[...] = jnp.where(h0 > 0, h0, neg_slope * h0)

    # --- this grid step's hidden layers: (bm, Hp) @ (Hp, Hp) + bias, LeakyReLU
    for i in range(layers_per_step):  # static unroll; layers_per_step is compile-time
        h = jnp.dot(h_ref[...].astype(jnp.bfloat16), wh_ref[i],
                    preferred_element_type=jnp.float32)
        h = h + bh_ref[i]
        h_ref[...] = jnp.where(h > 0, h, neg_slope * h)

    # --- final layer: (bm, Hp) @ (Hp, Cp) + bias, no activation --------------
    @pl.when(group == n_groups - 1)
    def _():
        out = jnp.dot(h_ref[...].astype(jnp.bfloat16), wf_ref[...],
                      preferred_element_type=jnp.float32)
        o_ref[...] = (out + bf_ref[...]).astype(o_ref.dtype)


def predictor_forward(x, w0, b0, wh, bh, wf, bf, *, neg_slope: float = 0.01):
    """Predictor forward pass.

    x : (B, input_size)  f32
    w0: (input_size, H)       b0: (1, H)
    wh: (num_hidden, H, H)    bh: (num_hidden, 1, H)
    wf: (H, num_classes)      bf: (1, num_classes)
    Returns (B, num_classes) f32.
    """
    B, K = x.shape
    H = w0.shape[1]
    C = wf.shape[1]
    num_hidden = wh.shape[0]
    assert num_hidden >= 1, "requires num_layers >= 3"

    # ---- pad to TPU-friendly shapes (lanes=128, bf16 sublanes=16) ------------
    Kp = _round_up(K, 128)
    Hp = _round_up(H, 128)
    Cp = _round_up(C, 128)
    Bp = max(_round_up(B, 16), 16)
    bm = Bp if Bp <= 128 else 128
    Bp = _round_up(Bp, bm)

    layers_per_step = _pick_layers_per_step(num_hidden, Hp)
    n_groups = num_hidden // layers_per_step

    f32, bf16 = jnp.float32, jnp.bfloat16

    x_p = jnp.zeros((Bp, Kp), bf16).at[:B, :K].set(x.astype(bf16))
    w0_p = jnp.zeros((Kp, Hp), bf16).at[:K, :H].set(w0.astype(bf16))
    b0_p = jnp.zeros((1, Hp), f32).at[:, :H].set(b0.astype(f32))
    wh_p = jnp.zeros((num_hidden, Hp, Hp), bf16).at[:, :H, :H].set(wh.astype(bf16))
    bh_p = jnp.zeros((num_hidden, 1, Hp), f32).at[:, :, :H].set(bh.astype(f32))
    wf_p = jnp.zeros((Hp, Cp), bf16).at[:H, :C].set(wf.astype(bf16))
    bf_p = jnp.zeros((1, Cp), f32).at[:, :C].set(bf.astype(f32))

    grid = (Bp // bm, n_groups)

    flops = 2 * Bp * (Kp * Hp + num_hidden * Hp * Hp + Hp * Cp)
    bytes_accessed = (2 * (x_p.size + w0_p.size + wh_p.size + wf_p.size)
                      + 4 * (b0_p.size + bh_p.size + bf_p.size)
                      + 4 * Bp * Cp)

    kernel = functools.partial(_mlp_kernel, neg_slope=neg_slope,
                               layers_per_step=layers_per_step)

    out = pl.pallas_call(
        kernel,
        out_shape=jax.ShapeDtypeStruct((Bp, Cp), jnp.float32),
        grid_spec=pltpu.PrefetchScalarGridSpec(
            num_scalar_prefetch=0,
            grid=grid,
            in_specs=[
                pl.BlockSpec((bm, Kp), lambda b, g: (b, 0)),          # x (used at g==0)
                pl.BlockSpec((Kp, Hp), lambda b, g: (0, 0)),          # w0 (resident)
                pl.BlockSpec((1, Hp), lambda b, g: (0, 0)),           # b0 (resident)
                pl.BlockSpec((layers_per_step, Hp, Hp),
                             lambda b, g: (g, 0, 0)),                 # wh: streamed per group
                pl.BlockSpec((layers_per_step, 1, Hp),
                             lambda b, g: (g, 0, 0)),                 # bh: streamed per group
                pl.BlockSpec((Hp, Cp), lambda b, g: (0, 0)),          # wf (resident)
                pl.BlockSpec((1, Cp), lambda b, g: (0, 0)),           # bf (resident)
            ],
            out_specs=pl.BlockSpec((bm, Cp), lambda b, g: (b, 0)),
            scratch_shapes=[pltpu.VMEM((bm, Hp), jnp.float32)],       # activation carry
        ),
        compiler_params=pltpu.CompilerParams(
            dimension_semantics=("parallel", "arbitrary"),
            vmem_limit_bytes=32 * 1024 * 1024,
        ),
        cost_estimate=pl.CostEstimate(flops=flops, transcendentals=0,
                                      bytes_accessed=bytes_accessed),
    )(x_p, w0_p, b0_p, wh_p, bh_p, wf_p, bf_p)

    return out[:B, :C]


# -----------------------------------------------------------------------------
# Deterministic parameter init matching Predictor._init_weights:
#   xavier_uniform_ on weights, bias filled with 0.01.
# Weights are stored as (in, out) for the kernel's x @ W layout.
# -----------------------------------------------------------------------------
def xavier_uniform(key, fan_in, fan_out):
    bound = math.sqrt(6.0 / (fan_in + fan_out))
    return jax.random.uniform(key, (fan_in, fan_out), jnp.float32, -bound, bound)


def init_predictor_params(key, input_size, hidden_dim, num_classes, num_layers):
    num_hidden = num_layers - 2  # middle Linear(H, H) layers
    keys = jax.random.split(key, num_hidden + 2)

    w0 = xavier_uniform(keys[0], input_size, hidden_dim)
    b0 = jnp.full((1, hidden_dim), 0.01, jnp.float32)

    wh = jnp.stack([xavier_uniform(keys[1 + i], hidden_dim, hidden_dim)
                    for i in range(num_hidden)], axis=0)            # (num_hidden, H, H)
    bh = jnp.full((num_hidden, 1, hidden_dim), 0.01, jnp.float32)   # (num_hidden, 1, H)

    wf = xavier_uniform(keys[-1], hidden_dim, num_classes)          # (H, C)
    bf = jnp.full((1, num_classes), 0.01, jnp.float32)

    return w0, b0, wh, bh, wf, bf


# Pure-JAX references.
def reference_forward_f32(x, w0, b0, wh, bh, wf, bf, neg_slope=0.01):
    h = x @ w0 + b0
    h = jnp.where(h > 0, h, neg_slope * h)
    for i in range(wh.shape[0]):
        h = h @ wh[i] + bh[i]
        h = jnp.where(h > 0, h, neg_slope * h)
    return h @ wf + bf


def reference_forward_bf16(x, w0, b0, wh, bh, wf, bf, neg_slope=0.01):
    """Emulates the kernel's numerics: bf16 operands, f32 accumulation/bias/activation."""
    def dot(a, w):
        return jnp.dot(a.astype(jnp.bfloat16), w.astype(jnp.bfloat16),
                       preferred_element_type=jnp.float32)
    h = dot(x, w0) + b0
    h = jnp.where(h > 0, h, neg_slope * h)
    for i in range(wh.shape[0]):
        h = dot(h, wh[i]) + bh[i]
        h = jnp.where(h > 0, h, neg_slope * h)
    return dot(h, wf) + bf


if __name__ == "__main__":
    # Module defaults: input_size = 28*2*2 = 112, hidden_dim = 512,
    # num_layers = 10, num_classes = 1, leaky_relu activation, eval-mode dropout.
    input_size, hidden_dim, num_classes, num_layers = 28 * 2 * 2, 512, 1, 10
    batch = 16

    key = jax.random.PRNGKey(0)
    kx, kp = jax.random.split(key)
    x = jax.random.normal(kx, (batch, input_size), jnp.float32)
    params = init_predictor_params(kp, input_size, hidden_dim, num_classes, num_layers)

    out = predictor_forward(x, *params)
    out = jax.block_until_ready(out)
    assert out.shape == (batch, num_classes)

    ref_bf16 = reference_forward_bf16(x, *params)
    ref_f32 = reference_forward_f32(x, *params)
    assert jnp.allclose(out, ref_bf16, atol=1e-3, rtol=1e-2), "mismatch vs bf16-emulating reference"
    assert jnp.allclose(out, ref_f32, atol=5e-2, rtol=5e-2), "mismatch vs f32 reference"

    print("KERNEL_OK")
</pallas_src>

<mosaic_0001>
module attributes {stable_mosaic.version = 11 : i64} {
  func.func @_mlp_kernel(%arg0: i32, %arg1: i32, %arg2: memref<16x128xbf16, #tpu.memory_space<vmem>>, %arg3: memref<128x512xbf16, #tpu.memory_space<vmem>>, %arg4: memref<1x512xf32, #tpu.memory_space<vmem>>, %arg5: memref<4x512x512xbf16, #tpu.memory_space<vmem>>, %arg6: memref<4x1x512xf32, #tpu.memory_space<vmem>>, %arg7: memref<512x128xbf16, #tpu.memory_space<vmem>>, %arg8: memref<1x128xf32, #tpu.memory_space<vmem>>, %arg9: memref<16x128xf32, #tpu.memory_space<vmem>>, %arg10: memref<16x512xf32, #tpu.memory_space<vmem>>) attributes {dimension_semantics = [#tpu.dimension_semantics<parallel>, #tpu.dimension_semantics<arbitrary>], iteration_bounds = array<i64: 1, 2>, scalar_prefetch = 0 : i64, scratch_operands = 1 : i64, tpu.core_type = #tpu.core_type<tc>, window_params = [{transform_indices = @transform_0, window_bounds = array<i64: 16, 128>}, {pipeline_mode = #tpu.pipeline_mode<synchronous>, transform_indices = @transform_1, window_bounds = array<i64: 128, 512>}, {pipeline_mode = #tpu.pipeline_mode<synchronous>, transform_indices = @transform_2, window_bounds = array<i64: 1, 512>}, {transform_indices = @transform_3, window_bounds = array<i64: 4, 512, 512>}, {transform_indices = @transform_4, window_bounds = array<i64: 4, 1, 512>}, {pipeline_mode = #tpu.pipeline_mode<synchronous>, transform_indices = @transform_5, window_bounds = array<i64: 512, 128>}, {pipeline_mode = #tpu.pipeline_mode<synchronous>, transform_indices = @transform_6, window_bounds = array<i64: 1, 128>}, {transform_indices = @transform_7, window_bounds = array<i64: 16, 128>}]} {
    %c0_i32 = arith.constant 0 : i32
    %0 = arith.cmpi eq, %arg1, %c0_i32 : i32
    %1 = arith.extui %0 : i1 to i32
    %c0_i32_0 = arith.constant 0 : i32
    %2 = arith.cmpi ne, %1, %c0_i32_0 : i32
    scf.if %2 {
      %c0_49 = arith.constant 0 : index
      %c0_50 = arith.constant 0 : index
      %66 = vector.load %arg2[%c0_49, %c0_50] : memref<16x128xbf16, #tpu.memory_space<vmem>>, vector<16x128xbf16>
      %c0_51 = arith.constant 0 : index
      %c0_52 = arith.constant 0 : index
      %67 = vector.load %arg3[%c0_51, %c0_52] : memref<128x512xbf16, #tpu.memory_space<vmem>>, vector<128x512xbf16>
      %cst_53 = arith.constant dense<0.000000e+00> : vector<16x512xf32>
      %68 = tpu.matmul %66, %67, %cst_53 {dimension_numbers = #tpu.dot_dimension_numbers<[1], [0], [0], [1], [0, 0, 1, 1], [], []>} : vector<16x128xbf16>, vector<128x512xbf16>, vector<16x512xf32> -> vector<16x512xf32>
      %c0_54 = arith.constant 0 : index
      %c0_55 = arith.constant 0 : index
      %69 = vector.load %arg4[%c0_54, %c0_55] : memref<1x512xf32, #tpu.memory_space<vmem>>, vector<1x512xf32>
      %70 = vector.broadcast %69 : vector<1x512xf32> to vector<16x512xf32>
      %71 = arith.addf %68, %70 : vector<16x512xf32>
      %cst_56 = arith.constant 0.000000e+00 : f32
      %72 = vector.broadcast %cst_56 : f32 to vector<16x512xf32>
      %73 = arith.cmpf ogt, %71, %72 : vector<16x512xf32>
      %cst_57 = arith.constant 0.00999999977 : f32
      %74 = vector.broadcast %cst_57 : f32 to vector<16x512xf32>
      %75 = arith.mulf %74, %71 : vector<16x512xf32>
      %76 = arith.select %73, %71, %75 : vector<16x512xi1>, vector<16x512xf32>
      %c0_58 = arith.constant 0 : index
      %c0_59 = arith.constant 0 : index
      %77 = vector.load %arg10[%c0_58, %c0_59] : memref<16x512xf32, #tpu.memory_space<vmem>>, vector<16x512xf32>
      tpu.vector_store %arg10[%c0_58, %c0_59], %76 {strides = array<i32>} : memref<16x512xf32, #tpu.memory_space<vmem>>, vector<16x512xf32>,
    } else {
    }
    %c0 = arith.constant 0 : index
    %c0_1 = arith.constant 0 : index
    %3 = vector.load %arg10[%c0, %c0_1] : memref<16x512xf32, #tpu.memory_space<vmem>>, vector<16x512xf32>
    %4 = arith.truncf %3 : vector<16x512xf32> to vector<16x512xbf16>
    %c0_2 = arith.constant 0 : index
    %c0_3 = arith.constant 0 : index
    %c0_4 = arith.constant 0 : index
    %5 = vector.load %arg5[%c0_2, %c0_3, %c0_4] : memref<4x512x512xbf16, #tpu.memory_space<vmem>>, vector<1x512x512xbf16>
    %6 = vector.shape_cast %5 : vector<1x512x512xbf16> to vector<512x512xbf16>
    %cst = arith.constant dense<0.000000e+00> : vector<16x512xf32>
    %7 = tpu.matmul %4, %6, %cst {dimension_numbers = #tpu.dot_dimension_numbers<[1], [0], [0], [1], [0, 0, 1, 1], [], []>} : vector<16x512xbf16>, vector<512x512xbf16>, vector<16x512xf32> -> vector<16x512xf32>
    %c0_5 = arith.constant 0 : index
    %c0_6 = arith.constant 0 : index
    %c0_7 = arith.constant 0 : index
    %8 = vector.load %arg6[%c0_5, %c0_6, %c0_7] : memref<4x1x512xf32, #tpu.memory_space<vmem>>, vector<1x1x512xf32>
    %9 = vector.shape_cast %8 : vector<1x1x512xf32> to vector<1x512xf32>
    %10 = vector.broadcast %9 : vector<1x512xf32> to vector<16x512xf32>
    %11 = arith.addf %7, %10 : vector<16x512xf32>
    %cst_8 = arith.constant 0.000000e+00 : f32
    %12 = vector.broadcast %cst_8 : f32 to vector<16x512xf32>
    %13 = arith.cmpf ogt, %11, %12 : vector<16x512xf32>
    %cst_9 = arith.constant 0.00999999977 : f32
    %14 = vector.broadcast %cst_9 : f32 to vector<16x512xf32>
    %15 = arith.mulf %14, %11 : vector<16x512xf32>
    %16 = arith.select %13, %11, %15 : vector<16x512xi1>, vector<16x512xf32>
    %c0_10 = arith.constant 0 : index
    %c0_11 = arith.constant 0 : index
    %17 = vector.load %arg10[%c0_10, %c0_11] : memref<16x512xf32, #tpu.memory_space<vmem>>, vector<16x512xf32>
    tpu.vector_store %arg10[%c0_10, %c0_11], %16 {strides = array<i32>} : memref<16x512xf32, #tpu.memory_space<vmem>>, vector<16x512xf32>,
    %c0_12 = arith.constant 0 : index
    %c0_13 = arith.constant 0 : index
    %18 = vector.load %arg10[%c0_12, %c0_13] : memref<16x512xf32, #tpu.memory_space<vmem>>, vector<16x512xf32>
    %19 = arith.truncf %18 : vector<16x512xf32> to vector<16x512xbf16>
    %c1 = arith.constant 1 : index
    %c0_14 = arith.constant 0 : index
    %c0_15 = arith.constant 0 : index
    %20 = vector.load %arg5[%c1, %c0_14, %c0_15] : memref<4x512x512xbf16, #tpu.memory_space<vmem>>, vector<1x512x512xbf16>
    %21 = vector.shape_cast %20 : vector<1x512x512xbf16> to vector<512x512xbf16>
    %cst_16 = arith.constant dense<0.000000e+00> : vector<16x512xf32>
    %22 = tpu.matmul %19, %21, %cst_16 {dimension_numbers = #tpu.dot_dimension_numbers<[1], [0], [0], [1], [0, 0, 1, 1], [], []>} : vector<16x512xbf16>, vector<512x512xbf16>, vector<16x512xf32> -> vector<16x512xf32>
    %c1_17 = arith.constant 1 : index
    %c0_18 = arith.constant 0 : index
    %c0_19 = arith.constant 0 : index
    %23 = vector.load %arg6[%c1_17, %c0_18, %c0_19] : memref<4x1x512xf32, #tpu.memory_space<vmem>>, vector<1x1x512xf32>
    %24 = vector.shape_cast %23 : vector<1x1x512xf32> to vector<1x512xf32>
    %25 = vector.broadcast %24 : vector<1x512xf32> to vector<16x512xf32>
    %26 = arith.addf %22, %25 : vector<16x512xf32>
    %cst_20 = arith.constant 0.000000e+00 : f32
    %27 = vector.broadcast %cst_20 : f32 to vector<16x512xf32>
    %28 = arith.cmpf ogt, %26, %27 : vector<16x512xf32>
    %cst_21 = arith.constant 0.00999999977 : f32
    %29 = vector.broadcast %cst_21 : f32 to vector<16x512xf32>
    %30 = arith.mulf %29, %26 : vector<16x512xf32>
    %31 = arith.select %28, %26, %30 : vector<16x512xi1>, vector<16x512xf32>
    %c0_22 = arith.constant 0 : index
    %c0_23 = arith.constant 0 : index
    %32 = vector.load %arg10[%c0_22, %c0_23] : memref<16x512xf32, #tpu.memory_space<vmem>>, vector<16x512xf32>
    tpu.vector_store %arg10[%c0_22, %c0_23], %31 {strides = array<i32>} : memref<16x512xf32, #tpu.memory_space<vmem>>, vector<16x512xf32>,
    %c0_24 = arith.constant 0 : index
    %c0_25 = arith.constant 0 : index
    %33 = vector.load %arg10[%c0_24, %c0_25] : memref<16x512xf32, #tpu.memory_space<vmem>>, vector<16x512xf32>
    %34 = arith.truncf %33 : vector<16x512xf32> to vector<16x512xbf16>
    %c2 = arith.constant 2 : index
    %c0_26 = arith.constant 0 : index
    %c0_27 = arith.constant 0 : index
    %35 = vector.load %arg5[%c2, %c0_26, %c0_27] : memref<4x512x512xbf16, #tpu.memory_space<vmem>>, vector<1x512x512xbf16>
    %36 = vector.shape_cast %35 : vector<1x512x512xbf16> to vector<512x512xbf16>
    %cst_28 = arith.constant dense<0.000000e+00> : vector<16x512xf32>
    %37 = tpu.matmul %34, %36, %cst_28 {dimension_numbers = #tpu.dot_dimension_numbers<[1], [0], [0], [1], [0, 0, 1, 1], [], []>} : vector<16x512xbf16>, vector<512x512xbf16>, vector<16x512xf32> -> vector<16x512xf32>
    %c2_29 = arith.constant 2 : index
    %c0_30 = arith.constant 0 : index
    %c0_31 = arith.constant 0 : index
    %38 = vector.load %arg6[%c2_29, %c0_30, %c0_31] : memref<4x1x512xf32, #tpu.memory_space<vmem>>, vector<1x1x512xf32>
    %39 = vector.shape_cast %38 : vector<1x1x512xf32> to vector<1x512xf32>
    %40 = vector.broadcast %39 : vector<1x512xf32> to vector<16x512xf32>
    %41 = arith.addf %37, %40 : vector<16x512xf32>
    %cst_32 = arith.constant 0.000000e+00 : f32
    %42 = vector.broadcast %cst_32 : f32 to vector<16x512xf32>
    %43 = arith.cmpf ogt, %41, %42 : vector<16x512xf32>
    %cst_33 = arith.constant 0.00999999977 : f32
    %44 = vector.broadcast %cst_33 : f32 to vector<16x512xf32>
    %45 = arith.mulf %44, %41 : vector<16x512xf32>
    %46 = arith.select %43, %41, %45 : vector<16x512xi1>, vector<16x512xf32>
    %c0_34 = arith.constant 0 : index
    %c0_35 = arith.constant 0 : index
    %47 = vector.load %arg10[%c0_34, %c0_35] : memref<16x512xf32, #tpu.memory_space<vmem>>, vector<16x512xf32>
    tpu.vector_store %arg10[%c0_34, %c0_35], %46 {strides = array<i32>} : memref<16x512xf32, #tpu.memory_space<vmem>>, vector<16x512xf32>,
    %c0_36 = arith.constant 0 : index
    %c0_37 = arith.constant 0 : index
    %48 = vector.load %arg10[%c0_36, %c0_37] : memref<16x512xf32, #tpu.memory_space<vmem>>, vector<16x512xf32>
    %49 = arith.truncf %48 : vector<16x512xf32> to vector<16x512xbf16>
    %c3 = arith.constant 3 : index
    %c0_38 = arith.constant 0 : index
    %c0_39 = arith.constant 0 : index
    %50 = vector.load %arg5[%c3, %c0_38, %c0_39] : memref<4x512x512xbf16, #tpu.memory_space<vmem>>, vector<1x512x512xbf16>
    %51 = vector.shape_cast %50 : vector<1x512x512xbf16> to vector<512x512xbf16>
    %cst_40 = arith.constant dense<0.000000e+00> : vector<16x512xf32>
    %52 = tpu.matmul %49, %51, %cst_40 {dimension_numbers = #tpu.dot_dimension_numbers<[1], [0], [0], [1], [0, 0, 1, 1], [], []>} : vector<16x512xbf16>, vector<512x512xbf16>, vector<16x512xf32> -> vector<16x512xf32>
    %c3_41 = arith.constant 3 : index
    %c0_42 = arith.constant 0 : index
    %c0_43 = arith.constant 0 : index
    %53 = vector.load %arg6[%c3_41, %c0_42, %c0_43] : memref<4x1x512xf32, #tpu.memory_space<vmem>>, vector<1x1x512xf32>
    %54 = vector.shape_cast %53 : vector<1x1x512xf32> to vector<1x512xf32>
    %55 = vector.broadcast %54 : vector<1x512xf32> to vector<16x512xf32>
    %56 = arith.addf %52, %55 : vector<16x512xf32>
    %cst_44 = arith.constant 0.000000e+00 : f32
    %57 = vector.broadcast %cst_44 : f32 to vector<16x512xf32>
    %58 = arith.cmpf ogt, %56, %57 : vector<16x512xf32>
    %cst_45 = arith.constant 0.00999999977 : f32
    %59 = vector.broadcast %cst_45 : f32 to vector<16x512xf32>
    %60 = arith.mulf %59, %56 : vector<16x512xf32>
    %61 = arith.select %58, %56, %60 : vector<16x512xi1>, vector<16x512xf32>
    %c0_46 = arith.constant 0 : index
    %c0_47 = arith.constant 0 : index
    %62 = vector.load %arg10[%c0_46, %c0_47] : memref<16x512xf32, #tpu.memory_space<vmem>>, vector<16x512xf32>
    tpu.vector_store %arg10[%c0_46, %c0_47], %61 {strides = array<i32>} : memref<16x512xf32, #tpu.memory_space<vmem>>, vector<16x512xf32>,
    %c1_i32 = arith.constant 1 : i32
    %63 = arith.cmpi eq, %arg1, %c1_i32 : i32
    %64 = arith.extui %63 : i1 to i32
    %c0_i32_48 = arith.constant 0 : i32
    %65 = arith.cmpi ne, %64, %c0_i32_48 : i32
    scf.if %65 {
      %c0_49 = arith.constant 0 : index
      %c0_50 = arith.constant 0 : index
      %66 = vector.load %arg10[%c0_49, %c0_50] : memref<16x512xf32, #tpu.memory_space<vmem>>, vector<16x512xf32>
      %67 = arith.truncf %66 : vector<16x512xf32> to vector<16x512xbf16>
      %c0_51 = arith.constant 0 : index
      %c0_52 = arith.constant 0 : index
      %68 = vector.load %arg7[%c0_51, %c0_52] : memref<512x128xbf16, #tpu.memory_space<vmem>>, vector<512x128xbf16>
      %cst_53 = arith.constant dense<0.000000e+00> : vector<16x128xf32>
      %69 = tpu.matmul %67, %68, %cst_53 {dimension_numbers = #tpu.dot_dimension_numbers<[1], [0], [0], [1], [0, 0, 1, 1], [], []>} : vector<16x512xbf16>, vector<512x128xbf16>, vector<16x128xf32> -> vector<16x128xf32>
      %c0_54 = arith.constant 0 : index
      %c0_55 = arith.constant 0 : index
      %70 = vector.load %arg8[%c0_54, %c0_55] : memref<1x128xf32, #tpu.memory_space<vmem>>, vector<1x128xf32>
      %71 = vector.broadcast %70 : vector<1x128xf32> to vector<16x128xf32>
      %72 = arith.addf %69, %71 : vector<16x128xf32>
      %c0_56 = arith.constant 0 : index
      %c0_57 = arith.constant 0 : index
      %73 = vector.load %arg9[%c0_56, %c0_57] : memref<16x128xf32, #tpu.memory_space<vmem>>, vector<16x128xf32>
      tpu.vector_store %arg9[%c0_56, %c0_57], %72 {strides = array<i32>} : memref<16x128xf32, #tpu.memory_space<vmem>>, vector<16x128xf32>,
    } else {
    }
    return
  }
  func.func @transform_0(%arg0: i32, %arg1: i32) -> (i32, i32) {
    %c0_i32 = arith.constant 0 : i32
    %c0_i32_0 = arith.constant 0 : i32
    return %arg0, %c0_i32 : i32, i32
  }
  func.func @transform_1(%arg0: i32, %arg1: i32) -> (i32, i32) {
    %c0_i32 = arith.constant 0 : i32
    %c0_i32_0 = arith.constant 0 : i32
    %c0_i32_1 = arith.constant 0 : i32
    return %c0_i32, %c0_i32_0 : i32, i32
  }
  func.func @transform_2(%arg0: i32, %arg1: i32) -> (i32, i32) {
    %c0_i32 = arith.constant 0 : i32
    %c0_i32_0 = arith.constant 0 : i32
    %c0_i32_1 = arith.constant 0 : i32
    return %c0_i32, %c0_i32_0 : i32, i32
  }
  func.func @transform_3(%arg0: i32, %arg1: i32) -> (i32, i32, i32) {
    %c0_i32 = arith.constant 0 : i32
    %c0_i32_0 = arith.constant 0 : i32
    %c0_i32_1 = arith.constant 0 : i32
    return %arg1, %c0_i32, %c0_i32_0 : i32, i32, i32
  }
  func.func @transform_4(%arg0: i32, %arg1: i32) -> (i32, i32, i32) {
    %c0_i32 = arith.constant 0 : i32
    %c0_i32_0 = arith.constant 0 : i32
    %c0_i32_1 = arith.constant 0 : i32
    return %arg1, %c0_i32, %c0_i32_0 : i32, i32, i32
  }
  func.func @transform_5(%arg0: i32, %arg1: i32) -> (i32, i32) {
    %c0_i32 = arith.constant 0 : i32
    %c0_i32_0 = arith.constant 0 : i32
    %c0_i32_1 = arith.constant 0 : i32
    return %c0_i32, %c0_i32_0 : i32, i32
  }
  func.func @transform_6(%arg0: i32, %arg1: i32) -> (i32, i32) {
    %c0_i32 = arith.constant 0 : i32
    %c0_i32_0 = arith.constant 0 : i32
    %c0_i32_1 = arith.constant 0 : i32
    return %c0_i32, %c0_i32_0 : i32, i32
  }
  func.func @transform_7(%arg0: i32, %arg1: i32) -> (i32, i32) {
    %c0_i32 = arith.constant 0 : i32
    %c0_i32_0 = arith.constant 0 : i32
    return %arg0, %c0_i32 : i32, i32
  }
}

</mosaic_0001>

<bundles_post_ra>
// kernel: tpu_custom_call.1
= control target key start
LH: loop header
LB: loop body
LE: loop exit
PB: predicated region body
PF: predicated region fallthrough
CT: control target
= control target key end

     0   :  { %s8640_s0 = inlined_call_operand.hbm [shape: bf16[16,128], index: 0, kind: input, shape index: {}]   ;;  %s8641_s1 = inlined_call_operand.hbm [shape: bf16[128,512], index: 1, kind: input, shape index: {}]   ;;  %s8642_s2 = inlined_call_operand.hbm [shape: f32[1,512], index: 2, kind: input, shape index: {}]   ;;  %s8643_s3 = inlined_call_operand.hbm [shape: bf16[8,512,512], index: 3, kind: input, shape index: {}]   ;;  %s8644_s4 = inlined_call_operand.hbm [shape: f32[8,1,512], index: 4, kind: input, shape index: {}]   ;;  %s8645_s5 = inlined_call_operand.hbm [shape: bf16[512,128], index: 5, kind: input, shape index: {}]   ;;  %s8646_s6 = inlined_call_operand.hbm [shape: f32[1,128], index: 6, kind: input, shape index: {}]   ;;  %s8647_s7 = inlined_call_operand.hbm [shape: f32[16,128], index: 7, kind: output, shape index: {}]  }
   0x1   :  { %8665 = sst [smem:[#allocation25_spill]] %s8640_s0 }
   0x2   :  { %8666 = sst [smem:[#allocation26_spill]] %s8641_s1 }
   0x3   :  { %8667 = sst [smem:[#allocation27_spill]] %s8643_s3 }
   0x4   :  { %8668 = sst [smem:[#allocation28_spill]] %s8645_s5 }
   0x5   :  { %12 = vsyncpa [#allocation4], 0 }
   0x6   :  { %13 = vsyncpa [#allocation7], 0 }
   0x7   :  { %14 = vsyncpa [#allocation10], 0 }
   0x8   :  { %16 = vsyncpa [#allocation10 + $0x1], 0 }
   0x9   :  { %17 = vsyncpa [#allocation13], 0 }
   0xa   :  { %18 = vsyncpa [#allocation5], 0  ;;  %s7735_s24 = smov 0   ;;  %s7737_s25 = smov 0  }
   0xb   :  { %s7739_s26 = smov 0   ;;  %s7741_s27 = smov 0  }
   0xc   :  { %s7743_s28 = smov 0   ;;  %s7745_s29 = smov 0  }
   0xd LB: > { %8669 = sst [smem:[#allocation21_spill]] %s7666_s26  ;;  %s7680_s30 = smov [#allocation6]   ;;  %s7678_s29 = sphi %s7745_s29, %s24_s29   ;;  %s7674_s28 = sphi %s7743_s28, %s8706_s28   ;;  %s7670_s27 = sphi %s7741_s27, %s8705_s27   ;;  %s7666_s26 = sphi %s7739_s26, %s8701_s26   ;;  %s7662_s25 = sphi %s7737_s25, %s8704_s25   ;;  %s7658_s24 = sphi %s7735_s24, %s8703_s24  }
   0xe   : > { %8670 = sst [smem:[#allocation22_spill]] %s7678_s29  ;;  %s257_s8 = sshll.u32 %s7680_s30, 4  ;;  %s7771_s8 = int_to_ptr.vmem [resolvable:$true] %s257_s8 }
   0xf   : > { %s7766_s9 = sadd.s32 4294967295, %s7678_s29   ;;  %p5306_p0 = scmp.ge.s32.totalorder %s7678_s29, 1 }
  0x10   : > { %p8654_p1 = scmp.eq.s32.totalorder %s7766_s9, 0  ;;  %p229_p2 = scmp.lt.s32.totalorder %s7678_s29, 3 }
  0x11   : > { %s7681_s12 = smov [#allocation12]   ;;  %s8673_s1 = sld [smem:[#allocation26_spill]] }
  0x12   : > { %p7773_p3 = pnand %p5306_p0, %p229_p2  ;;  %s281_s13 = sshll.u32 %s7681_s12, 4  ;;  %s7785_s13 = int_to_ptr.vmem [resolvable:$true] %s281_s13 }
  0x14   : > { %s8671_s10 = scalar_select %p7773_p3, 1, 0 }
  0x15   : > { %p6440_p4 = pneg %p7773_p3 }
  0x17   : > { %p7781_p5 = pnand %p6440_p4, %p8654_p1  ;;  %s7386_s16 = scalar_lea.hbm %s8673_s1, 4096 }
  0x18   : > { %p7387_p6 = scmp.ne.s32.totalorder %s8673_s1, %s7386_s16  ;;  %p7393_p10 = scmp.lt.u32.totalorder %s7386_s16, %s8673_s1 }
  0x19   : > { %s8672_s11 = scalar_select %p7781_p5, 1, 0 }
  0x1a   : > { %p7795_p7 = pneg %p7781_p5 }
  0x1c   : > { %p7389_p8 = pnand %p7795_p7, %p7387_p6 }
  0x1e   : > { %p7390_p9 = pneg %p7389_p8 }
  0x20   : > { %p7395_p11 = pnand %p7393_p10, %p7390_p9 }
  0x22   : > { %7398 = shalt.err (!%p7395_p11)
}
  0x23   : > { %s7399_s22 = scalar_lea.vmem %s7771_s8, 4096  ;;  %p7407_p2 = scmp.lt.s32.totalorder %s7771_s8, %s7771_s8 }
  0x24   : > { %p7400_p12 = scmp.ne.s32.totalorder %s7771_s8, %s7399_s22  ;;  %p7408_p4 = scmp.lt.s32.totalorder %s7399_s22, %s7399_s22 }
  0x26   : > { %p7402_p13 = pnand %p7400_p12, %p7795_p7  ;;  %p7409_p6 = por %p7408_p4, %p7407_p2 }
  0x28   : > { %p7403_p0 = pneg %p7402_p13 }
  0x2a   : > { %p7410_p8 = pnand %p7409_p6, %p7403_p0 }
  0x2c   : > { %7413 = shalt.err (!%p7410_p8)
}
  0x2d   : > { %s8652_s23 = smov 256   ;;  %s8653_s30 = smov 16  }
  0x2e   : > { %6446 = dma.hbm_to_vmem [thread:$0]  (!%p7781_p5), %s8673_s1, 4096, %s7771_s8, [#allocation7], %s8652_s23, %s8652_s23, %s8653_s30  }
  0x2f   : > { %s8675_s5 = sld [smem:[#allocation28_spill]] }
  0x35   : > { %s7414_s17 = scalar_lea.hbm %s8675_s5, 4096 }
  0x36   : > { %p7415_p9 = scmp.ne.s32.totalorder %s8675_s5, %s7414_s17  ;;  %p7421_p12 = scmp.lt.u32.totalorder %s7414_s17, %s8675_s5 }
  0x38   : > { %p7417_p10 = pnand %p7415_p9, %p7795_p7 }
  0x3a   : > { %p7418_p11 = pneg %p7417_p10 }
  0x3c   : > { %p7423_p13 = pnand %p7421_p12, %p7418_p11 }
  0x3e   : > { %7426 = shalt.err (!%p7423_p13)
}
  0x3f   : > { %s7427_s8 = scalar_lea.vmem %s7785_s13, 4096  ;;  %p7435_p6 = scmp.lt.s32.totalorder %s7785_s13, %s7785_s13 }
  0x40   : > { %p7428_p0 = scmp.ne.s32.totalorder %s7785_s13, %s7427_s8  ;;  %p7436_p8 = scmp.lt.s32.totalorder %s7427_s8, %s7427_s8 }
  0x42   : > { %p7430_p2 = pnand %p7428_p0, %p7795_p7  ;;  %p7437_p9 = por %p7436_p8, %p7435_p6 }
  0x44   : > { %p7431_p4 = pneg %p7430_p2 }
  0x46   : > { %p7438_p10 = pnand %p7437_p9, %p7431_p4 }
  0x48   : > { %7441 = shalt.err (!%p7438_p10)
}
  0x49   : > { %s8648_s12 = smov 64   ;;  %s8650_s14 = smov 4  }
  0x4a   : > { %6452 = dma.hbm_to_vmem [thread:$0]  (!%p7781_p5), %s8675_s5, 4096, %s7785_s13, [#allocation13], %s8648_s12, %s8648_s12, %s8650_s14  }
  0x4b   : > { %s33_s17 = sadd.s32 1, %s7674_s28  ;;  %s111_s18 = sadd.s32 1, %s7666_s26 }
  0x4c   : > { %p34_p11 = scmp.ge.s32.totalorder %s33_s17, 2  ;;  %p118_p12 = scmp.ne.s32.totalorder %s7666_s26, %s7662_s25 }
  0x4d   : > { %p119_p13 = scmp.eq.s32.totalorder %s7678_s29, 0  ;;  %p124_p0 = scmp.ne.s32.totalorder %s7662_s25, %s7658_s24 }
  0x4e   : > { %s8708_s17 = smov (%p34_p11, %s33_s17), 0  ;;  %p6468_p6 = scmp.lt.s32.totalorder %s7678_s29, 2 }
  0x4f   : > { %8676 = sst [smem:[#allocation23_spill]] %s8708_s17  ;;  %p7854_p2 = por %p119_p13, %p118_p12 }
  0x50   : > { %p7860_p4 = por %p8654_p1, %p124_p0  ;;  %s108_s13 = ssub.s32 %s7674_s28, %s8708_s17 }
  0x51   : > { %p109_p8 = scmp.eq.s32.totalorder %s108_s13, 0  ;;  %s306_s22 = sand.u32 1, %s7678_s29  }
  0x52   : > { %s8678_s21 = scalar_select %p7860_p4, 1, 0 }
  0x53   : > { %s308_s8 = sand.u32 1, %s7666_s26   ;;  %s6301_s16 = sshll.u32 %s7674_s28, 16 }
  0x54   : > { %s7870_s15 = scalar_select %p109_p8, %s7666_s26, %s111_s18  }
  0x55   : > { %s5313_s24 = sshll.u32 %s308_s8, 12  ;;  %s8680_s3 = sld [smem:[#allocation27_spill]] }
  0x56   : > { %8679 = sst [smem:[#allocation24_spill]] %s7870_s15  ;;  %s310_s30 = scalar_lea.vmem [#allocation9], %s5313_s24 }
  0x57   : > { %s318_s1 = sshll.u32 %s310_s30, 4  ;;  %p7880_p9 = pnand %p6468_p6, %p7854_p2  ;;  %s7884_s1 = int_to_ptr.vmem [resolvable:$true] %s318_s1 }
  0x58   : > { %s7886_s18 = sshll.u32 %s308_s8, 4  ;;  %s7888_s12 = scalar_lea.sflag [#allocation10], %s306_s22 }
  0x59   : > { %s8681_s13 = scalar_select %p7880_p9, 1, 0 }
  0x5a   : > { %p8662_p11 = pneg %p7880_p9 }
  0x5b   : > { %s7876_s23 = scalar_lea.hbm %s8680_s3, %s6301_s16  ;;  %s7447_s24 = scalar_lea.hbm %s8680_s3, 131072 }
  0x5c   : > { %s7442_s14 = scalar_lea.hbm %s7876_s23, 65536  ;;  %p7448_p0 = scmp.lt.u32.totalorder %s7876_s23, %s8680_s3 }
  0x5d   : > { %p7443_p10 = scmp.ne.s32.totalorder %s7876_s23, %s7442_s14  ;;  %p7449_p2 = scmp.lt.u32.totalorder %s7447_s24, %s7442_s14 }
  0x5e   : > { %p7451_p8 = scmp.lt.u32.totalorder %s7442_s14, %s7876_s23 }
  0x5f   : > { %p7445_p12 = pnand %p8662_p11, %p7443_p10  ;;  %p7450_p6 = por %p7449_p2, %p7448_p0 }
  0x61   : > { %p7446_p13 = pneg %p7445_p12  ;;  %p7452_p1 = por %p7451_p8, %p7450_p6 }
  0x63   : > { %p7453_p4 = pnand %p7452_p1, %p7446_p13 }
  0x65   : > { %7456 = shalt.err (!%p7453_p4)
}
  0x66   : > { %s7457_s22 = scalar_lea.vmem %s7884_s1, 65536  ;;  %s7686_s8 = smov [#allocation9]  }
  0x67   : > { %p7458_p10 = scmp.ne.s32.totalorder %s7884_s1, %s7457_s22  ;;  %s7462_s30 = sshll.u32 %s7686_s8, 4  ;;  %s7463_s30 = int_to_ptr.vmem [resolvable:$false] %s7462_s30 }
  0x68   : > { %s7464_s5 = scalar_lea.vmem %s7463_s30, 131072  ;;  %p7465_p5 = scmp.lt.s32.totalorder %s7884_s1, %s7463_s30 }
  0x69   : > { %p7460_p12 = pnand %p7458_p10, %p8662_p11  ;;  %p7466_p0 = scmp.lt.s32.totalorder %s7464_s5, %s7457_s22 }
  0x6b   : > { %p7461_p3 = pneg %p7460_p12  ;;  %p7467_p2 = por %p7466_p0, %p7465_p5 }
  0x6d   : > { %p7468_p6 = pnand %p7467_p2, %p7461_p3 }
  0x6f   : > { %7471 = shalt.err (!%p7468_p6)
}
  0x70   : > { %s8682_s14 = smov 16   ;;  %s8683_s20 = smov 256  }
  0x71   : > { %6459 = dma.hbm_to_vmem [thread:$0]  (!%p7880_p9), %s7876_s23, 65536, %s7884_s1, %s7888_s12, %s8683_s20, %s8683_s20, %s8682_s14  }
  0x72   : > { %s332_s24 = scalar_lea.vmem [#allocation11], %s7886_s18  ;;  %s7687_s8 = smov [#allocation3]  }
  0x73   : > { %s7920_s16 = sshll.u32 %s332_s24, 4  ;;  %s244_s30 = sshll.u32 %s7687_s8, 4  ;;  %s245_s30 = int_to_ptr.vmem [resolvable:$true] %s244_s30  ;;  %s7986_s16 = int_to_ptr.vmem [resolvable:$true] %s7920_s16 }
  0x74   : > { %s7688_s22 = smov [#allocation8]   ;;  %s8684_s0 = sld [smem:[#allocation25_spill]] }
  0x75   : > { %s271_s5 = sshll.u32 %s7688_s22, 4  ;;  %s272_s5 = int_to_ptr.vmem [resolvable:$true] %s271_s5 }
  0x7a   : > { %s7472_s15 = scalar_lea.hbm %s8684_s0, 128 }
  0x7b   : > { %p7473_p1 = scmp.ne.s32.totalorder %s8684_s0, %s7472_s15  ;;  %p7479_p4 = scmp.lt.u32.totalorder %s7472_s15, %s8684_s0 }
  0x7d   : > { %p7475_p3 = pnand %p7473_p1, %p7795_p7 }
  0x7f   : > { %p7476_p5 = pneg %p7475_p3 }
  0x81   : > { %p7481_p13 = pnand %p7479_p4, %p7476_p5 }
  0x83   : > { %7484 = shalt.err (!%p7481_p13)
}
  0x84   : > { %s7485_s18 = scalar_lea.vmem %s245_s30, 128  ;;  %p7493_p0 = scmp.lt.s32.totalorder %s245_s30, %s245_s30 }
  0x85   : > { %p7486_p8 = scmp.ne.s32.totalorder %s245_s30, %s7485_s18  ;;  %p7494_p2 = scmp.lt.s32.totalorder %s7485_s18, %s7485_s18 }
  0x87   : > { %p7488_p10 = pnand %p7486_p8, %p7795_p7  ;;  %p7495_p6 = por %p7494_p2, %p7493_p0 }
  0x89   : > { %p7489_p12 = pneg %p7488_p10 }
  0x8b   : > { %p7496_p11 = pnand %p7495_p6, %p7489_p12 }
  0x8d   : > { %7499 = shalt.err (!%p7496_p11)
}
  0x8e   : > { %p8685_p1 = scmp.ne.s32.totalorder %s8672_s11, 0  ;;  %s8686_s3 = smov 4  }
  0x8f   : > { %s8687_s26 = smov 64   ;;  %s7500_s20 = scalar_lea.hbm %s8642_s2, 64 }
  0x90   : > { %6443 = dma.hbm_to_vmem [thread:$0]  (!%p8685_p1), %s8684_s0, 128, %s245_s30, [#allocation4], %s8687_s26, %s8687_s26, %s8686_s3  }
  0x91   : > { %p7501_p3 = scmp.ne.s32.totalorder %s8642_s2, %s7500_s20  ;;  %p7507_p4 = scmp.lt.u32.totalorder %s7500_s20, %s8642_s2 }
  0x93   : > { %p7503_p11 = pnand %p7501_p3, %p7795_p7 }
  0x95   : > { %p7504_p5 = pneg %p7503_p11 }
  0x97   : > { %p7509_p13 = pnand %p7507_p4, %p7504_p5 }
  0x99   : > { %7512 = shalt.err (!%p7509_p13)
}
  0x9a   : > { %s7513_s23 = scalar_lea.vmem %s272_s5, 64  ;;  %p7521_p0 = scmp.lt.s32.totalorder %s272_s5, %s272_s5 }
  0x9b   : > { %p7514_p8 = scmp.ne.s32.totalorder %s272_s5, %s7513_s23  ;;  %p7522_p2 = scmp.lt.s32.totalorder %s7513_s23, %s7513_s23 }
  0x9d   : > { %p7516_p10 = pnand %p7514_p8, %p7795_p7  ;;  %p7523_p6 = por %p7522_p2, %p7521_p0 }
  0x9f   : > { %p7517_p12 = pneg %p7516_p10 }
  0xa1   : > { %p7524_p9 = pnand %p7523_p6, %p7517_p12 }
  0xa3   : > { %7527 = shalt.err (!%p7524_p9)
}
  0xa4   : > { %6449 = dma.hbm_to_vmem [thread:$0]  (!%p8685_p1), %s8642_s2, 64, %s272_s5, [#allocation7]  }
  0xa5   : > { %s7689_s29 = smov [#allocation14]   ;;  %s6303_s15 = sshll.u32 %s7674_s28, 8 }
  0xa6   : > { %s295_s17 = sshll.u32 %s7689_s29, 4  ;;  %s7965_s24 = scalar_lea.hbm %s8644_s4, %s6303_s15  ;;  %s296_s17 = int_to_ptr.vmem [resolvable:$true] %s295_s17 }
  0xa7   : > { %s7528_s1 = scalar_lea.hbm %s8646_s6, 16 }
  0xa8   : > { %p7529_p9 = scmp.ne.s32.totalorder %s8646_s6, %s7528_s1  ;;  %p7535_p5 = scmp.lt.u32.totalorder %s7528_s1, %s8646_s6 }
  0xaa   : > { %p7531_p3 = pnand %p7529_p9, %p7795_p7 }
  0xac   : > { %p7532_p11 = pneg %p7531_p3 }
  0xae   : > { %p7537_p4 = pnand %p7535_p5, %p7532_p11 }
  0xb0   : > { %7540 = shalt.err (!%p7537_p4)
}
  0xb1   : > { %s7541_s18 = scalar_lea.vmem %s296_s17, 16  ;;  %s7548_s29 = scalar_lea.vmem %s296_s17, 32 }
  0xb2   : > { %p7542_p13 = scmp.ne.s32.totalorder %s296_s17, %s7541_s18  ;;  %p7549_p12 = scmp.lt.s32.totalorder %s296_s17, %s296_s17 }
  0xb3   : > { %p7550_p0 = scmp.lt.s32.totalorder %s7548_s29, %s7541_s18 }
  0xb4   : > { %p7544_p8 = pnand %p7542_p13, %p7795_p7 }
  0xb5   : > { %p7551_p2 = por %p7550_p0, %p7549_p12 }
  0xb6   : > { %p7545_p10 = pneg %p7544_p8 }
  0xb8   : > { %p7552_p6 = pnand %p7551_p2, %p7545_p10 }
  0xba   : > { %7555 = shalt.err (!%p7552_p6)
}
  0xbb   : > { %6455 = dma.hbm_to_vmem [thread:$0]  (!%p8685_p1), %s8646_s6, 16, %s296_s17, [#allocation13]  }
  0xbc   : > { %s7556_s19 = scalar_lea.hbm %s7965_s24, 256  ;;  %p8688_p9 = scmp.ne.s32.totalorder %s8681_s13, 0 }
  0xbd   : > { %p7557_p7 = scmp.ne.s32.totalorder %s7965_s24, %s7556_s19  ;;  %s7561_s20 = scalar_lea.hbm %s8644_s4, 512 }
  0xbe   : > { %p8689_p3 = pneg %p8688_p9  ;;  %p7562_p4 = scmp.lt.u32.totalorder %s7965_s24, %s8644_s4 }
  0xbf   : > { %p7563_p13 = scmp.lt.u32.totalorder %s7561_s20, %s7556_s19  ;;  %p7565_p10 = scmp.lt.u32.totalorder %s7556_s19, %s7965_s24 }
  0xc0   : > { %p7559_p11 = pnand %p7557_p7, %p8689_p3 }
  0xc1   : > { %p7564_p8 = por %p7563_p13, %p7562_p4 }
  0xc2   : > { %p7560_p5 = pneg %p7559_p11 }
  0xc3   : > { %p7566_p1 = por %p7565_p10, %p7564_p8 }
  0xc5   : > { %p7567_p12 = pnand %p7566_p1, %p7560_p5 }
  0xc7   : > { %7570 = shalt.err (!%p7567_p12)
}
  0xc8   : > { %s7571_s17 = scalar_lea.vmem %s7986_s16, 256  ;;  %p8690_p2 = pmov %p8689_p3 }
  0xc9   : > { %p7572_p0 = scmp.ne.s32.totalorder %s7986_s16, %s7571_s17  ;;  %s7690_s1 = smov [#allocation11]  }
  0xca   : > { %s7576_s23 = sshll.u32 %s7690_s1, 4  ;;  %s7577_s23 = int_to_ptr.vmem [resolvable:$false] %s7576_s23 }
  0xcb   : > { %p7574_p6 = pnand %p7572_p0, %p8690_p2  ;;  %s7578_s5 = scalar_lea.vmem %s7577_s23, 512 }
  0xcc   : > { %p7579_p3 = scmp.lt.s32.totalorder %s7986_s16, %s7577_s23  ;;  %p7580_p11 = scmp.lt.s32.totalorder %s7578_s5, %s7571_s17 }
  0xcd   : > { %p7575_p7 = pneg %p7574_p6 }
  0xce   : > { %p7581_p4 = por %p7580_p11, %p7579_p3 }
  0xd0   : > { %p7582_p13 = pnand %p7581_p4, %p7575_p7 }
  0xd2   : > { %7585 = shalt.err (!%p7582_p13)
}
  0xd3   : > { %6462 = dma.hbm_to_vmem [thread:$0]  (!%p8688_p9), %s7965_s24, 256, %s7986_s16, %s7888_s12, %s8687_s26, %s8687_s26, %s8686_s3  }
  0xd4   : > { %p8691_p5 = scmp.ne.s32.totalorder %s8671_s10, 0 }
  0xd5   : > { %p8692_p8 = scmp.eq.s32.totalorder (!%p8691_p5), %s7766_s9, 0 }
  0xd6   : > { %352 = sbr.rel (%p8691_p5) target bundleno = 1969 (0x7b1), region = 48 }
  0xdd   : > { %7637 = dma.done.wait (%p8692_p8), [#allocation4], 128   ;;  %p8693_p10 = pmov %p8692_p8 }
  0xde   : > { %p8694_p1 = pmov %p8692_p8 }
  0xdf   : > { %7639 = vsyncadd (%p8693_p10), [#allocation4], 4294967168 }
  0xe0   : > { %7641 = dma.done.wait (%p8694_p1), [#allocation7], 4160   ;;  %p8695_p12 = pmov %p8694_p1 }
  0xe1   : > { %s366_s13 = sand.u32 1, %s7766_s9   ;;  %s368_s12 = sand.u32 1, %s7662_s25  }
  0xe2   : > { %7643 = vsyncadd (%p8695_p12), [#allocation7], 4294963136  ;;  %s5325_s16 = sshll.u32 %s368_s12, 12  ;;  %s367_s10 = scalar_lea.sflag [#allocation10], %s366_s13 }
  0xe3   : > { %s8027_s3 = scalar_lea.vmem [#allocation9], %s5325_s16  ;;  %p8696_p9 = scmp.ne.s32.totalorder %s8678_s21, 0 }
  0xe5   : > { %7645 = dma.done.wait (%p8696_p9), %s367_s10, 65792  }
  0xe6   : > { %7647 = vsyncadd (%p8696_p9), %s367_s10, 4294901504  ;;  %s5326_s26 = sshll.u32 %s368_s12, 4  ;;  %p8697_p0 = pmov %p8694_p1 }
  0xe7   : > { %s8033_s24 = scalar_lea.vmem [#allocation11], %s5326_s26 }
  0xe8   : > { %7649 = dma.done.wait (%p8697_p0), [#allocation13], 4112   ;;  %p8698_p2 = pmov %p8697_p0 }
  0xe9   : > { %p5329_p6 = scmp.ne.s32.totalorder %s7670_s27, 0 }
  0xea   : > { %7651 = vsyncadd (%p8698_p2), [#allocation13], 4294963184  ;;  %v6537_v0 = vld [vmem:[#allocation6 + $0x4] ss:$16 sps:$4 sm:$0xff] (!%p5329_p6)   ;;  %v6539_v1 = vld [vmem:[#allocation6 + $0xc] ss:$16 sps:$4 sm:$0xff] (!%p5329_p6)   ;;  %v463_v34 = vlaneseq (!%p5329_p6) }
  0xeb   : > { %426 = sbr.rel (%p5329_p6) target bundleno = 492 (0x1ec), region = 80  ;;  %v7691_v2 = vmov (!%p5329_p6), 0   ;;  %649 = vmatprep.subr.bf16.mxu0 (!%p5329_p6), %v6537_v0  ;;  %v6541_v3 = vld [vmem:[#allocation6] ss:$16 sps:$4 sm:$0xff] (!%p5329_p6)   ;;  %v6542_v4 = vld [vmem:[#allocation6 + $0x8] ss:$16 sps:$4 sm:$0xff] (!%p5329_p6)   ;;  %692 = vmatprep.subr.bf16.mxu1 (!%p5329_p6), %v6539_v1 }
  0xec   : > { %681 = vmatprep.mubr.bf16.mxu0 (!%p5329_p6), %v7691_v2  ;;  %724 = vmatprep.mubr.bf16.mxu1 (!%p5329_p6), %v7691_v2  ;;  %v6543_v5 = vld [vmem:[#allocation6 + $0x24] ss:$16 sps:$4 sm:$0xff] (!%p5329_p6)   ;;  %v6545_v6 = vld [vmem:[#allocation6 + $0x2c] ss:$16 sps:$4 sm:$0xff] (!%p5329_p6)   ;;  %v6547_v7 = vld [vmem:[#allocation6 + $0x20] ss:$16 sps:$4 sm:$0xff] (!%p5329_p6)  }
  0xed   : > { %650 = vmatpush1.bf16.msra.mxu0 (!%p5329_p6), %v6541_v3  ;;  %693 = vmatpush1.bf16.msra.mxu1 (!%p5329_p6), %v6542_v4  ;;  %v6548_v8 = vld [vmem:[#allocation6 + $0x28] ss:$16 sps:$4 sm:$0xff] (!%p5329_p6)   ;;  %v6549_v9 = vld [vmem:[#allocation6 + $0x44] ss:$16 sps:$4 sm:$0xff] (!%p5329_p6)   ;;  %v6551_v10 = vld [vmem:[#allocation6 + $0x4c] ss:$16 sps:$4 sm:$0xff] (!%p5329_p6)  }
  0xee   : > { %651 = vmatprep.subr.bf16.mxu0 (!%p5329_p6), %v6543_v5  ;;  %694 = vmatprep.subr.bf16.mxu1 (!%p5329_p6), %v6545_v6  ;;  %v6553_v11 = vld [vmem:[#allocation6 + $0x40] ss:$16 sps:$4 sm:$0xff] (!%p5329_p6)   ;;  %v6554_v12 = vld [vmem:[#allocation6 + $0x48] ss:$16 sps:$4 sm:$0xff] (!%p5329_p6)   ;;  %v6555_v13 = vld [vmem:[#allocation6 + $0x64] ss:$16 sps:$4 sm:$0xff] (!%p5329_p6)  }
  0xef   : > { %v6557_v14 = vld [vmem:[#allocation6 + $0x6c] ss:$16 sps:$4 sm:$0xff] (!%p5329_p6)   ;;  %v6559_v15 = vld [vmem:[#allocation6 + $0x60] ss:$16 sps:$4 sm:$0xff] (!%p5329_p6)   ;;  %v6560_v16 = vld [vmem:[#allocation6 + $0x68] ss:$16 sps:$4 sm:$0xff] (!%p5329_p6)  }
  0xf0   : > { %v6561_v17 = vld [vmem:[#allocation6 + $0x84] ss:$16 sps:$4 sm:$0xff] (!%p5329_p6)   ;;  %v6563_v18 = vld [vmem:[#allocation6 + $0x8c] ss:$16 sps:$4 sm:$0xff] (!%p5329_p6)   ;;  %v6565_v19 = vld [vmem:[#allocation6 + $0x80] ss:$16 sps:$4 sm:$0xff] (!%p5329_p6)  }
  0xf1   : > { %652 = vmatpush1.bf16.msra.mxu0 (!%p5329_p6), %v6547_v7  ;;  %695 = vmatpush1.bf16.msra.mxu1 (!%p5329_p6), %v6548_v8  ;;  %v6566_v20 = vld [vmem:[#allocation6 + $0x88] ss:$16 sps:$4 sm:$0xff] (!%p5329_p6)   ;;  %v6567_v21 = vld [vmem:[#allocation6 + $0xa4] ss:$16 sps:$4 sm:$0xff] (!%p5329_p6)   ;;  %v6569_v22 = vld [vmem:[#allocation6 + $0xac] ss:$16 sps:$4 sm:$0xff] (!%p5329_p6)  }
  0xf2   : > { %653 = vmatprep.subr.bf16.mxu0 %v6549_v9  ;;  %696 = vmatprep.subr.bf16.mxu1 %v6551_v10  ;;  %v6571_v23 = vld [vmem:[#allocation6 + $0xa0] ss:$16 sps:$4 sm:$0xff]   ;;  %v6572_v24 = vld [vmem:[#allocation6 + $0xa8] ss:$16 sps:$4 sm:$0xff]   ;;  %v6573_v25 = vld [vmem:[#allocation6 + $0xc4] ss:$16 sps:$4 sm:$0xff]  }
  0xf3   : > { %v6575_v26 = vld [vmem:[#allocation6 + $0xcc] ss:$16 sps:$4 sm:$0xff]   ;;  %v6577_v27 = vld [vmem:[#allocation6 + $0xc0] ss:$16 sps:$4 sm:$0xff]   ;;  %v6578_v28 = vld [vmem:[#allocation6 + $0xc8] ss:$16 sps:$4 sm:$0xff]  }
  0xf4   : > { %v6579_v29 = vld [vmem:[#allocation6 + $0xe4] ss:$16 sps:$4 sm:$0xff]   ;;  %v6581_v30 = vld [vmem:[#allocation6 + $0xec] ss:$16 sps:$4 sm:$0xff]   ;;  %v6583_v31 = vld [vmem:[#allocation6 + $0xe0] ss:$16 sps:$4 sm:$0xff]  }
  0xf5   : > { %654 = vmatpush1.bf16.msra.mxu0 %v6553_v11  ;;  %697 = vmatpush1.bf16.msra.mxu1 %v6554_v12  ;;  %v6584_v32 = vld [vmem:[#allocation6 + $0xe8] ss:$16 sps:$4 sm:$0xff]   ;;  %v464_v35 = vshrl.u32 %v463_v34, 7  ;;  %v461_v38 = vld [vmem:[#allocation8] sm:$0xf] }
  0xf6   : > { %655 = vmatprep.subr.bf16.mxu0 %v6555_v13  ;;  %698 = vmatprep.subr.bf16.mxu1 %v6557_v14  ;;  %v6585_v33 = vld [vmem:[#allocation3] sm:$0xff]  }
  0xf7   : > { %v465_v36 = vsub.s32 0, %v464_v35  ;;  %v473_v37 = vsub.s32 2, %v464_v35  ;;  %v469_v39 = vsub.s32 1, %v464_v35  ;;  %v477_v40 = vsub.s32 3, %v464_v35 }
  0xf9   : > { %656 = vmatpush1.bf16.msra.mxu0 %v6559_v15  ;;  %699 = vmatpush1.bf16.msra.mxu1 %v6560_v16  ;;  %v466_v41 = vrot.slane %v461_v38, %v465_v36  ;;  %v474_v42 = vrot.slane %v461_v38, %v473_v37  ;;  %v470_v43 = vrot.slane %v461_v38, %v469_v39 }
  0xfa   : > { %657 = vmatprep.subr.bf16.mxu0 %v6561_v17  ;;  %700 = vmatprep.subr.bf16.mxu1 %v6563_v18  ;;  %v478_v44 = vrot.slane %v461_v38, %v477_v40 }
  0xfd   : > { %658 = vmatpush1.bf16.msra.mxu0 %v6565_v19  ;;  %701 = vmatpush1.bf16.msra.mxu1 %v6566_v20 }
  0xfe   : > { %659 = vmatprep.subr.bf16.mxu0 %v6567_v21  ;;  %702 = vmatprep.subr.bf16.mxu1 %v6569_v22 }
 0x101   : > { %660 = vmatpush1.bf16.msra.mxu0 %v6571_v23  ;;  %703 = vmatpush1.bf16.msra.mxu1 %v6572_v24 }
 0x102   : > { %661 = vmatprep.subr.bf16.mxu0 %v6573_v25  ;;  %704 = vmatprep.subr.bf16.mxu1 %v6575_v26 }
 0x105   : > { %662 = vmatpush1.bf16.msra.mxu0 %v6577_v27  ;;  %705 = vmatpush1.bf16.msra.mxu1 %v6578_v28 }
 0x106   : > { %663 = vmatprep.subr.bf16.mxu0 %v6579_v29  ;;  %706 = vmatprep.subr.bf16.mxu1 %v6581_v30 }
 0x109   : > { %664 = vmatpush1.bf16.msra.mxu0 %v6583_v31  ;;  %707 = vmatpush1.bf16.msra.mxu1 %v6584_v32 }
 0x10c   : > { %682 = vmatmul.mubr.bf16.vlgmr.msra.gmra.mrb[0].mxu0 %v6585_v33  ;;  %725 = vmatmul.mubr.bf16.vlgmr.msra.gmra.mrb[0].mxu1 %v6585_v33 }
 0x1df   : > { %v683_v45 = vpop.f32.mrb[0].mxu0  ;;  %v726_v46 = vpop.f32.mrb[0].mxu1 }
 0x1e0   : > { %v684_v47 = vadd.f32 %v683_v45, %v466_v41  ;;  %v727_v48 = vadd.f32 %v726_v46, %v474_v42  ;;  %v685_v49 = vpop.f32.mrb[1].mxu0  ;;  %v728_v50 = vpop.f32.mrb[1].mxu1 }
 0x1e1   : > { %v686_v51 = vadd.f32 %v685_v49, %v470_v43  ;;  %v729_v52 = vadd.f32 %v728_v50, %v478_v44  ;;  %v687_v53 = vpop.f32.mrb[2].mxu0  ;;  %v730_v54 = vpop.f32.mrb[2].mxu1 }
 0x1e2   : > { %vm735_vm0 = vcmp.gt.f32.partialorder %v684_v47, 0.0  ;;  %v743_v55 = vmul.f32 0.01, %v684_v47  ;;  %vm737_vm1 = vcmp.gt.f32.partialorder %v727_v48, 0.0  ;;  %v745_v56 = vmul.f32 0.01, %v727_v48 }
 0x1e3   : > { %vm736_vm2 = vcmp.gt.f32.partialorder %v686_v51, 0.0  ;;  %v744_v57 = vmul.f32 0.01, %v686_v51  ;;  %vm738_vm3 = vcmp.gt.f32.partialorder %v729_v52, 0.0  ;;  %v746_v58 = vmul.f32 0.01, %v729_v52 }
 0x1e4   : > { %v751_v59 = vsel %vm735_vm0, %v684_v47, %v743_v55  ;;  %v753_v60 = vsel %vm737_vm1, %v727_v48, %v745_v56  ;;  %v688_v61 = vadd.f32 %v687_v53, %v466_v41  ;;  %v731_v62 = vadd.f32 %v730_v54, %v474_v42  ;;  %v689_v63 = vpop.f32.mrb[3].mxu0  ;;  %v732_v0 = vpop.f32.mrb[3].mxu1 }
 0x1e5   : > { %759 = vst [vmem:[#allocation2] sm:$0xff] %v751_v59  ;;  %761 = vst [vmem:[#allocation2 + $0x10] sm:$0xff] %v753_v60  ;;  %v752_v1 = vsel %vm736_vm2, %v686_v51, %v744_v57  ;;  %v754_v2 = vsel %vm738_vm3, %v729_v52, %v746_v58  ;;  %v690_v3 = vadd.f32 %v689_v63, %v470_v43 }
 0x1e6   : > { %v733_v4 = vadd.f32 %v732_v0, %v478_v44  ;;  %760 = vst [vmem:[#allocation2 + $0x8] sm:$0xff] %v752_v1  ;;  %762 = vst [vmem:[#allocation2 + $0x18] sm:$0xff] %v754_v2  ;;  %vm739_vm4 = vcmp.gt.f32.partialorder %v688_v61, 0.0  ;;  %v747_v5 = vmul.f32 0.01, %v688_v61  ;;  %vm741_vm5 = vcmp.gt.f32.partialorder %v731_v62, 0.0 }
 0x1e7   : > { %v749_v6 = vmul.f32 0.01, %v731_v62  ;;  %vm740_vm6 = vcmp.gt.f32.partialorder %v690_v3, 0.0  ;;  %v748_v7 = vmul.f32 0.01, %v690_v3 }
 0x1e8   : > { %vm742_vm7 = vcmp.gt.f32.partialorder %v733_v4, 0.0  ;;  %v750_v8 = vmul.f32 0.01, %v733_v4  ;;  %v755_v9 = vsel %vm739_vm4, %v688_v61, %v747_v5 }
 0x1e9   : > { %v757_v10 = vsel %vm741_vm5, %v731_v62, %v749_v6  ;;  %763 = vst [vmem:[#allocation2 + $0x20] sm:$0xff] %v755_v9  ;;  %v756_v11 = vsel %vm740_vm6, %v690_v3, %v748_v7 }
 0x1ea   : > { %765 = vst [vmem:[#allocation2 + $0x30] sm:$0xff] %v757_v10  ;;  %v758_v12 = vsel %vm742_vm7, %v733_v4, %v750_v8  ;;  %764 = vst [vmem:[#allocation2 + $0x28] sm:$0xff] %v756_v11 }
 0x1eb   : > { %766 = vst [vmem:[#allocation2 + $0x38] sm:$0xff] %v758_v12 }
 0x1ec PF: > { %v6586_v13 = vld [vmem:[%s8027_s3 + $0x4] ss:$16 sps:$4 sm:$0xff]   ;;  %v6588_v14 = vld [vmem:[%s8027_s3 + $0xc] ss:$16 sps:$4 sm:$0xff]   ;;  %v6590_v15 = vld [vmem:[%s8027_s3] ss:$16 sps:$4 sm:$0xff]  }
 0x1ed   : > { %1569 = vmatprep.subr.bf16.mxu0 %v6586_v13  ;;  %v6591_v16 = vld [vmem:[%s8027_s3 + $0x8] ss:$16 sps:$4 sm:$0xff]   ;;  %1655 = vmatprep.subr.bf16.mxu1 %v6588_v14  ;;  %v6592_v17 = vld [vmem:[%s8027_s3 + $0x24] ss:$16 sps:$4 sm:$0xff]   ;;  %v6594_v18 = vld [vmem:[%s8027_s3 + $0x2c] ss:$16 sps:$4 sm:$0xff]  }
 0x1ee   : > { %1570 = vmatpush1.bf16.msra.mxu0 %v6590_v15  ;;  %1656 = vmatpush1.bf16.msra.mxu1 %v6591_v16  ;;  %v6596_v19 = vld [vmem:[%s8027_s3 + $0x20] ss:$16 sps:$4 sm:$0xff]   ;;  %v6597_v20 = vld [vmem:[%s8027_s3 + $0x28] ss:$16 sps:$4 sm:$0xff]   ;;  %v6598_v21 = vld [vmem:[%s8027_s3 + $0x44] ss:$16 sps:$4 sm:$0xff]  }
 0x1ef   : > { %1571 = vmatprep.subr.bf16.mxu0 %v6592_v17  ;;  %1657 = vmatprep.subr.bf16.mxu1 %v6594_v18  ;;  %v6600_v22 = vld [vmem:[%s8027_s3 + $0x4c] ss:$16 sps:$4 sm:$0xff]   ;;  %v6602_v23 = vld [vmem:[%s8027_s3 + $0x40] ss:$16 sps:$4 sm:$0xff]   ;;  %v6603_v24 = vld [vmem:[%s8027_s3 + $0x48] ss:$16 sps:$4 sm:$0xff]  }
 0x1f0   : > { %v6604_v25 = vld [vmem:[%s8027_s3 + $0x64] ss:$16 sps:$4 sm:$0xff]   ;;  %v6606_v26 = vld [vmem:[%s8027_s3 + $0x6c] ss:$16 sps:$4 sm:$0xff]   ;;  %v6608_v27 = vld [vmem:[%s8027_s3 + $0x60] ss:$16 sps:$4 sm:$0xff]  }
 0x1f1   : > { %v6609_v28 = vld [vmem:[%s8027_s3 + $0x68] ss:$16 sps:$4 sm:$0xff]   ;;  %v6610_v29 = vld [vmem:[%s8027_s3 + $0x84] ss:$16 sps:$4 sm:$0xff]   ;;  %v6612_v30 = vld [vmem:[%s8027_s3 + $0x8c] ss:$16 sps:$4 sm:$0xff]  }
 0x1f2   : > { %1572 = vmatpush1.bf16.msra.mxu0 %v6596_v19  ;;  %1658 = vmatpush1.bf16.msra.mxu1 %v6597_v20  ;;  %v6614_v31 = vld [vmem:[%s8027_s3 + $0x80] ss:$16 sps:$4 sm:$0xff]   ;;  %v6615_v32 = vld [vmem:[%s8027_s3 + $0x88] ss:$16 sps:$4 sm:$0xff]   ;;  %v6616_v33 = vld [vmem:[%s8027_s3 + $0xa4] ss:$16 sps:$4 sm:$0xff]  }
 0x1f3   : > { %1573 = vmatprep.subr.bf16.mxu0 %v6598_v21  ;;  %1659 = vmatprep.subr.bf16.mxu1 %v6600_v22  ;;  %v6618_v34 = vld [vmem:[%s8027_s3 + $0xac] ss:$16 sps:$4 sm:$0xff]   ;;  %v6620_v35 = vld [vmem:[%s8027_s3 + $0xa0] ss:$16 sps:$4 sm:$0xff]   ;;  %v6621_v36 = vld [vmem:[%s8027_s3 + $0xa8] ss:$16 sps:$4 sm:$0xff]  }
 0x1f4   : > { %v6622_v37 = vld [vmem:[%s8027_s3 + $0xc4] ss:$16 sps:$4 sm:$0xff]   ;;  %v6624_v38 = vld [vmem:[%s8027_s3 + $0xcc] ss:$16 sps:$4 sm:$0xff]   ;;  %v6626_v39 = vld [vmem:[%s8027_s3 + $0xc0] ss:$16 sps:$4 sm:$0xff]  }
 0x1f5   : > { %v6627_v40 = vld [vmem:[%s8027_s3 + $0xc8] ss:$16 sps:$4 sm:$0xff]   ;;  %v6628_v41 = vld [vmem:[%s8027_s3 + $0xe4] ss:$16 sps:$4 sm:$0xff]   ;;  %v6630_v42 = vld [vmem:[%s8027_s3 + $0xec] ss:$16 sps:$4 sm:$0xff]  }
 0x1f6   : > { %1574 = vmatpush1.bf16.msra.mxu0 %v6602_v23  ;;  %1660 = vmatpush1.bf16.msra.mxu1 %v6603_v24  ;;  %v6632_v43 = vld [vmem:[%s8027_s3 + $0xe0] ss:$16 sps:$4 sm:$0xff]   ;;  %v6633_v44 = vld [vmem:[%s8027_s3 + $0xe8] ss:$16 sps:$4 sm:$0xff]   ;;  %v6634_v45 = vld [vmem:[%s8027_s3 + $0x104] ss:$16 sps:$4 sm:$0xff]  }
 0x1f7   : > { %1575 = vmatprep.subr.bf16.mxu0 %v6604_v25  ;;  %1661 = vmatprep.subr.bf16.mxu1 %v6606_v26  ;;  %v6636_v46 = vld [vmem:[%s8027_s3 + $0x10c] ss:$16 sps:$4 sm:$0xff]   ;;  %v6638_v47 = vld [vmem:[%s8027_s3 + $0x100] ss:$16 sps:$4 sm:$0xff]   ;;  %v6639_v48 = vld [vmem:[%s8027_s3 + $0x108] ss:$16 sps:$4 sm:$0xff]  }
 0x1f8   : > { %v6640_v49 = vld [vmem:[%s8027_s3 + $0x124] ss:$16 sps:$4 sm:$0xff]   ;;  %v6642_v50 = vld [vmem:[%s8027_s3 + $0x12c] ss:$16 sps:$4 sm:$0xff]   ;;  %v6644_v51 = vld [vmem:[%s8027_s3 + $0x120] ss:$16 sps:$4 sm:$0xff]  }
 0x1f9   : > { %v6645_v52 = vld [vmem:[%s8027_s3 + $0x128] ss:$16 sps:$4 sm:$0xff]   ;;  %v6646_v53 = vld [vmem:[%s8027_s3 + $0x144] ss:$16 sps:$4 sm:$0xff]   ;;  %v6648_v54 = vld [vmem:[%s8027_s3 + $0x14c] ss:$16 sps:$4 sm:$0xff]  }
 0x1fa   : > { %1576 = vmatpush1.bf16.msra.mxu0 %v6608_v27  ;;  %1662 = vmatpush1.bf16.msra.mxu1 %v6609_v28  ;;  %v6650_v55 = vld [vmem:[%s8027_s3 + $0x140] ss:$16 sps:$4 sm:$0xff]   ;;  %v6651_v56 = vld [vmem:[%s8027_s3 + $0x148] ss:$16 sps:$4 sm:$0xff]   ;;  %v6652_v57 = vld [vmem:[%s8027_s3 + $0x164] ss:$16 sps:$4 sm:$0xff]  }
 0x1fb   : > { %1577 = vmatprep.subr.bf16.mxu0 %v6610_v29  ;;  %1663 = vmatprep.subr.bf16.mxu1 %v6612_v30  ;;  %v6654_v58 = vld [vmem:[%s8027_s3 + $0x16c] ss:$16 sps:$4 sm:$0xff]   ;;  %v6656_v61 = vld [vmem:[%s8027_s3 + $0x160] ss:$16 sps:$4 sm:$0xff]   ;;  %v6657_v62 = vld [vmem:[%s8027_s3 + $0x168] ss:$16 sps:$4 sm:$0xff]  }
 0x1fc   : > { %v768_v59 = vld [vmem:[#allocation2 + $0x8] sm:$0xff]  ;;  %v6658_v0 = vld [vmem:[%s8027_s3 + $0x184] ss:$16 sps:$4 sm:$0xff]   ;;  %v6663_v3 = vld [vmem:[%s8027_s3 + $0x188] ss:$16 sps:$4 sm:$0xff]   ;;  %p6262_p7 = scmp.ne.s32.totalorder %s7670_s27, 1 }
 0x1fd   : > { %v772_v60 = vld [vmem:[#allocation2 + $0x28] sm:$0xff]  ;;  %v6664_v4 = vld [vmem:[%s8027_s3 + $0x1a4] ss:$16 sps:$4 sm:$0xff]   ;;  %v6669_v7 = vld [vmem:[%s8027_s3 + $0x1a8] ss:$16 sps:$4 sm:$0xff]  }
 0x1fe   : > { %1578 = vmatpush1.bf16.msra.mxu0 %v6614_v31  ;;  %1664 = vmatpush1.bf16.msra.mxu1 %v6615_v32  ;;  %v776_v63 = vpack.c.bf16 %v772_v60, %v768_v59  ;;  %v6660_v1 = vld [vmem:[%s8027_s3 + $0x18c] ss:$16 sps:$4 sm:$0xff]   ;;  %v6662_v2 = vld [vmem:[%s8027_s3 + $0x180] ss:$16 sps:$4 sm:$0xff]   ;;  %v6670_v8 = vld [vmem:[%s8027_s3 + $0x1c4] ss:$16 sps:$4 sm:$0xff]  }
 0x1ff   : > { %1579 = vmatprep.subr.bf16.mxu0 %v6616_v33  ;;  %1665 = vmatprep.subr.bf16.mxu1 %v6618_v34  ;;  %v6666_v5 = vld [vmem:[%s8027_s3 + $0x1ac] ss:$16 sps:$4 sm:$0xff]   ;;  %v6668_v6 = vld [vmem:[%s8027_s3 + $0x1a0] ss:$16 sps:$4 sm:$0xff]   ;;  %v6675_v11 = vld [vmem:[%s8027_s3 + $0x1c8] ss:$16 sps:$4 sm:$0xff]  }
 0x200   : > { %1601 = vmatprep.mubr.bf16.mxu0 %v776_v63  ;;  %1687 = vmatprep.mubr.bf16.mxu1 %v776_v63  ;;  %v6672_v9 = vld [vmem:[%s8027_s3 + $0x1cc] ss:$16 sps:$4 sm:$0xff]   ;;  %v6674_v10 = vld [vmem:[%s8027_s3 + $0x1c0] ss:$16 sps:$4 sm:$0xff]   ;;  %v6676_v12 = vld [vmem:[%s8027_s3 + $0x1e4] ss:$16 sps:$4 sm:$0xff]  }
 0x201   : > { %v6678_v13 = vld [vmem:[%s8027_s3 + $0x1ec] ss:$16 sps:$4 sm:$0xff]   ;;  %v6680_v14 = vld [vmem:[%s8027_s3 + $0x1e0] ss:$16 sps:$4 sm:$0xff]   ;;  %v6681_v15 = vld [vmem:[%s8027_s3 + $0x1e8] ss:$16 sps:$4 sm:$0xff]  }
 0x202   : > { %1580 = vmatpush1.bf16.msra.mxu0 %v6620_v35  ;;  %1666 = vmatpush1.bf16.msra.mxu1 %v6621_v36  ;;  %v6684_v16 = vld [vmem:[%s8027_s3 + $0x204] ss:$16 sps:$4 sm:$0xff]   ;;  %v6687_v19 = vld [vmem:[%s8027_s3 + $0x20c] ss:$16 sps:$4 sm:$0xff]   ;;  %v6682_v20 = vld [vmem:[%s8027_s3 + $0x200] ss:$16 sps:$4 sm:$0xff]  }
 0x203   : > { %1581 = vmatprep.subr.bf16.mxu0 %v6622_v37  ;;  %1667 = vmatprep.subr.bf16.mxu1 %v6624_v38  ;;  %v767_v17 = vld [vmem:[#allocation2] sm:$0xff]  ;;  %v6693_v24 = vld [vmem:[%s8027_s3 + $0x22c] ss:$16 sps:$4 sm:$0xff]   ;;  %v6688_v25 = vld [vmem:[%s8027_s3 + $0x220] ss:$16 sps:$4 sm:$0xff]  }
 0x204   : > { %v771_v18 = vld [vmem:[#allocation2 + $0x20] sm:$0xff]  ;;  %v6699_v28 = vld [vmem:[%s8027_s3 + $0x24c] ss:$16 sps:$4 sm:$0xff]   ;;  %v6694_v29 = vld [vmem:[%s8027_s3 + $0x240] ss:$16 sps:$4 sm:$0xff]  }
 0x205   : > { %v6685_v21 = vld [vmem:[%s8027_s3 + $0x208] ss:$16 sps:$4 sm:$0xff]   ;;  %v775_v22 = vpack.c.bf16 %v771_v18, %v767_v17  ;;  %v6690_v23 = vld [vmem:[%s8027_s3 + $0x224] ss:$16 sps:$4 sm:$0xff]   ;;  %v6705_v32 = vld [vmem:[%s8027_s3 + $0x26c] ss:$16 sps:$4 sm:$0xff]  }
 0x206   : > { %1582 = vmatpush1.bf16.msra.mxu0 %v6626_v39  ;;  %1668 = vmatpush1.bf16.msra.mxu1 %v6627_v40  ;;  %v6691_v26 = vld [vmem:[%s8027_s3 + $0x228] ss:$16 sps:$4 sm:$0xff]   ;;  %v6696_v27 = vld [vmem:[%s8027_s3 + $0x244] ss:$16 sps:$4 sm:$0xff]   ;;  %v6700_v33 = vld [vmem:[%s8027_s3 + $0x260] ss:$16 sps:$4 sm:$0xff]  }
 0x207   : > { %1583 = vmatprep.subr.bf16.mxu0 %v6628_v41  ;;  %1669 = vmatprep.subr.bf16.mxu1 %v6630_v42  ;;  %v6697_v30 = vld [vmem:[%s8027_s3 + $0x248] ss:$16 sps:$4 sm:$0xff]   ;;  %v6702_v31 = vld [vmem:[%s8027_s3 + $0x264] ss:$16 sps:$4 sm:$0xff]   ;;  %v6711_v36 = vld [vmem:[%s8027_s3 + $0x28c] ss:$16 sps:$4 sm:$0xff]  }
 0x208   : > { %v6703_v34 = vld [vmem:[%s8027_s3 + $0x268] ss:$16 sps:$4 sm:$0xff]   ;;  %v6708_v35 = vld [vmem:[%s8027_s3 + $0x284] ss:$16 sps:$4 sm:$0xff]   ;;  %v6706_v37 = vld [vmem:[%s8027_s3 + $0x280] ss:$16 sps:$4 sm:$0xff]  }
 0x209   : > { %v6709_v38 = vld [vmem:[%s8027_s3 + $0x288] ss:$16 sps:$4 sm:$0xff]   ;;  %v6714_v39 = vld [vmem:[%s8027_s3 + $0x2a4] ss:$16 sps:$4 sm:$0xff]   ;;  %v6717_v40 = vld [vmem:[%s8027_s3 + $0x2ac] ss:$16 sps:$4 sm:$0xff]  }
 0x20a   : > { %1584 = vmatpush1.bf16.msra.mxu0 %v6632_v43  ;;  %1670 = vmatpush1.bf16.msra.mxu1 %v6633_v44  ;;  %v6712_v41 = vld [vmem:[%s8027_s3 + $0x2a0] ss:$16 sps:$4 sm:$0xff]   ;;  %v6715_v42 = vld [vmem:[%s8027_s3 + $0x2a8] ss:$16 sps:$4 sm:$0xff]   ;;  %v6720_v43 = vld [vmem:[%s8027_s3 + $0x2c4] ss:$16 sps:$4 sm:$0xff]  }
 0x20b   : > { %1585 = vmatprep.subr.bf16.mxu0 %v6634_v45  ;;  %1671 = vmatprep.subr.bf16.mxu1 %v6636_v46  ;;  %v6723_v44 = vld [vmem:[%s8027_s3 + $0x2cc] ss:$16 sps:$4 sm:$0xff]   ;;  %v6718_v46 = vld [vmem:[%s8027_s3 + $0x2c0] ss:$16 sps:$4 sm:$0xff]   ;;  %v6769_v17 = vld [vmem:[%s8027_s3 + $0x3c8] ss:$16 sps:$4 sm:$0xff]  }
 0x20c   : > { %v770_v45 = vld [vmem:[#allocation2 + $0x18] sm:$0xff]  ;;  %v6774_v18 = vld [vmem:[%s8027_s3 + $0x3e4] ss:$16 sps:$4 sm:$0xff]  }
 0x20d   : > { %v6741_v59 = vld [vmem:[%s8027_s3 + $0x32c] ss:$16 sps:$4 sm:$0xff]   ;;  %v6736_v60 = vld [vmem:[%s8027_s3 + $0x320] ss:$16 sps:$4 sm:$0xff]  }
 0x20e   : > { %1586 = vmatpush1.bf16.msra.mxu0 %v6638_v47  ;;  %1672 = vmatpush1.bf16.msra.mxu1 %v6639_v48  ;;  %v6721_v47 = vld [vmem:[%s8027_s3 + $0x2c8] ss:$16 sps:$4 sm:$0xff]   ;;  %v774_v48 = vld [vmem:[#allocation2 + $0x38] sm:$0xff] }
 0x20f   : > { %1587 = vmatprep.subr.bf16.mxu0 %v6640_v49  ;;  %1673 = vmatprep.subr.bf16.mxu1 %v6642_v50  ;;  %v6726_v49 = vld [vmem:[%s8027_s3 + $0x2e4] ss:$16 sps:$4 sm:$0xff]   ;;  %v778_v50 = vpack.c.bf16 %v774_v48, %v770_v45  ;;  %v6747_v63 = vld [vmem:[%s8027_s3 + $0x34c] ss:$16 sps:$4 sm:$0xff]   ;;  %v6811_v48 = vld [vmem:[%s8027_s3 + $0x4a8] ss:$16 sps:$4 sm:$0xff]  }
 0x210   : > { %v6810_v45 = vld [vmem:[%s8027_s3 + $0x4a4] ss:$16 sps:$4 sm:$0xff]  }
 0x212   : > { %1588 = vmatpush1.bf16.msra.mxu0 %v6644_v51  ;;  %1674 = vmatpush1.bf16.msra.mxu1 %v6645_v52  ;;  %v6729_v51 = vld [vmem:[%s8027_s3 + $0x2ec] ss:$16 sps:$4 sm:$0xff]   ;;  %v6724_v52 = vld [vmem:[%s8027_s3 + $0x2e0] ss:$16 sps:$4 sm:$0xff]  }
 0x213   : > { %1589 = vmatprep.subr.bf16.mxu0 %v6646_v53  ;;  %1675 = vmatprep.subr.bf16.mxu1 %v6648_v54  ;;  %v6727_v53 = vld [vmem:[%s8027_s3 + $0x2e8] ss:$16 sps:$4 sm:$0xff]   ;;  %v6732_v54 = vld [vmem:[%s8027_s3 + $0x304] ss:$16 sps:$4 sm:$0xff]  }
 0x216   : > { %1590 = vmatpush1.bf16.msra.mxu0 %v6650_v55  ;;  %1676 = vmatpush1.bf16.msra.mxu1 %v6651_v56  ;;  %v6735_v55 = vld [vmem:[%s8027_s3 + $0x30c] ss:$16 sps:$4 sm:$0xff]   ;;  %v6730_v56 = vld [vmem:[%s8027_s3 + $0x300] ss:$16 sps:$4 sm:$0xff]  }
 0x217   : > { %1591 = vmatprep.subr.bf16.mxu0 %v6652_v57  ;;  %1677 = vmatprep.subr.bf16.mxu1 %v6654_v58  ;;  %v6733_v57 = vld [vmem:[%s8027_s3 + $0x308] ss:$16 sps:$4 sm:$0xff]   ;;  %v6738_v58 = vld [vmem:[%s8027_s3 + $0x324] ss:$16 sps:$4 sm:$0xff]  }
 0x21a   : > { %1592 = vmatpush1.bf16.msra.mxu0 %v6656_v61  ;;  %1678 = vmatpush1.bf16.msra.mxu1 %v6657_v62  ;;  %v6739_v61 = vld [vmem:[%s8027_s3 + $0x328] ss:$16 sps:$4 sm:$0xff]   ;;  %v6744_v62 = vld [vmem:[%s8027_s3 + $0x344] ss:$16 sps:$4 sm:$0xff]  }
 0x21b   : > { %1593 = vmatprep.subr.bf16.mxu0 %v6658_v0  ;;  %1679 = vmatprep.subr.bf16.mxu1 %v6660_v1  ;;  %v6742_v0 = vld [vmem:[%s8027_s3 + $0x340] ss:$16 sps:$4 sm:$0xff]   ;;  %v6745_v1 = vld [vmem:[%s8027_s3 + $0x348] ss:$16 sps:$4 sm:$0xff]  }
 0x21e   : > { %1594 = vmatpush1.bf16.msra.mxu0 %v6662_v2  ;;  %1680 = vmatpush1.bf16.msra.mxu1 %v6663_v3  ;;  %v6750_v2 = vld [vmem:[%s8027_s3 + $0x364] ss:$16 sps:$4 sm:$0xff]   ;;  %v6753_v3 = vld [vmem:[%s8027_s3 + $0x36c] ss:$16 sps:$4 sm:$0xff]  }
 0x21f   : > { %1595 = vmatprep.subr.bf16.mxu0 %v6664_v4  ;;  %1681 = vmatprep.subr.bf16.mxu1 %v6666_v5  ;;  %v6748_v4 = vld [vmem:[%s8027_s3 + $0x360] ss:$16 sps:$4 sm:$0xff]   ;;  %v6751_v5 = vld [vmem:[%s8027_s3 + $0x368] ss:$16 sps:$4 sm:$0xff]  }
 0x222   : > { %1596 = vmatpush1.bf16.msra.mxu0 %v6668_v6  ;;  %1682 = vmatpush1.bf16.msra.mxu1 %v6669_v7  ;;  %v6756_v6 = vld [vmem:[%s8027_s3 + $0x384] ss:$16 sps:$4 sm:$0xff]   ;;  %v6759_v7 = vld [vmem:[%s8027_s3 + $0x38c] ss:$16 sps:$4 sm:$0xff]  }
 0x223   : > { %1597 = vmatprep.subr.bf16.mxu0 %v6670_v8  ;;  %1683 = vmatprep.subr.bf16.mxu1 %v6672_v9  ;;  %v6754_v8 = vld [vmem:[%s8027_s3 + $0x380] ss:$16 sps:$4 sm:$0xff]   ;;  %v6757_v9 = vld [vmem:[%s8027_s3 + $0x388] ss:$16 sps:$4 sm:$0xff]  }
 0x226   : > { %1598 = vmatpush1.bf16.msra.mxu0 %v6674_v10  ;;  %1684 = vmatpush1.bf16.msra.mxu1 %v6675_v11  ;;  %v6762_v10 = vld [vmem:[%s8027_s3 + $0x3a4] ss:$16 sps:$4 sm:$0xff]   ;;  %v6765_v11 = vld [vmem:[%s8027_s3 + $0x3ac] ss:$16 sps:$4 sm:$0xff]  }
 0x227   : > { %1599 = vmatprep.subr.bf16.mxu0 %v6676_v12  ;;  %1685 = vmatprep.subr.bf16.mxu1 %v6678_v13  ;;  %v6760_v12 = vld [vmem:[%s8027_s3 + $0x3a0] ss:$16 sps:$4 sm:$0xff]   ;;  %v6763_v13 = vld [vmem:[%s8027_s3 + $0x3a8] ss:$16 sps:$4 sm:$0xff]  }
 0x22a   : > { %1600 = vmatpush1.bf16.msra.mxu0 %v6680_v14  ;;  %1686 = vmatpush1.bf16.msra.mxu1 %v6681_v15  ;;  %v6768_v14 = vld [vmem:[%s8027_s3 + $0x3c4] ss:$16 sps:$4 sm:$0xff]   ;;  %v6771_v15 = vld [vmem:[%s8027_s3 + $0x3cc] ss:$16 sps:$4 sm:$0xff]  }
 0x22b   : > { %1612 = vmatprep.subr.bf16.mxu0 %v6684_v16  ;;  %1698 = vmatprep.subr.bf16.mxu1 %v6687_v19  ;;  %v6766_v16 = vld [vmem:[%s8027_s3 + $0x3c0] ss:$16 sps:$4 sm:$0xff]   ;;  %v6777_v19 = vld [vmem:[%s8027_s3 + $0x3ec] ss:$16 sps:$4 sm:$0xff]  }
 0x22d   : > { %1602 = vmatmul.mubr.bf16.vlgmr.msra.gmra.mrb[0].mxu0 %v775_v22  ;;  %1688 = vmatmul.mubr.bf16.vlgmr.msra.gmra.mrb[0].mxu1 %v775_v22  ;;  %v769_v22 = vld [vmem:[#allocation2 + $0x10] sm:$0xff] }
 0x22e   : > { %1613 = vmatpush1.bf16.msra.mxu0 %v6682_v20  ;;  %1699 = vmatpush1.bf16.msra.mxu1 %v6685_v21  ;;  %v6772_v20 = vld [vmem:[%s8027_s3 + $0x3e0] ss:$16 sps:$4 sm:$0xff]   ;;  %v6775_v21 = vld [vmem:[%s8027_s3 + $0x3e8] ss:$16 sps:$4 sm:$0xff]  }
 0x22f   : > { %1614 = vmatprep.subr.bf16.mxu0 %v6690_v23  ;;  %1700 = vmatprep.subr.bf16.mxu1 %v6693_v24  ;;  %v773_v23 = vld [vmem:[#allocation2 + $0x30] sm:$0xff] }
 0x230   : > { %1644 = vmatprep.mubr.bf16.mxu0 %v778_v50  ;;  %1730 = vmatprep.mubr.bf16.mxu1 %v778_v50  ;;  %v6780_v24 = vld [vmem:[%s8027_s3 + $0x404] ss:$16 sps:$4 sm:$0xff]   ;;  %v6819_v50 = vld [vmem:[%s8027_s3 + $0x4cc] ss:$16 sps:$4 sm:$0xff]  }
 0x232   : > { %1615 = vmatpush1.bf16.msra.mxu0 %v6688_v25  ;;  %1701 = vmatpush1.bf16.msra.mxu1 %v6691_v26  ;;  %v6783_v25 = vld [vmem:[%s8027_s3 + $0x40c] ss:$16 sps:$4 sm:$0xff]   ;;  %v6778_v26 = vld [vmem:[%s8027_s3 + $0x400] ss:$16 sps:$4 sm:$0xff]  }
 0x233   : > { %1616 = vmatprep.subr.bf16.mxu0 %v6696_v27  ;;  %1702 = vmatprep.subr.bf16.mxu1 %v6699_v28  ;;  %v6781_v27 = vld [vmem:[%s8027_s3 + $0x408] ss:$16 sps:$4 sm:$0xff]   ;;  %v777_v28 = vpack.c.bf16 %v773_v23, %v769_v22  ;;  %v6873_v22 = vld [vmem:[%s8027_s3 + $0x5ec] ss:$16 sps:$4 sm:$0xff]   ;;  %v6868_v23 = vld [vmem:[%s8027_s3 + $0x5e0] ss:$16 sps:$4 sm:$0xff]  }
 0x236   : > { %1617 = vmatpush1.bf16.msra.mxu0 %v6694_v29  ;;  %1703 = vmatpush1.bf16.msra.mxu1 %v6697_v30  ;;  %v6786_v29 = vld [vmem:[%s8027_s3 + $0x424] ss:$16 sps:$4 sm:$0xff]   ;;  %v6789_v30 = vld [vmem:[%s8027_s3 + $0x42c] ss:$16 sps:$4 sm:$0xff]  }
 0x237   : > { %1618 = vmatprep.subr.bf16.mxu0 %v6702_v31  ;;  %1704 = vmatprep.subr.bf16.mxu1 %v6705_v32  ;;  %v6784_v31 = vld [vmem:[%s8027_s3 + $0x420] ss:$16 sps:$4 sm:$0xff]   ;;  %v6787_v32 = vld [vmem:[%s8027_s3 + $0x428] ss:$16 sps:$4 sm:$0xff]  }
 0x23a   : > { %1619 = vmatpush1.bf16.msra.mxu0 %v6700_v33  ;;  %1705 = vmatpush1.bf16.msra.mxu1 %v6703_v34  ;;  %v6792_v33 = vld [vmem:[%s8027_s3 + $0x444] ss:$16 sps:$4 sm:$0xff]   ;;  %v6795_v34 = vld [vmem:[%s8027_s3 + $0x44c] ss:$16 sps:$4 sm:$0xff]  }
 0x23b   : > { %1620 = vmatprep.subr.bf16.mxu0 %v6708_v35  ;;  %1706 = vmatprep.subr.bf16.mxu1 %v6711_v36  ;;  %v6790_v35 = vld [vmem:[%s8027_s3 + $0x440] ss:$16 sps:$4 sm:$0xff]   ;;  %v6793_v36 = vld [vmem:[%s8027_s3 + $0x448] ss:$16 sps:$4 sm:$0xff]  }
 0x23e   : > { %1621 = vmatpush1.bf16.msra.mxu0 %v6706_v37  ;;  %1707 = vmatpush1.bf16.msra.mxu1 %v6709_v38  ;;  %v6798_v37 = vld [vmem:[%s8027_s3 + $0x464] ss:$16 sps:$4 sm:$0xff]   ;;  %v6801_v38 = vld [vmem:[%s8027_s3 + $0x46c] ss:$16 sps:$4 sm:$0xff]  }
 0x23f   : > { %1622 = vmatprep.subr.bf16.mxu0 %v6714_v39  ;;  %1708 = vmatprep.subr.bf16.mxu1 %v6717_v40  ;;  %v6796_v39 = vld [vmem:[%s8027_s3 + $0x460] ss:$16 sps:$4 sm:$0xff]   ;;  %v6799_v40 = vld [vmem:[%s8027_s3 + $0x468] ss:$16 sps:$4 sm:$0xff]  }
 0x242   : > { %1623 = vmatpush1.bf16.msra.mxu0 %v6712_v41  ;;  %1709 = vmatpush1.bf16.msra.mxu1 %v6715_v42  ;;  %v6804_v41 = vld [vmem:[%s8027_s3 + $0x484] ss:$16 sps:$4 sm:$0xff]   ;;  %v6807_v42 = vld [vmem:[%s8027_s3 + $0x48c] ss:$16 sps:$4 sm:$0xff]  }
 0x243   : > { %1624 = vmatprep.subr.bf16.mxu0 %v6720_v43  ;;  %1710 = vmatprep.subr.bf16.mxu1 %v6723_v44  ;;  %v6802_v43 = vld [vmem:[%s8027_s3 + $0x480] ss:$16 sps:$4 sm:$0xff]   ;;  %v6805_v44 = vld [vmem:[%s8027_s3 + $0x488] ss:$16 sps:$4 sm:$0xff]  }
 0x246   : > { %1625 = vmatpush1.bf16.msra.mxu0 %v6718_v46  ;;  %1711 = vmatpush1.bf16.msra.mxu1 %v6721_v47  ;;  %v6813_v46 = vld [vmem:[%s8027_s3 + $0x4ac] ss:$16 sps:$4 sm:$0xff]   ;;  %v6808_v47 = vld [vmem:[%s8027_s3 + $0x4a0] ss:$16 sps:$4 sm:$0xff]  }
 0x247   : > { %1626 = vmatprep.subr.bf16.mxu0 %v6726_v49  ;;  %1712 = vmatprep.subr.bf16.mxu1 %v6729_v51  ;;  %v6816_v49 = vld [vmem:[%s8027_s3 + $0x4c4] ss:$16 sps:$4 sm:$0xff]   ;;  %v6814_v51 = vld [vmem:[%s8027_s3 + $0x4c0] ss:$16 sps:$4 sm:$0xff]  }
 0x24a   : > { %1627 = vmatpush1.bf16.msra.mxu0 %v6724_v52  ;;  %1713 = vmatpush1.bf16.msra.mxu1 %v6727_v53  ;;  %v6817_v52 = vld [vmem:[%s8027_s3 + $0x4c8] ss:$16 sps:$4 sm:$0xff]   ;;  %v6822_v53 = vld [vmem:[%s8027_s3 + $0x4e4] ss:$16 sps:$4 sm:$0xff]  }
 0x24b   : > { %1628 = vmatprep.subr.bf16.mxu0 %v6732_v54  ;;  %1714 = vmatprep.subr.bf16.mxu1 %v6735_v55  ;;  %v6825_v54 = vld [vmem:[%s8027_s3 + $0x4ec] ss:$16 sps:$4 sm:$0xff]   ;;  %v6820_v55 = vld [vmem:[%s8027_s3 + $0x4e0] ss:$16 sps:$4 sm:$0xff]  }
 0x24e   : > { %1629 = vmatpush1.bf16.msra.mxu0 %v6730_v56  ;;  %1715 = vmatpush1.bf16.msra.mxu1 %v6733_v57  ;;  %v6823_v56 = vld [vmem:[%s8027_s3 + $0x4e8] ss:$16 sps:$4 sm:$0xff]   ;;  %v6828_v57 = vld [vmem:[%s8027_s3 + $0x504] ss:$16 sps:$4 sm:$0xff]  }
 0x24f   : > { %1630 = vmatprep.subr.bf16.mxu0 %v6738_v58  ;;  %1716 = vmatprep.subr.bf16.mxu1 %v6741_v59  ;;  %v6831_v58 = vld [vmem:[%s8027_s3 + $0x50c] ss:$16 sps:$4 sm:$0xff]   ;;  %v6826_v59 = vld [vmem:[%s8027_s3 + $0x500] ss:$16 sps:$4 sm:$0xff]  }
 0x252   : > { %1631 = vmatpush1.bf16.msra.mxu0 %v6736_v60  ;;  %1717 = vmatpush1.bf16.msra.mxu1 %v6739_v61  ;;  %v6829_v60 = vld [vmem:[%s8027_s3 + $0x508] ss:$16 sps:$4 sm:$0xff]   ;;  %v6834_v61 = vld [vmem:[%s8027_s3 + $0x524] ss:$16 sps:$4 sm:$0xff]  }
 0x253   : > { %1632 = vmatprep.subr.bf16.mxu0 %v6744_v62  ;;  %1718 = vmatprep.subr.bf16.mxu1 %v6747_v63  ;;  %v6837_v62 = vld [vmem:[%s8027_s3 + $0x52c] ss:$16 sps:$4 sm:$0xff]   ;;  %v6832_v63 = vld [vmem:[%s8027_s3 + $0x520] ss:$16 sps:$4 sm:$0xff]  }
 0x256   : > { %1633 = vmatpush1.bf16.msra.mxu0 %v6742_v0  ;;  %1719 = vmatpush1.bf16.msra.mxu1 %v6745_v1  ;;  %v6835_v0 = vld [vmem:[%s8027_s3 + $0x528] ss:$16 sps:$4 sm:$0xff]   ;;  %v6840_v1 = vld [vmem:[%s8027_s3 + $0x544] ss:$16 sps:$4 sm:$0xff]  }
 0x257   : > { %1634 = vmatprep.subr.bf16.mxu0 %v6750_v2  ;;  %1720 = vmatprep.subr.bf16.mxu1 %v6753_v3  ;;  %v6843_v2 = vld [vmem:[%s8027_s3 + $0x54c] ss:$16 sps:$4 sm:$0xff]   ;;  %v6838_v3 = vld [vmem:[%s8027_s3 + $0x540] ss:$16 sps:$4 sm:$0xff]  }
 0x25a   : > { %1635 = vmatpush1.bf16.msra.mxu0 %v6748_v4  ;;  %1721 = vmatpush1.bf16.msra.mxu1 %v6751_v5  ;;  %v6841_v4 = vld [vmem:[%s8027_s3 + $0x548] ss:$16 sps:$4 sm:$0xff]   ;;  %v6846_v5 = vld [vmem:[%s8027_s3 + $0x564] ss:$16 sps:$4 sm:$0xff]  }
 0x25b   : > { %1636 = vmatprep.subr.bf16.mxu0 %v6756_v6  ;;  %1722 = vmatprep.subr.bf16.mxu1 %v6759_v7  ;;  %v6849_v6 = vld [vmem:[%s8027_s3 + $0x56c] ss:$16 sps:$4 sm:$0xff]   ;;  %v6844_v7 = vld [vmem:[%s8027_s3 + $0x560] ss:$16 sps:$4 sm:$0xff]  }
 0x25e   : > { %1637 = vmatpush1.bf16.msra.mxu0 %v6754_v8  ;;  %1723 = vmatpush1.bf16.msra.mxu1 %v6757_v9  ;;  %v6847_v8 = vld [vmem:[%s8027_s3 + $0x568] ss:$16 sps:$4 sm:$0xff]   ;;  %v6852_v9 = vld [vmem:[%s8027_s3 + $0x584] ss:$16 sps:$4 sm:$0xff]  }
 0x25f   : > { %1638 = vmatprep.subr.bf16.mxu0 %v6762_v10  ;;  %1724 = vmatprep.subr.bf16.mxu1 %v6765_v11  ;;  %v6855_v10 = vld [vmem:[%s8027_s3 + $0x58c] ss:$16 sps:$4 sm:$0xff]   ;;  %v6850_v11 = vld [vmem:[%s8027_s3 + $0x580] ss:$16 sps:$4 sm:$0xff]  }
 0x262   : > { %1639 = vmatpush1.bf16.msra.mxu0 %v6760_v12  ;;  %1725 = vmatpush1.bf16.msra.mxu1 %v6763_v13  ;;  %v6853_v12 = vld [vmem:[%s8027_s3 + $0x588] ss:$16 sps:$4 sm:$0xff]   ;;  %v6858_v13 = vld [vmem:[%s8027_s3 + $0x5a4] ss:$16 sps:$4 sm:$0xff]  }
 0x263   : > { %1640 = vmatprep.subr.bf16.mxu0 %v6768_v14  ;;  %1726 = vmatprep.subr.bf16.mxu1 %v6771_v15  ;;  %v6861_v14 = vld [vmem:[%s8027_s3 + $0x5ac] ss:$16 sps:$4 sm:$0xff]   ;;  %v6856_v15 = vld [vmem:[%s8027_s3 + $0x5a0] ss:$16 sps:$4 sm:$0xff]  }
 0x266   : > { %1641 = vmatpush1.bf16.msra.mxu0 %v6766_v16  ;;  %1727 = vmatpush1.bf16.msra.mxu1 %v6769_v17  ;;  %v6859_v16 = vld [vmem:[%s8027_s3 + $0x5a8] ss:$16 sps:$4 sm:$0xff]   ;;  %v6864_v17 = vld [vmem:[%s8027_s3 + $0x5c4] ss:$16 sps:$4 sm:$0xff]  }
 0x267   : > { %1642 = vmatprep.subr.bf16.mxu0 %v6774_v18  ;;  %1728 = vmatprep.subr.bf16.mxu1 %v6777_v19  ;;  %v6867_v18 = vld [vmem:[%s8027_s3 + $0x5cc] ss:$16 sps:$4 sm:$0xff]   ;;  %v6862_v19 = vld [vmem:[%s8027_s3 + $0x5c0] ss:$16 sps:$4 sm:$0xff]  }
 0x26a   : > { %1643 = vmatpush1.bf16.msra.mxu0 %v6772_v20  ;;  %1729 = vmatpush1.bf16.msra.mxu1 %v6775_v21  ;;  %v6865_v20 = vld [vmem:[%s8027_s3 + $0x5c8] ss:$16 sps:$4 sm:$0xff]   ;;  %v6870_v21 = vld [vmem:[%s8027_s3 + $0x5e4] ss:$16 sps:$4 sm:$0xff]  }
 0x26b   : > { %2577 = vmatprep.subr.bf16.mxu0 %v6780_v24  ;;  %2663 = vmatprep.subr.bf16.mxu1 %v6783_v25  ;;  %v6871_v24 = vld [vmem:[%s8027_s3 + $0x5e8] ss:$16 sps:$4 sm:$0xff]   ;;  %v6876_v25 = vld [vmem:[%s8027_s3 + $0x604] ss:$16 sps:$4 sm:$0xff]  }
 0x26d   : > { %1645 = vmatmul.mubr.bf16.vlgmr.msra.gmra.mrb[0].mxu0 %v777_v28  ;;  %1731 = vmatmul.mubr.bf16.vlgmr.msra.gmra.mrb[0].mxu1 %v777_v28 }
 0x26e   : > { %2578 = vmatpush1.bf16.msra.mxu0 %v6778_v26  ;;  %2664 = vmatpush1.bf16.msra.mxu1 %v6781_v27  ;;  %v6879_v26 = vld [vmem:[%s8027_s3 + $0x60c] ss:$16 sps:$4 sm:$0xff]   ;;  %v909_v27 = vlaneseq }
 0x26f   : > { %2579 = vmatprep.subr.bf16.mxu0 %v6786_v29  ;;  %2665 = vmatprep.subr.bf16.mxu1 %v6789_v30 }
 0x270   : > { %v910_v28 = vshrl.u32 %v909_v27, 7  ;;  %v6901_v27 = vld [vmem:[%s8027_s3 + $0x688] ss:$16 sps:$4 sm:$0xff]  }
 0x272   : > { %2580 = vmatpush1.bf16.msra.mxu0 %v6784_v31  ;;  %2666 = vmatpush1.bf16.msra.mxu1 %v6787_v32  ;;  %v8234_v29 = vsub.s32 0, %v910_v28  ;;  %v8236_v30 = vsub.s32 2, %v910_v28  ;;  %v907_v31 = vld [vmem:[%s8033_s24] sm:$0xf]  ;;  %v8239_v32 = vsub.s32 1, %v910_v28 }
 0x273   : > { %2581 = vmatprep.subr.bf16.mxu0 %v6792_v33  ;;  %2667 = vmatprep.subr.bf16.mxu1 %v6795_v34  ;;  %v8241_v33 = vsub.s32 3, %v910_v28  ;;  %v6906_v28 = vld [vmem:[%s8027_s3 + $0x6a4] ss:$16 sps:$4 sm:$0xff]  }
 0x274   : > { %v912_v34 = vrot.slane %v907_v31, %v8234_v29 }
 0x276   : > { %2582 = vmatpush1.bf16.msra.mxu0 %v6790_v35  ;;  %2668 = vmatpush1.bf16.msra.mxu1 %v6793_v36  ;;  %v920_v35 = vrot.slane %v907_v31, %v8236_v30  ;;  %v916_v36 = vrot.slane %v907_v31, %v8239_v32 }
 0x277   : > { %2583 = vmatprep.subr.bf16.mxu0 %v6798_v37  ;;  %2669 = vmatprep.subr.bf16.mxu1 %v6801_v38  ;;  %v924_v37 = vrot.slane %v907_v31, %v8241_v33  ;;  %v6909_v31 = vld [vmem:[%s8027_s3 + $0x6ac] ss:$16 sps:$4 sm:$0xff]  }
 0x27a   : > { %2584 = vmatpush1.bf16.msra.mxu0 %v6796_v39  ;;  %2670 = vmatpush1.bf16.msra.mxu1 %v6799_v40 }
 0x27b   : > { %2585 = vmatprep.subr.bf16.mxu0 %v6804_v41  ;;  %2671 = vmatprep.subr.bf16.mxu1 %v6807_v42 }
 0x27e   : > { %2586 = vmatpush1.bf16.msra.mxu0 %v6802_v43  ;;  %2672 = vmatpush1.bf16.msra.mxu1 %v6805_v44 }
 0x27f   : > { %2587 = vmatprep.subr.bf16.mxu0 %v6810_v45  ;;  %2673 = vmatprep.subr.bf16.mxu1 %v6813_v46 }
 0x282   : > { %2588 = vmatpush1.bf16.msra.mxu0 %v6808_v47  ;;  %2674 = vmatpush1.bf16.msra.mxu1 %v6811_v48 }
 0x283   : > { %2589 = vmatprep.subr.bf16.mxu0 %v6816_v49  ;;  %2675 = vmatprep.subr.bf16.mxu1 %v6819_v50 }
 0x286   : > { %2590 = vmatpush1.bf16.msra.mxu0 %v6814_v51  ;;  %2676 = vmatpush1.bf16.msra.mxu1 %v6817_v52 }
 0x287   : > { %2591 = vmatprep.subr.bf16.mxu0 %v6822_v53  ;;  %2677 = vmatprep.subr.bf16.mxu1 %v6825_v54 }
 0x28a   : > { %2592 = vmatpush1.bf16.msra.mxu0 %v6820_v55  ;;  %2678 = vmatpush1.bf16.msra.mxu1 %v6823_v56 }
 0x28b   : > { %2593 = vmatprep.subr.bf16.mxu0 %v6828_v57  ;;  %2679 = vmatprep.subr.bf16.mxu1 %v6831_v58 }
 0x28e   : > { %2594 = vmatpush1.bf16.msra.mxu0 %v6826_v59  ;;  %2680 = vmatpush1.bf16.msra.mxu1 %v6829_v60 }
 0x28f   : > { %2595 = vmatprep.subr.bf16.mxu0 %v6834_v61  ;;  %2681 = vmatprep.subr.bf16.mxu1 %v6837_v62 }
 0x292   : > { %2596 = vmatpush1.bf16.msra.mxu0 %v6832_v63  ;;  %2682 = vmatpush1.bf16.msra.mxu1 %v6835_v0 }
 0x293   : > { %2597 = vmatprep.subr.bf16.mxu0 %v6840_v1  ;;  %2683 = vmatprep.subr.bf16.mxu1 %v6843_v2 }
 0x296   : > { %2598 = vmatpush1.bf16.msra.mxu0 %v6838_v3  ;;  %2684 = vmatpush1.bf16.msra.mxu1 %v6841_v4 }
 0x297   : > { %2599 = vmatprep.subr.bf16.mxu0 %v6846_v5  ;;  %2685 = vmatprep.subr.bf16.mxu1 %v6849_v6 }
 0x29a   : > { %2600 = vmatpush1.bf16.msra.mxu0 %v6844_v7  ;;  %2686 = vmatpush1.bf16.msra.mxu1 %v6847_v8 }
 0x29b   : > { %2601 = vmatprep.subr.bf16.mxu0 %v6852_v9  ;;  %2687 = vmatprep.subr.bf16.mxu1 %v6855_v10  ;;  %v6874_v9 = vld [vmem:[%s8027_s3 + $0x600] ss:$16 sps:$4 sm:$0xff]   ;;  %v6877_v10 = vld [vmem:[%s8027_s3 + $0x608] ss:$16 sps:$4 sm:$0xff]  }
 0x29e   : > { %2602 = vmatpush1.bf16.msra.mxu0 %v6850_v11  ;;  %2688 = vmatpush1.bf16.msra.mxu1 %v6853_v12  ;;  %v6882_v12 = vld [vmem:[%s8027_s3 + $0x624] ss:$16 sps:$4 sm:$0xff]  }
 0x29f   : > { %2603 = vmatprep.subr.bf16.mxu0 %v6858_v13  ;;  %2689 = vmatprep.subr.bf16.mxu1 %v6861_v14  ;;  %v6885_v13 = vld [vmem:[%s8027_s3 + $0x62c] ss:$16 sps:$4 sm:$0xff]   ;;  %v6880_v14 = vld [vmem:[%s8027_s3 + $0x620] ss:$16 sps:$4 sm:$0xff]  }
 0x2a2   : > { %2604 = vmatpush1.bf16.msra.mxu0 %v6856_v15  ;;  %2690 = vmatpush1.bf16.msra.mxu1 %v6859_v16  ;;  %v6883_v15 = vld [vmem:[%s8027_s3 + $0x628] ss:$16 sps:$4 sm:$0xff]   ;;  %v6888_v16 = vld [vmem:[%s8027_s3 + $0x644] ss:$16 sps:$4 sm:$0xff]  }
 0x2a3   : > { %2605 = vmatprep.subr.bf16.mxu0 %v6864_v17  ;;  %2691 = vmatprep.subr.bf16.mxu1 %v6867_v18  ;;  %v6891_v17 = vld [vmem:[%s8027_s3 + $0x64c] ss:$16 sps:$4 sm:$0xff]   ;;  %v6886_v18 = vld [vmem:[%s8027_s3 + $0x640] ss:$16 sps:$4 sm:$0xff]  }
 0x2a6   : > { %2606 = vmatpush1.bf16.msra.mxu0 %v6862_v19  ;;  %2692 = vmatpush1.bf16.msra.mxu1 %v6865_v20  ;;  %v6889_v19 = vld [vmem:[%s8027_s3 + $0x648] ss:$16 sps:$4 sm:$0xff]   ;;  %v6894_v20 = vld [vmem:[%s8027_s3 + $0x664] ss:$16 sps:$4 sm:$0xff]  }
 0x2a7   : > { %2607 = vmatprep.subr.bf16.mxu0 %v6870_v21  ;;  %2693 = vmatprep.subr.bf16.mxu1 %v6873_v22  ;;  %v6897_v21 = vld [vmem:[%s8027_s3 + $0x66c] ss:$16 sps:$4 sm:$0xff]   ;;  %v6892_v22 = vld [vmem:[%s8027_s3 + $0x660] ss:$16 sps:$4 sm:$0xff]  }
 0x2aa   : > { %2608 = vmatpush1.bf16.msra.mxu0 %v6868_v23  ;;  %2694 = vmatpush1.bf16.msra.mxu1 %v6871_v24  ;;  %v6895_v23 = vld [vmem:[%s8027_s3 + $0x668] ss:$16 sps:$4 sm:$0xff]   ;;  %v6900_v24 = vld [vmem:[%s8027_s3 + $0x684] ss:$16 sps:$4 sm:$0xff]  }
 0x2ab   : > { %2620 = vmatprep.subr.bf16.mxu0 %v6876_v25  ;;  %2706 = vmatprep.subr.bf16.mxu1 %v6879_v26  ;;  %v6903_v25 = vld [vmem:[%s8027_s3 + $0x68c] ss:$16 sps:$4 sm:$0xff]   ;;  %v6898_v26 = vld [vmem:[%s8027_s3 + $0x680] ss:$16 sps:$4 sm:$0xff]  }
 0x340   : > { %v1646_v38 = vpop.f32.mrb[0].mxu0  ;;  %v1732_v39 = vpop.f32.mrb[0].mxu1 }
 0x341   : > { %v6348_v40 = vadd.f32 %v1646_v38, %v912_v34  ;;  %v6352_v41 = vadd.f32 %v1732_v39, %v920_v35  ;;  %v1648_v42 = vpop.f32.mrb[1].mxu0  ;;  %v1734_v43 = vpop.f32.mrb[1].mxu1  ;;  %v6910_v38 = vld [vmem:[%s8027_s3 + $0x6c0] ss:$16 sps:$4 sm:$0xff]   ;;  %v6913_v39 = vld [vmem:[%s8027_s3 + $0x6c8] ss:$16 sps:$4 sm:$0xff]  }
 0x342   : > { %v6349_v44 = vadd.f32 %v1648_v42, %v916_v36  ;;  %v6353_v45 = vadd.f32 %v1734_v43, %v924_v37  ;;  %v1650_v46 = vpop.f32.mrb[2].mxu0  ;;  %v1736_v47 = vpop.f32.mrb[2].mxu1  ;;  %v6916_v42 = vld [vmem:[%s8027_s3 + $0x6e0] ss:$16 sps:$4 sm:$0xff]   ;;  %v6919_v43 = vld [vmem:[%s8027_s3 + $0x6e8] ss:$16 sps:$4 sm:$0xff]  }
 0x343   : > { %vm1741_vm8 = vcmp.gt.f32.partialorder %v6348_v40, 0.0  ;;  %v1749_v48 = vmul.f32 0.01, %v6348_v40  ;;  %vm1743_vm9 = vcmp.gt.f32.partialorder %v6352_v41, 0.0  ;;  %v1751_v49 = vmul.f32 0.01, %v6352_v41 }
 0x344   : > { %vm1742_vm10 = vcmp.gt.f32.partialorder %v6349_v44, 0.0  ;;  %v1750_v50 = vmul.f32 0.01, %v6349_v44  ;;  %vm1744_vm11 = vcmp.gt.f32.partialorder %v6353_v45, 0.0  ;;  %v1752_v51 = vmul.f32 0.01, %v6353_v45 }
 0x345   : > { %v6350_v52 = vadd.f32 %v1650_v46, %v912_v34  ;;  %v6354_v53 = vadd.f32 %v1736_v47, %v920_v35  ;;  %v1652_v54 = vpop.f32.mrb[3].mxu0  ;;  %v1738_v55 = vpop.f32.mrb[3].mxu1  ;;  %v1757_v56 = vsel %vm1741_vm8, %v6348_v40, %v1749_v48  ;;  %v1759_v57 = vsel %vm1743_vm9, %v6352_v41, %v1751_v49  ;;  %v6904_v34 = vld [vmem:[%s8027_s3 + $0x6a0] ss:$16 sps:$4 sm:$0xff]   ;;  %v6907_v35 = vld [vmem:[%s8027_s3 + $0x6a8] ss:$16 sps:$4 sm:$0xff]  }
 0x346   : > { %v6351_v58 = vadd.f32 %v1652_v54, %v916_v36  ;;  %v6355_v59 = vadd.f32 %v1738_v55, %v924_v37  ;;  %v1758_v0 = vsel %vm1742_vm10, %v6349_v44, %v1750_v50  ;;  %v1760_v1 = vsel %vm1744_vm11, %v6353_v45, %v1752_v51  ;;  %v6912_v36 = vld [vmem:[%s8027_s3 + $0x6c4] ss:$16 sps:$4 sm:$0xff]   ;;  %v6915_v37 = vld [vmem:[%s8027_s3 + $0x6cc] ss:$16 sps:$4 sm:$0xff]   ;;  %v6922_v46 = vld [vmem:[%s8027_s3 + $0x700] ss:$16 sps:$4 sm:$0xff]  }
 0x347   : > { %vm1745_vm12 = vcmp.gt.f32.partialorder %v6350_v52, 0.0  ;;  %v1753_v60 = vmul.f32 0.01, %v6350_v52  ;;  %vm1747_vm13 = vcmp.gt.f32.partialorder %v6354_v53, 0.0  ;;  %v1755_v61 = vmul.f32 0.01, %v6354_v53 }
 0x348   : > { %vm1746_vm14 = vcmp.gt.f32.partialorder %v6351_v58, 0.0  ;;  %v1754_v62 = vmul.f32 0.01, %v6351_v58  ;;  %vm1748_vm15 = vcmp.gt.f32.partialorder %v6355_v59, 0.0  ;;  %v1756_v63 = vmul.f32 0.01, %v6355_v59 }
 0x349   : > { %v1761_v2 = vsel %vm1745_vm12, %v6350_v52, %v1753_v60  ;;  %v1763_v3 = vsel %vm1747_vm13, %v6354_v53, %v1755_v61  ;;  %v6918_v40 = vld [vmem:[%s8027_s3 + $0x6e4] ss:$16 sps:$4 sm:$0xff]   ;;  %v6921_v41 = vld [vmem:[%s8027_s3 + $0x6ec] ss:$16 sps:$4 sm:$0xff]   ;;  %v6925_v47 = vld [vmem:[%s8027_s3 + $0x708] ss:$16 sps:$4 sm:$0xff]  }
 0x34a   : > { %v1762_v4 = vsel %vm1746_vm14, %v6351_v58, %v1754_v62  ;;  %v1764_v5 = vsel %vm1748_vm15, %v6355_v59, %v1756_v63  ;;  %v1781_v6 = vpack.c.bf16 %v1761_v2, %v1757_v56  ;;  %v8249_v7 = vpack.c.bf16 %v1763_v3, %v1759_v57  ;;  %v6924_v44 = vld [vmem:[%s8027_s3 + $0x704] ss:$16 sps:$4 sm:$0xff]   ;;  %v6927_v45 = vld [vmem:[%s8027_s3 + $0x70c] ss:$16 sps:$4 sm:$0xff]   ;;  %v6928_v50 = vld [vmem:[%s8027_s3 + $0x720] ss:$16 sps:$4 sm:$0xff]  }
 0x34b   : > { %v1782_v8 = vpack.c.bf16 %v1762_v4, %v1758_v0  ;;  %v1784_v11 = vpack.c.bf16 %v1764_v5, %v1760_v1  ;;  %v6930_v48 = vld [vmem:[%s8027_s3 + $0x724] ss:$16 sps:$4 sm:$0xff]   ;;  %v6933_v49 = vld [vmem:[%s8027_s3 + $0x72c] ss:$16 sps:$4 sm:$0xff]   ;;  %v6931_v51 = vld [vmem:[%s8027_s3 + $0x728] ss:$16 sps:$4 sm:$0xff]  }
 0x34c   : > { %v6936_v52 = vld [vmem:[%s8027_s3 + $0x744] ss:$16 sps:$4 sm:$0xff]   ;;  %v6939_v53 = vld [vmem:[%s8027_s3 + $0x74c] ss:$16 sps:$4 sm:$0xff]   ;;  %v6934_v54 = vld [vmem:[%s8027_s3 + $0x740] ss:$16 sps:$4 sm:$0xff]  }
 0x34d   : > { %2609 = vmatprep.mubr.bf16.mxu0 %v1782_v8  ;;  %2695 = vmatprep.mubr.bf16.mxu1 %v1782_v8  ;;  %v6937_v55 = vld [vmem:[%s8027_s3 + $0x748] ss:$16 sps:$4 sm:$0xff]   ;;  %v6942_v56 = vld [vmem:[%s8027_s3 + $0x764] ss:$16 sps:$4 sm:$0xff]   ;;  %v6945_v57 = vld [vmem:[%s8027_s3 + $0x76c] ss:$16 sps:$4 sm:$0xff]  }
 0x34e   : > { %2610 = vmatmul.mubr.bf16.vlgmr.msra.gmra.mrb[4].mxu0 %v1781_v6  ;;  %2696 = vmatmul.mubr.bf16.vlgmr.msra.gmra.mrb[4].mxu1 %v1781_v6  ;;  %v6940_v58 = vld [vmem:[%s8027_s3 + $0x760] ss:$16 sps:$4 sm:$0xff]   ;;  %v6943_v59 = vld [vmem:[%s8027_s3 + $0x768] ss:$16 sps:$4 sm:$0xff]   ;;  %v6948_v60 = vld [vmem:[%s8027_s3 + $0x784] ss:$16 sps:$4 sm:$0xff]  }
 0x34f   : > { %2621 = vmatpush1.bf16.msra.mxu0 %v6874_v9  ;;  %2707 = vmatpush1.bf16.msra.mxu1 %v6877_v10  ;;  %v6951_v61 = vld [vmem:[%s8027_s3 + $0x78c] ss:$16 sps:$4 sm:$0xff]   ;;  %v6946_v62 = vld [vmem:[%s8027_s3 + $0x780] ss:$16 sps:$4 sm:$0xff]   ;;  %v6949_v63 = vld [vmem:[%s8027_s3 + $0x788] ss:$16 sps:$4 sm:$0xff]  }
 0x350   : > { %2652 = vmatprep.mubr.bf16.mxu0 %v1784_v11  ;;  %2738 = vmatprep.mubr.bf16.mxu1 %v1784_v11  ;;  %v6954_v0 = vld [vmem:[%s8027_s3 + $0x7a4] ss:$16 sps:$4 sm:$0xff]   ;;  %v6957_v1 = vld [vmem:[%s8027_s3 + $0x7ac] ss:$16 sps:$4 sm:$0xff]   ;;  %v6952_v2 = vld [vmem:[%s8027_s3 + $0x7a0] ss:$16 sps:$4 sm:$0xff]  }
 0x351   : > { %2622 = vmatprep.subr.bf16.mxu0 %v6882_v12  ;;  %2708 = vmatprep.subr.bf16.mxu1 %v6885_v13  ;;  %v6955_v3 = vld [vmem:[%s8027_s3 + $0x7a8] ss:$16 sps:$4 sm:$0xff]   ;;  %v6960_v4 = vld [vmem:[%s8027_s3 + $0x7c4] ss:$16 sps:$4 sm:$0xff]   ;;  %v6963_v5 = vld [vmem:[%s8027_s3 + $0x7cc] ss:$16 sps:$4 sm:$0xff]  }
 0x352   : > { %v6958_v6 = vld [vmem:[%s8027_s3 + $0x7c0] ss:$16 sps:$4 sm:$0xff]   ;;  %v6961_v8 = vld [vmem:[%s8027_s3 + $0x7c8] ss:$16 sps:$4 sm:$0xff]   ;;  %v6966_v9 = vld [vmem:[%s8027_s3 + $0x7e4] ss:$16 sps:$4 sm:$0xff]  }
 0x353   : > { %2623 = vmatpush1.bf16.msra.mxu0 %v6880_v14  ;;  %2709 = vmatpush1.bf16.msra.mxu1 %v6883_v15  ;;  %v6969_v10 = vld [vmem:[%s8027_s3 + $0x7ec] ss:$16 sps:$4 sm:$0xff]   ;;  %v6964_v11 = vld [vmem:[%s8027_s3 + $0x7e0] ss:$16 sps:$4 sm:$0xff]   ;;  %v6967_v12 = vld [vmem:[%s8027_s3 + $0x7e8] ss:$16 sps:$4 sm:$0xff]  }
 0x354   : > { %2624 = vmatprep.subr.bf16.mxu0 %v6888_v16  ;;  %2710 = vmatprep.subr.bf16.mxu1 %v6891_v17  ;;  %v6972_v13 = vld [vmem:[%s8027_s3 + $0x804] ss:$16 sps:$4 sm:$0xff]   ;;  %v6975_v14 = vld [vmem:[%s8027_s3 + $0x80c] ss:$16 sps:$4 sm:$0xff]   ;;  %v6970_v15 = vld [vmem:[%s8027_s3 + $0x800] ss:$16 sps:$4 sm:$0xff]  }
 0x355   : > { %v6973_v16 = vld [vmem:[%s8027_s3 + $0x808] ss:$16 sps:$4 sm:$0xff]   ;;  %v6978_v17 = vld [vmem:[%s8027_s3 + $0x824] ss:$16 sps:$4 sm:$0xff]  }
 0x357   : > { %2625 = vmatpush1.bf16.msra.mxu0 %v6886_v18  ;;  %2711 = vmatpush1.bf16.msra.mxu1 %v6889_v19  ;;  %v6981_v18 = vld [vmem:[%s8027_s3 + $0x82c] ss:$16 sps:$4 sm:$0xff]   ;;  %v6976_v19 = vld [vmem:[%s8027_s3 + $0x820] ss:$16 sps:$4 sm:$0xff]  }
 0x358   : > { %2626 = vmatprep.subr.bf16.mxu0 %v6894_v20  ;;  %2712 = vmatprep.subr.bf16.mxu1 %v6897_v21  ;;  %v6979_v20 = vld [vmem:[%s8027_s3 + $0x828] ss:$16 sps:$4 sm:$0xff]   ;;  %v6984_v21 = vld [vmem:[%s8027_s3 + $0x844] ss:$16 sps:$4 sm:$0xff]  }
 0x35b   : > { %2627 = vmatpush1.bf16.msra.mxu0 %v6892_v22  ;;  %2713 = vmatpush1.bf16.msra.mxu1 %v6895_v23  ;;  %v6987_v22 = vld [vmem:[%s8027_s3 + $0x84c] ss:$16 sps:$4 sm:$0xff]   ;;  %v6982_v23 = vld [vmem:[%s8027_s3 + $0x840] ss:$16 sps:$4 sm:$0xff]  }
 0x35c   : > { %2628 = vmatprep.subr.bf16.mxu0 %v6900_v24  ;;  %2714 = vmatprep.subr.bf16.mxu1 %v6903_v25  ;;  %v6985_v24 = vld [vmem:[%s8027_s3 + $0x848] ss:$16 sps:$4 sm:$0xff]   ;;  %v6993_v25 = vld [vmem:[%s8027_s3 + $0x86c] ss:$16 sps:$4 sm:$0xff]  }
 0x35f   : > { %2629 = vmatpush1.bf16.msra.mxu0 %v6898_v26  ;;  %2715 = vmatpush1.bf16.msra.mxu1 %v6901_v27  ;;  %v6988_v26 = vld [vmem:[%s8027_s3 + $0x860] ss:$16 sps:$4 sm:$0xff]   ;;  %v6991_v27 = vld [vmem:[%s8027_s3 + $0x868] ss:$16 sps:$4 sm:$0xff]  }
 0x360   : > { %2630 = vmatprep.subr.bf16.mxu0 %v6906_v28  ;;  %2716 = vmatprep.subr.bf16.mxu1 %v6909_v31  ;;  %v6996_v28 = vld [vmem:[%s8027_s3 + $0x884] ss:$16 sps:$4 sm:$0xff]   ;;  %v6999_v31 = vld [vmem:[%s8027_s3 + $0x88c] ss:$16 sps:$4 sm:$0xff]  }
 0x363   : > { %2631 = vmatpush1.bf16.msra.mxu0 %v6904_v34  ;;  %2717 = vmatpush1.bf16.msra.mxu1 %v6907_v35  ;;  %v6994_v34 = vld [vmem:[%s8027_s3 + $0x880] ss:$16 sps:$4 sm:$0xff]   ;;  %v6997_v35 = vld [vmem:[%s8027_s3 + $0x888] ss:$16 sps:$4 sm:$0xff]  }
 0x364   : > { %2632 = vmatprep.subr.bf16.mxu0 %v6912_v36  ;;  %2718 = vmatprep.subr.bf16.mxu1 %v6915_v37  ;;  %v7002_v36 = vld [vmem:[%s8027_s3 + $0x8a4] ss:$16 sps:$4 sm:$0xff]   ;;  %v7005_v37 = vld [vmem:[%s8027_s3 + $0x8ac] ss:$16 sps:$4 sm:$0xff]  }
 0x367   : > { %2633 = vmatpush1.bf16.msra.mxu0 %v6910_v38  ;;  %2719 = vmatpush1.bf16.msra.mxu1 %v6913_v39  ;;  %v7000_v38 = vld [vmem:[%s8027_s3 + $0x8a0] ss:$16 sps:$4 sm:$0xff]   ;;  %v7003_v39 = vld [vmem:[%s8027_s3 + $0x8a8] ss:$16 sps:$4 sm:$0xff]  }
 0x368   : > { %2634 = vmatprep.subr.bf16.mxu0 %v6918_v40  ;;  %2720 = vmatprep.subr.bf16.mxu1 %v6921_v41  ;;  %v7008_v40 = vld [vmem:[%s8027_s3 + $0x8c4] ss:$16 sps:$4 sm:$0xff]   ;;  %v7011_v41 = vld [vmem:[%s8027_s3 + $0x8cc] ss:$16 sps:$4 sm:$0xff]  }
 0x36b   : > { %2635 = vmatpush1.bf16.msra.mxu0 %v6916_v42  ;;  %2721 = vmatpush1.bf16.msra.mxu1 %v6919_v43  ;;  %v7006_v42 = vld [vmem:[%s8027_s3 + $0x8c0] ss:$16 sps:$4 sm:$0xff]   ;;  %v7009_v43 = vld [vmem:[%s8027_s3 + $0x8c8] ss:$16 sps:$4 sm:$0xff]  }
 0x36c   : > { %2636 = vmatprep.subr.bf16.mxu0 %v6924_v44  ;;  %2722 = vmatprep.subr.bf16.mxu1 %v6927_v45  ;;  %v7014_v44 = vld [vmem:[%s8027_s3 + $0x8e4] ss:$16 sps:$4 sm:$0xff]   ;;  %v7017_v45 = vld [vmem:[%s8027_s3 + $0x8ec] ss:$16 sps:$4 sm:$0xff]  }
 0x36f   : > { %2637 = vmatpush1.bf16.msra.mxu0 %v6922_v46  ;;  %2723 = vmatpush1.bf16.msra.mxu1 %v6925_v47  ;;  %v7012_v46 = vld [vmem:[%s8027_s3 + $0x8e0] ss:$16 sps:$4 sm:$0xff]   ;;  %v7015_v47 = vld [vmem:[%s8027_s3 + $0x8e8] ss:$16 sps:$4 sm:$0xff]  }
 0x370   : > { %2638 = vmatprep.subr.bf16.mxu0 %v6930_v48  ;;  %2724 = vmatprep.subr.bf16.mxu1 %v6933_v49  ;;  %v7020_v48 = vld [vmem:[%s8027_s3 + $0x904] ss:$16 sps:$4 sm:$0xff]   ;;  %v7023_v49 = vld [vmem:[%s8027_s3 + $0x90c] ss:$16 sps:$4 sm:$0xff]  }
 0x373   : > { %2639 = vmatpush1.bf16.msra.mxu0 %v6928_v50  ;;  %2725 = vmatpush1.bf16.msra.mxu1 %v6931_v51  ;;  %v7018_v50 = vld [vmem:[%s8027_s3 + $0x900] ss:$16 sps:$4 sm:$0xff]   ;;  %v7021_v51 = vld [vmem:[%s8027_s3 + $0x908] ss:$16 sps:$4 sm:$0xff]  }
 0x374   : > { %2640 = vmatprep.subr.bf16.mxu0 %v6936_v52  ;;  %2726 = vmatprep.subr.bf16.mxu1 %v6939_v53  ;;  %v7026_v52 = vld [vmem:[%s8027_s3 + $0x924] ss:$16 sps:$4 sm:$0xff]   ;;  %v7029_v53 = vld [vmem:[%s8027_s3 + $0x92c] ss:$16 sps:$4 sm:$0xff]  }
 0x377   : > { %2641 = vmatpush1.bf16.msra.mxu0 %v6934_v54  ;;  %2727 = vmatpush1.bf16.msra.mxu1 %v6937_v55  ;;  %v7024_v54 = vld [vmem:[%s8027_s3 + $0x920] ss:$16 sps:$4 sm:$0xff]   ;;  %v7027_v55 = vld [vmem:[%s8027_s3 + $0x928] ss:$16 sps:$4 sm:$0xff]  }
 0x378   : > { %2642 = vmatprep.subr.bf16.mxu0 %v6942_v56  ;;  %2728 = vmatprep.subr.bf16.mxu1 %v6945_v57  ;;  %v7032_v56 = vld [vmem:[%s8027_s3 + $0x944] ss:$16 sps:$4 sm:$0xff]   ;;  %v7035_v57 = vld [vmem:[%s8027_s3 + $0x94c] ss:$16 sps:$4 sm:$0xff]  }
 0x37b   : > { %2643 = vmatpush1.bf16.msra.mxu0 %v6940_v58  ;;  %2729 = vmatpush1.bf16.msra.mxu1 %v6943_v59  ;;  %v7030_v58 = vld [vmem:[%s8027_s3 + $0x940] ss:$16 sps:$4 sm:$0xff]   ;;  %v7033_v59 = vld [vmem:[%s8027_s3 + $0x948] ss:$16 sps:$4 sm:$0xff]  }
 0x37c   : > { %2644 = vmatprep.subr.bf16.mxu0 %v6948_v60  ;;  %2730 = vmatprep.subr.bf16.mxu1 %v6951_v61  ;;  %v7038_v60 = vld [vmem:[%s8027_s3 + $0x964] ss:$16 sps:$4 sm:$0xff]   ;;  %v7041_v61 = vld [vmem:[%s8027_s3 + $0x96c] ss:$16 sps:$4 sm:$0xff]  }
 0x37f   : > { %2645 = vmatpush1.bf16.msra.mxu0 %v6946_v62  ;;  %2731 = vmatpush1.bf16.msra.mxu1 %v6949_v63  ;;  %v7036_v62 = vld [vmem:[%s8027_s3 + $0x960] ss:$16 sps:$4 sm:$0xff]   ;;  %v7039_v63 = vld [vmem:[%s8027_s3 + $0x968] ss:$16 sps:$4 sm:$0xff]  }
 0x380   : > { %2646 = vmatprep.subr.bf16.mxu0 %v6954_v0  ;;  %2732 = vmatprep.subr.bf16.mxu1 %v6957_v1  ;;  %v7044_v0 = vld [vmem:[%s8027_s3 + $0x984] ss:$16 sps:$4 sm:$0xff]   ;;  %v7047_v1 = vld [vmem:[%s8027_s3 + $0x98c] ss:$16 sps:$4 sm:$0xff]  }
 0x383   : > { %2647 = vmatpush1.bf16.msra.mxu0 %v6952_v2  ;;  %2733 = vmatpush1.bf16.msra.mxu1 %v6955_v3  ;;  %v7042_v2 = vld [vmem:[%s8027_s3 + $0x980] ss:$16 sps:$4 sm:$0xff]   ;;  %v7045_v3 = vld [vmem:[%s8027_s3 + $0x988] ss:$16 sps:$4 sm:$0xff]  }
 0x384   : > { %2648 = vmatprep.subr.bf16.mxu0 %v6960_v4  ;;  %2734 = vmatprep.subr.bf16.mxu1 %v6963_v5  ;;  %v7050_v4 = vld [vmem:[%s8027_s3 + $0x9a4] ss:$16 sps:$4 sm:$0xff]   ;;  %v7053_v5 = vld [vmem:[%s8027_s3 + $0x9ac] ss:$16 sps:$4 sm:$0xff]  }
 0x387   : > { %2649 = vmatpush1.bf16.msra.mxu0 %v6958_v6  ;;  %2735 = vmatpush1.bf16.msra.mxu1 %v6961_v8  ;;  %v7048_v6 = vld [vmem:[%s8027_s3 + $0x9a0] ss:$16 sps:$4 sm:$0xff]   ;;  %v7051_v8 = vld [vmem:[%s8027_s3 + $0x9a8] ss:$16 sps:$4 sm:$0xff]  }
 0x388   : > { %2650 = vmatprep.subr.bf16.mxu0 %v6966_v9  ;;  %2736 = vmatprep.subr.bf16.mxu1 %v6969_v10  ;;  %v7056_v9 = vld [vmem:[%s8027_s3 + $0x9c4] ss:$16 sps:$4 sm:$0xff]   ;;  %v7059_v10 = vld [vmem:[%s8027_s3 + $0x9cc] ss:$16 sps:$4 sm:$0xff]  }
 0x38b   : > { %2651 = vmatpush1.bf16.msra.mxu0 %v6964_v11  ;;  %2737 = vmatpush1.bf16.msra.mxu1 %v6967_v12  ;;  %v7054_v11 = vld [vmem:[%s8027_s3 + $0x9c0] ss:$16 sps:$4 sm:$0xff]   ;;  %v7057_v12 = vld [vmem:[%s8027_s3 + $0x9c8] ss:$16 sps:$4 sm:$0xff]  }
 0x38c   : > { %3585 = vmatprep.subr.bf16.mxu0 %v6972_v13  ;;  %3671 = vmatprep.subr.bf16.mxu1 %v6975_v14  ;;  %v7062_v13 = vld [vmem:[%s8027_s3 + $0x9e4] ss:$16 sps:$4 sm:$0xff]   ;;  %v7065_v14 = vld [vmem:[%s8027_s3 + $0x9ec] ss:$16 sps:$4 sm:$0xff]  }
 0x38e   : > { %2653 = vmatmul.mubr.bf16.vlgmr.msra.gmra.mrb[4].mxu0 %v8249_v7  ;;  %2739 = vmatmul.mubr.bf16.vlgmr.msra.gmra.mrb[4].mxu1 %v8249_v7  ;;  %v6990_v7 = vld [vmem:[%s8027_s3 + $0x864] ss:$16 sps:$4 sm:$0xff]  }
 0x38f   : > { %3586 = vmatpush1.bf16.msra.mxu0 %v6970_v15  ;;  %3672 = vmatpush1.bf16.msra.mxu1 %v6973_v16  ;;  %v7060_v15 = vld [vmem:[%s8027_s3 + $0x9e0] ss:$16 sps:$4 sm:$0xff]   ;;  %v7063_v16 = vld [vmem:[%s8027_s3 + $0x9e8] ss:$16 sps:$4 sm:$0xff]  }
 0x390   : > { %3587 = vmatprep.subr.bf16.mxu0 %v6978_v17  ;;  %3673 = vmatprep.subr.bf16.mxu1 %v6981_v18  ;;  %v7068_v17 = vld [vmem:[%s8027_s3 + $0xa04] ss:$16 sps:$4 sm:$0xff]   ;;  %v7071_v18 = vld [vmem:[%s8027_s3 + $0xa0c] ss:$16 sps:$4 sm:$0xff]  }
 0x393   : > { %3588 = vmatpush1.bf16.msra.mxu0 %v6976_v19  ;;  %3674 = vmatpush1.bf16.msra.mxu1 %v6979_v20  ;;  %v5619_v19 = vld [vmem:[%s8033_s24 + $0x4] sm:$0xf] }
 0x394   : > { %3589 = vmatprep.subr.bf16.mxu0 %v6984_v21  ;;  %3675 = vmatprep.subr.bf16.mxu1 %v6987_v22  ;;  %v1920_v20 = vrot.slane %v5619_v19, %v8234_v29  ;;  %v1928_v21 = vrot.slane %v5619_v19, %v8236_v30  ;;  %v1924_v22 = vrot.slane %v5619_v19, %v8239_v32 }
 0x397   : > { %3590 = vmatpush1.bf16.msra.mxu0 %v6982_v23  ;;  %3676 = vmatpush1.bf16.msra.mxu1 %v6985_v24  ;;  %v1932_v23 = vrot.slane %v5619_v19, %v8241_v33  ;;  %v7101_v19 = vld [vmem:[%s8027_s3 + $0xaac] ss:$16 sps:$4 sm:$0xff]  }
 0x398   : > { %3591 = vmatprep.subr.bf16.mxu0 %v6990_v7  ;;  %3677 = vmatprep.subr.bf16.mxu1 %v6993_v25 }
 0x39b   : > { %3592 = vmatpush1.bf16.msra.mxu0 %v6988_v26  ;;  %3678 = vmatpush1.bf16.msra.mxu1 %v6991_v27 }
 0x39c   : > { %3593 = vmatprep.subr.bf16.mxu0 %v6996_v28  ;;  %3679 = vmatprep.subr.bf16.mxu1 %v6999_v31 }
 0x39f   : > { %3594 = vmatpush1.bf16.msra.mxu0 %v6994_v34  ;;  %3680 = vmatpush1.bf16.msra.mxu1 %v6997_v35 }
 0x3a0   : > { %3595 = vmatprep.subr.bf16.mxu0 %v7002_v36  ;;  %3681 = vmatprep.subr.bf16.mxu1 %v7005_v37 }
 0x3a3   : > { %3596 = vmatpush1.bf16.msra.mxu0 %v7000_v38  ;;  %3682 = vmatpush1.bf16.msra.mxu1 %v7003_v39 }
 0x3a4   : > { %3597 = vmatprep.subr.bf16.mxu0 %v7008_v40  ;;  %3683 = vmatprep.subr.bf16.mxu1 %v7011_v41 }
 0x3a7   : > { %3598 = vmatpush1.bf16.msra.mxu0 %v7006_v42  ;;  %3684 = vmatpush1.bf16.msra.mxu1 %v7009_v43 }
 0x3a8   : > { %3599 = vmatprep.subr.bf16.mxu0 %v7014_v44  ;;  %3685 = vmatprep.subr.bf16.mxu1 %v7017_v45 }
 0x3ab   : > { %3600 = vmatpush1.bf16.msra.mxu0 %v7012_v46  ;;  %3686 = vmatpush1.bf16.msra.mxu1 %v7015_v47 }
 0x3ac   : > { %3601 = vmatprep.subr.bf16.mxu0 %v7020_v48  ;;  %3687 = vmatprep.subr.bf16.mxu1 %v7023_v49 }
 0x3af   : > { %3602 = vmatpush1.bf16.msra.mxu0 %v7018_v50  ;;  %3688 = vmatpush1.bf16.msra.mxu1 %v7021_v51 }
 0x3b0   : > { %3603 = vmatprep.subr.bf16.mxu0 %v7026_v52  ;;  %3689 = vmatprep.subr.bf16.mxu1 %v7029_v53 }
 0x3b3   : > { %3604 = vmatpush1.bf16.msra.mxu0 %v7024_v54  ;;  %3690 = vmatpush1.bf16.msra.mxu1 %v7027_v55 }
 0x3b4   : > { %3605 = vmatprep.subr.bf16.mxu0 %v7032_v56  ;;  %3691 = vmatprep.subr.bf16.mxu1 %v7035_v57 }
 0x3b7   : > { %3606 = vmatpush1.bf16.msra.mxu0 %v7030_v58  ;;  %3692 = vmatpush1.bf16.msra.mxu1 %v7033_v59 }
 0x3b8   : > { %3607 = vmatprep.subr.bf16.mxu0 %v7038_v60  ;;  %3693 = vmatprep.subr.bf16.mxu1 %v7041_v61 }
 0x3bb   : > { %3608 = vmatpush1.bf16.msra.mxu0 %v7036_v62  ;;  %3694 = vmatpush1.bf16.msra.mxu1 %v7039_v63  ;;  %v7066_v62 = vld [vmem:[%s8027_s3 + $0xa00] ss:$16 sps:$4 sm:$0xff]   ;;  %v7069_v63 = vld [vmem:[%s8027_s3 + $0xa08] ss:$16 sps:$4 sm:$0xff]  }
 0x3bc   : > { %3609 = vmatprep.subr.bf16.mxu0 %v7044_v0  ;;  %3695 = vmatprep.subr.bf16.mxu1 %v7047_v1  ;;  %v7074_v1 = vld [vmem:[%s8027_s3 + $0xa24] ss:$16 sps:$4 sm:$0xff]  }
 0x3bf   : > { %3610 = vmatpush1.bf16.msra.mxu0 %v7042_v2  ;;  %3696 = vmatpush1.bf16.msra.mxu1 %v7045_v3  ;;  %v7077_v2 = vld [vmem:[%s8027_s3 + $0xa2c] ss:$16 sps:$4 sm:$0xff]   ;;  %v7072_v3 = vld [vmem:[%s8027_s3 + $0xa20] ss:$16 sps:$4 sm:$0xff]  }
 0x3c0   : > { %3611 = vmatprep.subr.bf16.mxu0 %v7050_v4  ;;  %3697 = vmatprep.subr.bf16.mxu1 %v7053_v5  ;;  %v7075_v4 = vld [vmem:[%s8027_s3 + $0xa28] ss:$16 sps:$4 sm:$0xff]   ;;  %v7080_v5 = vld [vmem:[%s8027_s3 + $0xa44] ss:$16 sps:$4 sm:$0xff]  }
 0x3c3   : > { %3612 = vmatpush1.bf16.msra.mxu0 %v7048_v6  ;;  %3698 = vmatpush1.bf16.msra.mxu1 %v7051_v8  ;;  %v7083_v6 = vld [vmem:[%s8027_s3 + $0xa4c] ss:$16 sps:$4 sm:$0xff]   ;;  %v7078_v8 = vld [vmem:[%s8027_s3 + $0xa40] ss:$16 sps:$4 sm:$0xff]  }
 0x3c4   : > { %3613 = vmatprep.subr.bf16.mxu0 %v7056_v9  ;;  %3699 = vmatprep.subr.bf16.mxu1 %v7059_v10  ;;  %v7081_v9 = vld [vmem:[%s8027_s3 + $0xa48] ss:$16 sps:$4 sm:$0xff]   ;;  %v7086_v10 = vld [vmem:[%s8027_s3 + $0xa64] ss:$16 sps:$4 sm:$0xff]  }
 0x3c7   : > { %3614 = vmatpush1.bf16.msra.mxu0 %v7054_v11  ;;  %3700 = vmatpush1.bf16.msra.mxu1 %v7057_v12  ;;  %v7089_v11 = vld [vmem:[%s8027_s3 + $0xa6c] ss:$16 sps:$4 sm:$0xff]   ;;  %v7084_v12 = vld [vmem:[%s8027_s3 + $0xa60] ss:$16 sps:$4 sm:$0xff]  }
 0x3c8   : > { %3615 = vmatprep.subr.bf16.mxu0 %v7062_v13  ;;  %3701 = vmatprep.subr.bf16.mxu1 %v7065_v14  ;;  %v7087_v13 = vld [vmem:[%s8027_s3 + $0xa68] ss:$16 sps:$4 sm:$0xff]   ;;  %v7092_v14 = vld [vmem:[%s8027_s3 + $0xa84] ss:$16 sps:$4 sm:$0xff]  }
 0x3cb   : > { %3616 = vmatpush1.bf16.msra.mxu0 %v7060_v15  ;;  %3702 = vmatpush1.bf16.msra.mxu1 %v7063_v16  ;;  %v7095_v15 = vld [vmem:[%s8027_s3 + $0xa8c] ss:$16 sps:$4 sm:$0xff]   ;;  %v7090_v16 = vld [vmem:[%s8027_s3 + $0xa80] ss:$16 sps:$4 sm:$0xff]  }
 0x3cc   : > { %3628 = vmatprep.subr.bf16.mxu0 %v7068_v17  ;;  %3714 = vmatprep.subr.bf16.mxu1 %v7071_v18  ;;  %v7093_v17 = vld [vmem:[%s8027_s3 + $0xa88] ss:$16 sps:$4 sm:$0xff]   ;;  %v7098_v18 = vld [vmem:[%s8027_s3 + $0xaa4] ss:$16 sps:$4 sm:$0xff]  }
 0x461   : > { %v2654_v24 = vpop.f32.mrb[4].mxu0  ;;  %v2740_v7 = vpop.f32.mrb[4].mxu1 }
 0x462   : > { %v6356_v25 = vadd.f32 %v2654_v24, %v1920_v20  ;;  %v6360_v26 = vadd.f32 %v2740_v7, %v1928_v21  ;;  %v2656_v27 = vpop.f32.mrb[5].mxu0  ;;  %v2742_v28 = vpop.f32.mrb[5].mxu1  ;;  %v7102_v24 = vld [vmem:[%s8027_s3 + $0xac0] ss:$16 sps:$4 sm:$0xff]   ;;  %v7105_v7 = vld [vmem:[%s8027_s3 + $0xac8] ss:$16 sps:$4 sm:$0xff]  }
 0x463   : > { %v6357_v31 = vadd.f32 %v2656_v27, %v1924_v22  ;;  %v6361_v34 = vadd.f32 %v2742_v28, %v1932_v23  ;;  %v2658_v35 = vpop.f32.mrb[6].mxu0  ;;  %v2744_v36 = vpop.f32.mrb[6].mxu1  ;;  %v7108_v27 = vld [vmem:[%s8027_s3 + $0xae0] ss:$16 sps:$4 sm:$0xff]   ;;  %v7111_v28 = vld [vmem:[%s8027_s3 + $0xae8] ss:$16 sps:$4 sm:$0xff]  }
 0x464   : > { %vm2749_vm0 = vcmp.gt.f32.partialorder %v6356_v25, 0.0  ;;  %v2757_v37 = vmul.f32 0.01, %v6356_v25  ;;  %vm2751_vm1 = vcmp.gt.f32.partialorder %v6360_v26, 0.0  ;;  %v2759_v38 = vmul.f32 0.01, %v6360_v26 }
 0x465   : > { %vm2750_vm2 = vcmp.gt.f32.partialorder %v6357_v31, 0.0  ;;  %v2758_v39 = vmul.f32 0.01, %v6357_v31  ;;  %vm2752_vm3 = vcmp.gt.f32.partialorder %v6361_v34, 0.0  ;;  %v2760_v40 = vmul.f32 0.01, %v6361_v34 }
 0x466   : > { %v6358_v41 = vadd.f32 %v2658_v35, %v1920_v20  ;;  %v6362_v42 = vadd.f32 %v2744_v36, %v1928_v21  ;;  %v2660_v43 = vpop.f32.mrb[7].mxu0  ;;  %v2746_v44 = vpop.f32.mrb[7].mxu1  ;;  %v2765_v45 = vsel %vm2749_vm0, %v6356_v25, %v2757_v37  ;;  %v2767_v46 = vsel %vm2751_vm1, %v6360_v26, %v2759_v38  ;;  %v7096_v20 = vld [vmem:[%s8027_s3 + $0xaa0] ss:$16 sps:$4 sm:$0xff]   ;;  %v7099_v21 = vld [vmem:[%s8027_s3 + $0xaa8] ss:$16 sps:$4 sm:$0xff]  }
 0x467   : > { %v6359_v47 = vadd.f32 %v2660_v43, %v1924_v22  ;;  %v6363_v48 = vadd.f32 %v2746_v44, %v1932_v23  ;;  %v2766_v53 = vsel %vm2750_vm2, %v6357_v31, %v2758_v39  ;;  %v2768_v54 = vsel %vm2752_vm3, %v6361_v34, %v2760_v40  ;;  %v7104_v22 = vld [vmem:[%s8027_s3 + $0xac4] ss:$16 sps:$4 sm:$0xff]   ;;  %v7107_v23 = vld [vmem:[%s8027_s3 + $0xacc] ss:$16 sps:$4 sm:$0xff]   ;;  %v7114_v35 = vld [vmem:[%s8027_s3 + $0xb00] ss:$16 sps:$4 sm:$0xff]  }
 0x468   : > { %vm2753_vm4 = vcmp.gt.f32.partialorder %v6358_v41, 0.0  ;;  %v2761_v49 = vmul.f32 0.01, %v6358_v41  ;;  %vm2755_vm5 = vcmp.gt.f32.partialorder %v6362_v42, 0.0  ;;  %v2763_v50 = vmul.f32 0.01, %v6362_v42 }
 0x469   : > { %vm2754_vm6 = vcmp.gt.f32.partialorder %v6359_v47, 0.0  ;;  %v2762_v51 = vmul.f32 0.01, %v6359_v47  ;;  %vm2756_vm7 = vcmp.gt.f32.partialorder %v6363_v48, 0.0  ;;  %v2764_v52 = vmul.f32 0.01, %v6363_v48 }
 0x46a   : > { %v2769_v55 = vsel %vm2753_vm4, %v6358_v41, %v2761_v49  ;;  %v2771_v56 = vsel %vm2755_vm5, %v6362_v42, %v2763_v50  ;;  %v7110_v25 = vld [vmem:[%s8027_s3 + $0xae4] ss:$16 sps:$4 sm:$0xff]   ;;  %v7113_v26 = vld [vmem:[%s8027_s3 + $0xaec] ss:$16 sps:$4 sm:$0xff]   ;;  %v7117_v36 = vld [vmem:[%s8027_s3 + $0xb08] ss:$16 sps:$4 sm:$0xff]  }
 0x46b   : > { %v2770_v57 = vsel %vm2754_vm6, %v6359_v47, %v2762_v51  ;;  %v2772_v58 = vsel %vm2756_vm7, %v6363_v48, %v2764_v52  ;;  %v2789_v59 = vpack.c.bf16 %v2769_v55, %v2765_v45  ;;  %v8388_v60 = vpack.c.bf16 %v2771_v56, %v2767_v46  ;;  %v7116_v31 = vld [vmem:[%s8027_s3 + $0xb04] ss:$16 sps:$4 sm:$0xff]   ;;  %v7119_v34 = vld [vmem:[%s8027_s3 + $0xb0c] ss:$16 sps:$4 sm:$0xff]   ;;  %v7120_v39 = vld [vmem:[%s8027_s3 + $0xb20] ss:$16 sps:$4 sm:$0xff]  }
 0x46c   : > { %v2790_v61 = vpack.c.bf16 %v2770_v57, %v2766_v53  ;;  %v2792_v0 = vpack.c.bf16 %v2772_v58, %v2768_v54  ;;  %v7122_v37 = vld [vmem:[%s8027_s3 + $0xb24] ss:$16 sps:$4 sm:$0xff]   ;;  %v7125_v38 = vld [vmem:[%s8027_s3 + $0xb2c] ss:$16 sps:$4 sm:$0xff]   ;;  %v7123_v40 = vld [vmem:[%s8027_s3 + $0xb28] ss:$16 sps:$4 sm:$0xff]  }
 0x46d   : > { %v7128_v41 = vld [vmem:[%s8027_s3 + $0xb44] ss:$16 sps:$4 sm:$0xff]   ;;  %v7131_v42 = vld [vmem:[%s8027_s3 + $0xb4c] ss:$16 sps:$4 sm:$0xff]   ;;  %v7126_v43 = vld [vmem:[%s8027_s3 + $0xb40] ss:$16 sps:$4 sm:$0xff]  }
 0x46e   : > { %3617 = vmatprep.mubr.bf16.mxu0 %v2790_v61  ;;  %3703 = vmatprep.mubr.bf16.mxu1 %v2790_v61  ;;  %v7129_v44 = vld [vmem:[%s8027_s3 + $0xb48] ss:$16 sps:$4 sm:$0xff]   ;;  %v7134_v45 = vld [vmem:[%s8027_s3 + $0xb64] ss:$16 sps:$4 sm:$0xff]   ;;  %v7137_v46 = vld [vmem:[%s8027_s3 + $0xb6c] ss:$16 sps:$4 sm:$0xff]  }
 0x46f   : > { %3618 = vmatmul.mubr.bf16.vlgmr.msra.gmra.mrb[8].mxu0 %v2789_v59  ;;  %3704 = vmatmul.mubr.bf16.vlgmr.msra.gmra.mrb[8].mxu1 %v2789_v59  ;;  %v7132_v47 = vld [vmem:[%s8027_s3 + $0xb60] ss:$16 sps:$4 sm:$0xff]   ;;  %v7135_v48 = vld [vmem:[%s8027_s3 + $0xb68] ss:$16 sps:$4 sm:$0xff]   ;;  %v7140_v49 = vld [vmem:[%s8027_s3 + $0xb84] ss:$16 sps:$4 sm:$0xff]  }
 0x470   : > { %3629 = vmatpush1.bf16.msra.mxu0 %v7066_v62  ;;  %3715 = vmatpush1.bf16.msra.mxu1 %v7069_v63  ;;  %v7143_v50 = vld [vmem:[%s8027_s3 + $0xb8c] ss:$16 sps:$4 sm:$0xff]   ;;  %v7138_v51 = vld [vmem:[%s8027_s3 + $0xb80] ss:$16 sps:$4 sm:$0xff]   ;;  %v7141_v52 = vld [vmem:[%s8027_s3 + $0xb88] ss:$16 sps:$4 sm:$0xff]  }
 0x471   : > { %3660 = vmatprep.mubr.bf16.mxu0 %v2792_v0  ;;  %3746 = vmatprep.mubr.bf16.mxu1 %v2792_v0  ;;  %v7146_v53 = vld [vmem:[%s8027_s3 + $0xba4] ss:$16 sps:$4 sm:$0xff]   ;;  %v7149_v54 = vld [vmem:[%s8027_s3 + $0xbac] ss:$16 sps:$4 sm:$0xff]   ;;  %v7144_v55 = vld [vmem:[%s8027_s3 + $0xba0] ss:$16 sps:$4 sm:$0xff]  }
 0x472   : > { %3630 = vmatprep.subr.bf16.mxu0 %v7074_v1  ;;  %3716 = vmatprep.subr.bf16.mxu1 %v7077_v2  ;;  %v7147_v56 = vld [vmem:[%s8027_s3 + $0xba8] ss:$16 sps:$4 sm:$0xff]   ;;  %v7152_v57 = vld [vmem:[%s8027_s3 + $0xbc4] ss:$16 sps:$4 sm:$0xff]   ;;  %v7155_v58 = vld [vmem:[%s8027_s3 + $0xbcc] ss:$16 sps:$4 sm:$0xff]  }
 0x473   : > { %v7150_v59 = vld [vmem:[%s8027_s3 + $0xbc0] ss:$16 sps:$4 sm:$0xff]   ;;  %v7153_v61 = vld [vmem:[%s8027_s3 + $0xbc8] ss:$16 sps:$4 sm:$0xff]   ;;  %v7158_v62 = vld [vmem:[%s8027_s3 + $0xbe4] ss:$16 sps:$4 sm:$0xff]  }
 0x474   : > { %3631 = vmatpush1.bf16.msra.mxu0 %v7072_v3  ;;  %3717 = vmatpush1.bf16.msra.mxu1 %v7075_v4  ;;  %v7161_v63 = vld [vmem:[%s8027_s3 + $0xbec] ss:$16 sps:$4 sm:$0xff]   ;;  %v7156_v0 = vld [vmem:[%s8027_s3 + $0xbe0] ss:$16 sps:$4 sm:$0xff]   ;;  %v7159_v1 = vld [vmem:[%s8027_s3 + $0xbe8] ss:$16 sps:$4 sm:$0xff]  }
 0x475   : > { %3632 = vmatprep.subr.bf16.mxu0 %v7080_v5  ;;  %3718 = vmatprep.subr.bf16.mxu1 %v7083_v6  ;;  %v7164_v2 = vld [vmem:[%s8027_s3 + $0xc04] ss:$16 sps:$4 sm:$0xff]   ;;  %v7167_v3 = vld [vmem:[%s8027_s3 + $0xc0c] ss:$16 sps:$4 sm:$0xff]   ;;  %v7162_v4 = vld [vmem:[%s8027_s3 + $0xc00] ss:$16 sps:$4 sm:$0xff]  }
 0x476   : > { %v7165_v5 = vld [vmem:[%s8027_s3 + $0xc08] ss:$16 sps:$4 sm:$0xff]   ;;  %v7170_v6 = vld [vmem:[%s8027_s3 + $0xc24] ss:$16 sps:$4 sm:$0xff]  }
 0x478   : > { %3633 = vmatpush1.bf16.msra.mxu0 %v7078_v8  ;;  %3719 = vmatpush1.bf16.msra.mxu1 %v7081_v9  ;;  %v7173_v8 = vld [vmem:[%s8027_s3 + $0xc2c] ss:$16 sps:$4 sm:$0xff]   ;;  %v7168_v9 = vld [vmem:[%s8027_s3 + $0xc20] ss:$16 sps:$4 sm:$0xff]  }
 0x479   : > { %3634 = vmatprep.subr.bf16.mxu0 %v7086_v10  ;;  %3720 = vmatprep.subr.bf16.mxu1 %v7089_v11  ;;  %v7171_v10 = vld [vmem:[%s8027_s3 + $0xc28] ss:$16 sps:$4 sm:$0xff]   ;;  %v7176_v11 = vld [vmem:[%s8027_s3 + $0xc44] ss:$16 sps:$4 sm:$0xff]  }
 0x47c   : > { %3635 = vmatpush1.bf16.msra.mxu0 %v7084_v12  ;;  %3721 = vmatpush1.bf16.msra.mxu1 %v7087_v13  ;;  %v7179_v12 = vld [vmem:[%s8027_s3 + $0xc4c] ss:$16 sps:$4 sm:$0xff]   ;;  %v7174_v13 = vld [vmem:[%s8027_s3 + $0xc40] ss:$16 sps:$4 sm:$0xff]  }
 0x47d   : > { %3636 = vmatprep.subr.bf16.mxu0 %v7092_v14  ;;  %3722 = vmatprep.subr.bf16.mxu1 %v7095_v15  ;;  %v7177_v14 = vld [vmem:[%s8027_s3 + $0xc48] ss:$16 sps:$4 sm:$0xff]   ;;  %v7185_v15 = vld [vmem:[%s8027_s3 + $0xc6c] ss:$16 sps:$4 sm:$0xff]  }
 0x480   : > { %3637 = vmatpush1.bf16.msra.mxu0 %v7090_v16  ;;  %3723 = vmatpush1.bf16.msra.mxu1 %v7093_v17  ;;  %v7180_v16 = vld [vmem:[%s8027_s3 + $0xc60] ss:$16 sps:$4 sm:$0xff]   ;;  %v7183_v17 = vld [vmem:[%s8027_s3 + $0xc68] ss:$16 sps:$4 sm:$0xff]  }
 0x481   : > { %3638 = vmatprep.subr.bf16.mxu0 %v7098_v18  ;;  %3724 = vmatprep.subr.bf16.mxu1 %v7101_v19  ;;  %v7188_v18 = vld [vmem:[%s8027_s3 + $0xc84] ss:$16 sps:$4 sm:$0xff]   ;;  %v7191_v19 = vld [vmem:[%s8027_s3 + $0xc8c] ss:$16 sps:$4 sm:$0xff]  }
 0x484   : > { %3639 = vmatpush1.bf16.msra.mxu0 %v7096_v20  ;;  %3725 = vmatpush1.bf16.msra.mxu1 %v7099_v21  ;;  %v7186_v20 = vld [vmem:[%s8027_s3 + $0xc80] ss:$16 sps:$4 sm:$0xff]   ;;  %v7189_v21 = vld [vmem:[%s8027_s3 + $0xc88] ss:$16 sps:$4 sm:$0xff]  }
 0x485   : > { %3640 = vmatprep.subr.bf16.mxu0 %v7104_v22  ;;  %3726 = vmatprep.subr.bf16.mxu1 %v7107_v23  ;;  %v7194_v22 = vld [vmem:[%s8027_s3 + $0xca4] ss:$16 sps:$4 sm:$0xff]   ;;  %v7197_v23 = vld [vmem:[%s8027_s3 + $0xcac] ss:$16 sps:$4 sm:$0xff]  }
 0x488   : > { %3641 = vmatpush1.bf16.msra.mxu0 %v7102_v24  ;;  %3727 = vmatpush1.bf16.msra.mxu1 %v7105_v7  ;;  %v7192_v24 = vld [vmem:[%s8027_s3 + $0xca0] ss:$16 sps:$4 sm:$0xff]   ;;  %v7195_v7 = vld [vmem:[%s8027_s3 + $0xca8] ss:$16 sps:$4 sm:$0xff]  }
 0x489   : > { %3642 = vmatprep.subr.bf16.mxu0 %v7110_v25  ;;  %3728 = vmatprep.subr.bf16.mxu1 %v7113_v26  ;;  %v7200_v25 = vld [vmem:[%s8027_s3 + $0xcc4] ss:$16 sps:$4 sm:$0xff]   ;;  %v7203_v26 = vld [vmem:[%s8027_s3 + $0xccc] ss:$16 sps:$4 sm:$0xff]  }
 0x48c   : > { %3643 = vmatpush1.bf16.msra.mxu0 %v7108_v27  ;;  %3729 = vmatpush1.bf16.msra.mxu1 %v7111_v28  ;;  %v7198_v27 = vld [vmem:[%s8027_s3 + $0xcc0] ss:$16 sps:$4 sm:$0xff]   ;;  %v7201_v28 = vld [vmem:[%s8027_s3 + $0xcc8] ss:$16 sps:$4 sm:$0xff]  }
 0x48d   : > { %3644 = vmatprep.subr.bf16.mxu0 %v7116_v31  ;;  %3730 = vmatprep.subr.bf16.mxu1 %v7119_v34  ;;  %v7206_v31 = vld [vmem:[%s8027_s3 + $0xce4] ss:$16 sps:$4 sm:$0xff]   ;;  %v7209_v34 = vld [vmem:[%s8027_s3 + $0xcec] ss:$16 sps:$4 sm:$0xff]  }
 0x490   : > { %3645 = vmatpush1.bf16.msra.mxu0 %v7114_v35  ;;  %3731 = vmatpush1.bf16.msra.mxu1 %v7117_v36  ;;  %v7204_v35 = vld [vmem:[%s8027_s3 + $0xce0] ss:$16 sps:$4 sm:$0xff]   ;;  %v7207_v36 = vld [vmem:[%s8027_s3 + $0xce8] ss:$16 sps:$4 sm:$0xff]  }
 0x491   : > { %3646 = vmatprep.subr.bf16.mxu0 %v7122_v37  ;;  %3732 = vmatprep.subr.bf16.mxu1 %v7125_v38  ;;  %v7212_v37 = vld [vmem:[%s8027_s3 + $0xd04] ss:$16 sps:$4 sm:$0xff]   ;;  %v7215_v38 = vld [vmem:[%s8027_s3 + $0xd0c] ss:$16 sps:$4 sm:$0xff]  }
 0x494   : > { %3647 = vmatpush1.bf16.msra.mxu0 %v7120_v39  ;;  %3733 = vmatpush1.bf16.msra.mxu1 %v7123_v40  ;;  %v7210_v39 = vld [vmem:[%s8027_s3 + $0xd00] ss:$16 sps:$4 sm:$0xff]   ;;  %v7213_v40 = vld [vmem:[%s8027_s3 + $0xd08] ss:$16 sps:$4 sm:$0xff]  }
 0x495   : > { %3648 = vmatprep.subr.bf16.mxu0 %v7128_v41  ;;  %3734 = vmatprep.subr.bf16.mxu1 %v7131_v42  ;;  %v7218_v41 = vld [vmem:[%s8027_s3 + $0xd24] ss:$16 sps:$4 sm:$0xff]   ;;  %v7221_v42 = vld [vmem:[%s8027_s3 + $0xd2c] ss:$16 sps:$4 sm:$0xff]  }
 0x498   : > { %3649 = vmatpush1.bf16.msra.mxu0 %v7126_v43  ;;  %3735 = vmatpush1.bf16.msra.mxu1 %v7129_v44  ;;  %v7216_v43 = vld [vmem:[%s8027_s3 + $0xd20] ss:$16 sps:$4 sm:$0xff]   ;;  %v7219_v44 = vld [vmem:[%s8027_s3 + $0xd28] ss:$16 sps:$4 sm:$0xff]  }
 0x499   : > { %3650 = vmatprep.subr.bf16.mxu0 %v7134_v45  ;;  %3736 = vmatprep.subr.bf16.mxu1 %v7137_v46  ;;  %v7224_v45 = vld [vmem:[%s8027_s3 + $0xd44] ss:$16 sps:$4 sm:$0xff]   ;;  %v7227_v46 = vld [vmem:[%s8027_s3 + $0xd4c] ss:$16 sps:$4 sm:$0xff]  }
 0x49c   : > { %3651 = vmatpush1.bf16.msra.mxu0 %v7132_v47  ;;  %3737 = vmatpush1.bf16.msra.mxu1 %v7135_v48  ;;  %v7222_v47 = vld [vmem:[%s8027_s3 + $0xd40] ss:$16 sps:$4 sm:$0xff]   ;;  %v7225_v48 = vld [vmem:[%s8027_s3 + $0xd48] ss:$16 sps:$4 sm:$0xff]  }
 0x49d   : > { %3652 = vmatprep.subr.bf16.mxu0 %v7140_v49  ;;  %3738 = vmatprep.subr.bf16.mxu1 %v7143_v50  ;;  %v7230_v49 = vld [vmem:[%s8027_s3 + $0xd64] ss:$16 sps:$4 sm:$0xff]   ;;  %v7233_v50 = vld [vmem:[%s8027_s3 + $0xd6c] ss:$16 sps:$4 sm:$0xff]  }
 0x4a0   : > { %3653 = vmatpush1.bf16.msra.mxu0 %v7138_v51  ;;  %3739 = vmatpush1.bf16.msra.mxu1 %v7141_v52  ;;  %v7228_v51 = vld [vmem:[%s8027_s3 + $0xd60] ss:$16 sps:$4 sm:$0xff]   ;;  %v7231_v52 = vld [vmem:[%s8027_s3 + $0xd68] ss:$16 sps:$4 sm:$0xff]  }
 0x4a1   : > { %3654 = vmatprep.subr.bf16.mxu0 %v7146_v53  ;;  %3740 = vmatprep.subr.bf16.mxu1 %v7149_v54  ;;  %v7236_v53 = vld [vmem:[%s8027_s3 + $0xd84] ss:$16 sps:$4 sm:$0xff]   ;;  %v7239_v54 = vld [vmem:[%s8027_s3 + $0xd8c] ss:$16 sps:$4 sm:$0xff]  }
 0x4a4   : > { %3655 = vmatpush1.bf16.msra.mxu0 %v7144_v55  ;;  %3741 = vmatpush1.bf16.msra.mxu1 %v7147_v56  ;;  %v7234_v55 = vld [vmem:[%s8027_s3 + $0xd80] ss:$16 sps:$4 sm:$0xff]   ;;  %v7237_v56 = vld [vmem:[%s8027_s3 + $0xd88] ss:$16 sps:$4 sm:$0xff]  }
 0x4a5   : > { %3656 = vmatprep.subr.bf16.mxu0 %v7152_v57  ;;  %3742 = vmatprep.subr.bf16.mxu1 %v7155_v58  ;;  %v7242_v57 = vld [vmem:[%s8027_s3 + $0xda4] ss:$16 sps:$4 sm:$0xff]   ;;  %v7245_v58 = vld [vmem:[%s8027_s3 + $0xdac] ss:$16 sps:$4 sm:$0xff]  }
 0x4a8   : > { %3657 = vmatpush1.bf16.msra.mxu0 %v7150_v59  ;;  %3743 = vmatpush1.bf16.msra.mxu1 %v7153_v61  ;;  %v7240_v59 = vld [vmem:[%s8027_s3 + $0xda0] ss:$16 sps:$4 sm:$0xff]   ;;  %v7243_v61 = vld [vmem:[%s8027_s3 + $0xda8] ss:$16 sps:$4 sm:$0xff]  }
 0x4a9   : > { %3658 = vmatprep.subr.bf16.mxu0 %v7158_v62  ;;  %3744 = vmatprep.subr.bf16.mxu1 %v7161_v63  ;;  %v7248_v62 = vld [vmem:[%s8027_s3 + $0xdc4] ss:$16 sps:$4 sm:$0xff]   ;;  %v7251_v63 = vld [vmem:[%s8027_s3 + $0xdcc] ss:$16 sps:$4 sm:$0xff]  }
 0x4ac   : > { %3659 = vmatpush1.bf16.msra.mxu0 %v7156_v0  ;;  %3745 = vmatpush1.bf16.msra.mxu1 %v7159_v1  ;;  %v7246_v0 = vld [vmem:[%s8027_s3 + $0xdc0] ss:$16 sps:$4 sm:$0xff]   ;;  %v7249_v1 = vld [vmem:[%s8027_s3 + $0xdc8] ss:$16 sps:$4 sm:$0xff]  }
 0x4ad   : > { %4593 = vmatprep.subr.bf16.mxu0 %v7164_v2  ;;  %4679 = vmatprep.subr.bf16.mxu1 %v7167_v3  ;;  %v7254_v2 = vld [vmem:[%s8027_s3 + $0xde4] ss:$16 sps:$4 sm:$0xff]   ;;  %v7257_v3 = vld [vmem:[%s8027_s3 + $0xdec] ss:$16 sps:$4 sm:$0xff]  }
 0x4af   : > { %3661 = vmatmul.mubr.bf16.vlgmr.msra.gmra.mrb[8].mxu0 %v8388_v60  ;;  %3747 = vmatmul.mubr.bf16.vlgmr.msra.gmra.mrb[8].mxu1 %v8388_v60  ;;  %v7182_v60 = vld [vmem:[%s8027_s3 + $0xc64] ss:$16 sps:$4 sm:$0xff]  }
 0x4b0   : > { %4594 = vmatpush1.bf16.msra.mxu0 %v7162_v4  ;;  %4680 = vmatpush1.bf16.msra.mxu1 %v7165_v5  ;;  %v7252_v4 = vld [vmem:[%s8027_s3 + $0xde0] ss:$16 sps:$4 sm:$0xff]   ;;  %v7255_v5 = vld [vmem:[%s8027_s3 + $0xde8] ss:$16 sps:$4 sm:$0xff]  }
 0x4b1   : > { %4595 = vmatprep.subr.bf16.mxu0 %v7170_v6  ;;  %4681 = vmatprep.subr.bf16.mxu1 %v7173_v8  ;;  %v7260_v6 = vld [vmem:[%s8027_s3 + $0xe04] ss:$16 sps:$4 sm:$0xff]   ;;  %v7263_v8 = vld [vmem:[%s8027_s3 + $0xe0c] ss:$16 sps:$4 sm:$0xff]  }
 0x4b4   : > { %4596 = vmatpush1.bf16.msra.mxu0 %v7168_v9  ;;  %4682 = vmatpush1.bf16.msra.mxu1 %v7171_v10  ;;  %v5876_v9 = vld [vmem:[%s8033_s24 + $0x8] sm:$0xf] }
 0x4b5   : > { %4597 = vmatprep.subr.bf16.mxu0 %v7176_v11  ;;  %4683 = vmatprep.subr.bf16.mxu1 %v7179_v12  ;;  %v2928_v10 = vrot.slane %v5876_v9, %v8234_v29  ;;  %v2936_v11 = vrot.slane %v5876_v9, %v8236_v30  ;;  %v2932_v12 = vrot.slane %v5876_v9, %v8239_v32 }
 0x4b8   : > { %4598 = vmatpush1.bf16.msra.mxu0 %v7174_v13  ;;  %4684 = vmatpush1.bf16.msra.mxu1 %v7177_v14  ;;  %v2940_v13 = vrot.slane %v5876_v9, %v8241_v33  ;;  %v7293_v9 = vld [vmem:[%s8027_s3 + $0xeac] ss:$16 sps:$4 sm:$0xff]  }
 0x4b9   : > { %4599 = vmatprep.subr.bf16.mxu0 %v7182_v60  ;;  %4685 = vmatprep.subr.bf16.mxu1 %v7185_v15 }
 0x4bc   : > { %4600 = vmatpush1.bf16.msra.mxu0 %v7180_v16  ;;  %4686 = vmatpush1.bf16.msra.mxu1 %v7183_v17 }
 0x4bd   : > { %4601 = vmatprep.subr.bf16.mxu0 %v7188_v18  ;;  %4687 = vmatprep.subr.bf16.mxu1 %v7191_v19 }
 0x4c0   : > { %4602 = vmatpush1.bf16.msra.mxu0 %v7186_v20  ;;  %4688 = vmatpush1.bf16.msra.mxu1 %v7189_v21 }
 0x4c1   : > { %4603 = vmatprep.subr.bf16.mxu0 %v7194_v22  ;;  %4689 = vmatprep.subr.bf16.mxu1 %v7197_v23 }
 0x4c4   : > { %4604 = vmatpush1.bf16.msra.mxu0 %v7192_v24  ;;  %4690 = vmatpush1.bf16.msra.mxu1 %v7195_v7 }
 0x4c5   : > { %4605 = vmatprep.subr.bf16.mxu0 %v7200_v25  ;;  %4691 = vmatprep.subr.bf16.mxu1 %v7203_v26 }
 0x4c8   : > { %4606 = vmatpush1.bf16.msra.mxu0 %v7198_v27  ;;  %4692 = vmatpush1.bf16.msra.mxu1 %v7201_v28 }
 0x4c9   : > { %4607 = vmatprep.subr.bf16.mxu0 %v7206_v31  ;;  %4693 = vmatprep.subr.bf16.mxu1 %v7209_v34 }
 0x4cc   : > { %4608 = vmatpush1.bf16.msra.mxu0 %v7204_v35  ;;  %4694 = vmatpush1.bf16.msra.mxu1 %v7207_v36 }
 0x4cd   : > { %4609 = vmatprep.subr.bf16.mxu0 %v7212_v37  ;;  %4695 = vmatprep.subr.bf16.mxu1 %v7215_v38 }
 0x4d0   : > { %4610 = vmatpush1.bf16.msra.mxu0 %v7210_v39  ;;  %4696 = vmatpush1.bf16.msra.mxu1 %v7213_v40 }
 0x4d1   : > { %4611 = vmatprep.subr.bf16.mxu0 %v7218_v41  ;;  %4697 = vmatprep.subr.bf16.mxu1 %v7221_v42 }
 0x4d4   : > { %4612 = vmatpush1.bf16.msra.mxu0 %v7216_v43  ;;  %4698 = vmatpush1.bf16.msra.mxu1 %v7219_v44 }
 0x4d5   : > { %4613 = vmatprep.subr.bf16.mxu0 %v7224_v45  ;;  %4699 = vmatprep.subr.bf16.mxu1 %v7227_v46 }
 0x4d8   : > { %4614 = vmatpush1.bf16.msra.mxu0 %v7222_v47  ;;  %4700 = vmatpush1.bf16.msra.mxu1 %v7225_v48 }
 0x4d9   : > { %4615 = vmatprep.subr.bf16.mxu0 %v7230_v49  ;;  %4701 = vmatprep.subr.bf16.mxu1 %v7233_v50 }
 0x4dc   : > { %4616 = vmatpush1.bf16.msra.mxu0 %v7228_v51  ;;  %4702 = vmatpush1.bf16.msra.mxu1 %v7231_v52  ;;  %v7258_v51 = vld [vmem:[%s8027_s3 + $0xe00] ss:$16 sps:$4 sm:$0xff]   ;;  %v7261_v52 = vld [vmem:[%s8027_s3 + $0xe08] ss:$16 sps:$4 sm:$0xff]  }
 0x4dd   : > { %4617 = vmatprep.subr.bf16.mxu0 %v7236_v53  ;;  %4703 = vmatprep.subr.bf16.mxu1 %v7239_v54  ;;  %v7266_v54 = vld [vmem:[%s8027_s3 + $0xe24] ss:$16 sps:$4 sm:$0xff]  }
 0x4e0   : > { %4618 = vmatpush1.bf16.msra.mxu0 %v7234_v55  ;;  %4704 = vmatpush1.bf16.msra.mxu1 %v7237_v56  ;;  %v7269_v55 = vld [vmem:[%s8027_s3 + $0xe2c] ss:$16 sps:$4 sm:$0xff]   ;;  %v7264_v56 = vld [vmem:[%s8027_s3 + $0xe20] ss:$16 sps:$4 sm:$0xff]  }
 0x4e1   : > { %4619 = vmatprep.subr.bf16.mxu0 %v7242_v57  ;;  %4705 = vmatprep.subr.bf16.mxu1 %v7245_v58  ;;  %v7267_v57 = vld [vmem:[%s8027_s3 + $0xe28] ss:$16 sps:$4 sm:$0xff]   ;;  %v7272_v58 = vld [vmem:[%s8027_s3 + $0xe44] ss:$16 sps:$4 sm:$0xff]  }
 0x4e4   : > { %4620 = vmatpush1.bf16.msra.mxu0 %v7240_v59  ;;  %4706 = vmatpush1.bf16.msra.mxu1 %v7243_v61  ;;  %v7275_v59 = vld [vmem:[%s8027_s3 + $0xe4c] ss:$16 sps:$4 sm:$0xff]   ;;  %v7270_v61 = vld [vmem:[%s8027_s3 + $0xe40] ss:$16 sps:$4 sm:$0xff]  }
 0x4e5   : > { %4621 = vmatprep.subr.bf16.mxu0 %v7248_v62  ;;  %4707 = vmatprep.subr.bf16.mxu1 %v7251_v63  ;;  %v7273_v62 = vld [vmem:[%s8027_s3 + $0xe48] ss:$16 sps:$4 sm:$0xff]   ;;  %v7278_v63 = vld [vmem:[%s8027_s3 + $0xe64] ss:$16 sps:$4 sm:$0xff]  }
 0x4e8   : > { %4622 = vmatpush1.bf16.msra.mxu0 %v7246_v0  ;;  %4708 = vmatpush1.bf16.msra.mxu1 %v7249_v1  ;;  %v7281_v0 = vld [vmem:[%s8027_s3 + $0xe6c] ss:$16 sps:$4 sm:$0xff]   ;;  %v7276_v1 = vld [vmem:[%s8027_s3 + $0xe60] ss:$16 sps:$4 sm:$0xff]  }
 0x4e9   : > { %4623 = vmatprep.subr.bf16.mxu0 %v7254_v2  ;;  %4709 = vmatprep.subr.bf16.mxu1 %v7257_v3  ;;  %v7279_v2 = vld [vmem:[%s8027_s3 + $0xe68] ss:$16 sps:$4 sm:$0xff]   ;;  %v7284_v3 = vld [vmem:[%s8027_s3 + $0xe84] ss:$16 sps:$4 sm:$0xff]  }
 0x4ec   : > { %4624 = vmatpush1.bf16.msra.mxu0 %v7252_v4  ;;  %4710 = vmatpush1.bf16.msra.mxu1 %v7255_v5  ;;  %v7287_v4 = vld [vmem:[%s8027_s3 + $0xe8c] ss:$16 sps:$4 sm:$0xff]   ;;  %v7282_v5 = vld [vmem:[%s8027_s3 + $0xe80] ss:$16 sps:$4 sm:$0xff]  }
 0x4ed   : > { %4636 = vmatprep.subr.bf16.mxu0 %v7260_v6  ;;  %4722 = vmatprep.subr.bf16.mxu1 %v7263_v8  ;;  %v7285_v6 = vld [vmem:[%s8027_s3 + $0xe88] ss:$16 sps:$4 sm:$0xff]   ;;  %v7290_v8 = vld [vmem:[%s8027_s3 + $0xea4] ss:$16 sps:$4 sm:$0xff]  }
 0x582   : > { %v3662_v14 = vpop.f32.mrb[8].mxu0  ;;  %v3748_v60 = vpop.f32.mrb[8].mxu1 }
 0x583   : > { %v6364_v15 = vadd.f32 %v3662_v14, %v2928_v10  ;;  %v6368_v16 = vadd.f32 %v3748_v60, %v2936_v11  ;;  %v3664_v17 = vpop.f32.mrb[9].mxu0  ;;  %v3750_v18 = vpop.f32.mrb[9].mxu1  ;;  %v7294_v14 = vld [vmem:[%s8027_s3 + $0xec0] ss:$16 sps:$4 sm:$0xff]   ;;  %v7297_v60 = vld [vmem:[%s8027_s3 + $0xec8] ss:$16 sps:$4 sm:$0xff]  }
 0x584   : > { %v6365_v19 = vadd.f32 %v3664_v17, %v2932_v12  ;;  %v6369_v20 = vadd.f32 %v3750_v18, %v2940_v13  ;;  %v3666_v21 = vpop.f32.mrb[10].mxu0  ;;  %v3752_v22 = vpop.f32.mrb[10].mxu1  ;;  %v7300_v17 = vld [vmem:[%s8027_s3 + $0xee0] ss:$16 sps:$4 sm:$0xff]   ;;  %v7303_v18 = vld [vmem:[%s8027_s3 + $0xee8] ss:$16 sps:$4 sm:$0xff]  }
 0x585   : > { %vm3757_vm8 = vcmp.gt.f32.partialorder %v6364_v15, 0.0  ;;  %v3765_v23 = vmul.f32 0.01, %v6364_v15  ;;  %vm3759_vm9 = vcmp.gt.f32.partialorder %v6368_v16, 0.0  ;;  %v3767_v24 = vmul.f32 0.01, %v6368_v16 }
 0x586   : > { %vm3758_vm10 = vcmp.gt.f32.partialorder %v6365_v19, 0.0  ;;  %v3766_v7 = vmul.f32 0.01, %v6365_v19  ;;  %vm3760_vm11 = vcmp.gt.f32.partialorder %v6369_v20, 0.0  ;;  %v3768_v25 = vmul.f32 0.01, %v6369_v20 }
 0x587   : > { %v6366_v26 = vadd.f32 %v3666_v21, %v2928_v10  ;;  %v6370_v27 = vadd.f32 %v3752_v22, %v2936_v11  ;;  %v3668_v28 = vpop.f32.mrb[11].mxu0  ;;  %v3754_v31 = vpop.f32.mrb[11].mxu1  ;;  %v3773_v34 = vsel %vm3757_vm8, %v6364_v15, %v3765_v23  ;;  %v3775_v35 = vsel %vm3759_vm9, %v6368_v16, %v3767_v24  ;;  %v7288_v10 = vld [vmem:[%s8027_s3 + $0xea0] ss:$16 sps:$4 sm:$0xff]   ;;  %v7291_v11 = vld [vmem:[%s8027_s3 + $0xea8] ss:$16 sps:$4 sm:$0xff]  }
 0x588   : > { %v6367_v36 = vadd.f32 %v3668_v28, %v2932_v12  ;;  %v6371_v37 = vadd.f32 %v3754_v31, %v2940_v13  ;;  %v3774_v42 = vsel %vm3758_vm10, %v6365_v19, %v3766_v7  ;;  %v3776_v43 = vsel %vm3760_vm11, %v6369_v20, %v3768_v25  ;;  %v7296_v12 = vld [vmem:[%s8027_s3 + $0xec4] ss:$16 sps:$4 sm:$0xff]   ;;  %v7299_v13 = vld [vmem:[%s8027_s3 + $0xecc] ss:$16 sps:$4 sm:$0xff]   ;;  %v7306_v21 = vld [vmem:[%s8027_s3 + $0xf00] ss:$16 sps:$4 sm:$0xff]  }
 0x589   : > { %vm3761_vm12 = vcmp.gt.f32.partialorder %v6366_v26, 0.0  ;;  %v3769_v38 = vmul.f32 0.01, %v6366_v26  ;;  %vm3763_vm13 = vcmp.gt.f32.partialorder %v6370_v27, 0.0  ;;  %v3771_v39 = vmul.f32 0.01, %v6370_v27 }
 0x58a   : > { %vm3762_vm14 = vcmp.gt.f32.partialorder %v6367_v36, 0.0  ;;  %v3770_v40 = vmul.f32 0.01, %v6367_v36  ;;  %vm3764_vm15 = vcmp.gt.f32.partialorder %v6371_v37, 0.0  ;;  %v3772_v41 = vmul.f32 0.01, %v6371_v37 }
 0x58b   : > { %v3777_v44 = vsel %vm3761_vm12, %v6366_v26, %v3769_v38  ;;  %v3779_v45 = vsel %vm3763_vm13, %v6370_v27, %v3771_v39  ;;  %v7302_v15 = vld [vmem:[%s8027_s3 + $0xee4] ss:$16 sps:$4 sm:$0xff]   ;;  %v7305_v16 = vld [vmem:[%s8027_s3 + $0xeec] ss:$16 sps:$4 sm:$0xff]   ;;  %v7309_v22 = vld [vmem:[%s8027_s3 + $0xf08] ss:$16 sps:$4 sm:$0xff]  }
 0x58c   : > { %v3778_v46 = vsel %vm3762_vm14, %v6367_v36, %v3770_v40  ;;  %v3780_v47 = vsel %vm3764_vm15, %v6371_v37, %v3772_v41  ;;  %v3797_v48 = vpack.c.bf16 %v3777_v44, %v3773_v34  ;;  %v8527_v49 = vpack.c.bf16 %v3779_v45, %v3775_v35  ;;  %v7308_v19 = vld [vmem:[%s8027_s3 + $0xf04] ss:$16 sps:$4 sm:$0xff]   ;;  %v7311_v20 = vld [vmem:[%s8027_s3 + $0xf0c] ss:$16 sps:$4 sm:$0xff]   ;;  %v7312_v7 = vld [vmem:[%s8027_s3 + $0xf20] ss:$16 sps:$4 sm:$0xff]  }
 0x58d   : > { %v3798_v50 = vpack.c.bf16 %v3778_v46, %v3774_v42  ;;  %v3800_v53 = vpack.c.bf16 %v3780_v47, %v3776_v43  ;;  %v7314_v23 = vld [vmem:[%s8027_s3 + $0xf24] ss:$16 sps:$4 sm:$0xff]   ;;  %v7317_v24 = vld [vmem:[%s8027_s3 + $0xf2c] ss:$16 sps:$4 sm:$0xff]   ;;  %v7315_v25 = vld [vmem:[%s8027_s3 + $0xf28] ss:$16 sps:$4 sm:$0xff]  }
 0x58e   : > { %v7320_v26 = vld [vmem:[%s8027_s3 + $0xf44] ss:$16 sps:$4 sm:$0xff]   ;;  %v7323_v27 = vld [vmem:[%s8027_s3 + $0xf4c] ss:$16 sps:$4 sm:$0xff]   ;;  %v7318_v28 = vld [vmem:[%s8027_s3 + $0xf40] ss:$16 sps:$4 sm:$0xff]  }
 0x58f   : > { %4625 = vmatprep.mubr.bf16.mxu0 %v3798_v50  ;;  %4711 = vmatprep.mubr.bf16.mxu1 %v3798_v50  ;;  %v7321_v31 = vld [vmem:[%s8027_s3 + $0xf48] ss:$16 sps:$4 sm:$0xff]   ;;  %v7326_v34 = vld [vmem:[%s8027_s3 + $0xf64] ss:$16 sps:$4 sm:$0xff]   ;;  %v7329_v35 = vld [vmem:[%s8027_s3 + $0xf6c] ss:$16 sps:$4 sm:$0xff]  }
 0x590   : > { %4626 = vmatmul.mubr.bf16.vlgmr.msra.gmra.mrb[12].mxu0 %v3797_v48  ;;  %4712 = vmatmul.mubr.bf16.vlgmr.msra.gmra.mrb[12].mxu1 %v3797_v48  ;;  %v7324_v36 = vld [vmem:[%s8027_s3 + $0xf60] ss:$16 sps:$4 sm:$0xff]   ;;  %v7327_v37 = vld [vmem:[%s8027_s3 + $0xf68] ss:$16 sps:$4 sm:$0xff]   ;;  %v7332_v38 = vld [vmem:[%s8027_s3 + $0xf84] ss:$16 sps:$4 sm:$0xff]  }
 0x591   : > { %4637 = vmatpush1.bf16.msra.mxu0 %v7258_v51  ;;  %4723 = vmatpush1.bf16.msra.mxu1 %v7261_v52  ;;  %v7335_v39 = vld [vmem:[%s8027_s3 + $0xf8c] ss:$16 sps:$4 sm:$0xff]   ;;  %v7330_v40 = vld [vmem:[%s8027_s3 + $0xf80] ss:$16 sps:$4 sm:$0xff]   ;;  %v7333_v41 = vld [vmem:[%s8027_s3 + $0xf88] ss:$16 sps:$4 sm:$0xff]  }
 0x592   : > { %4668 = vmatprep.mubr.bf16.mxu0 %v3800_v53  ;;  %4754 = vmatprep.mubr.bf16.mxu1 %v3800_v53  ;;  %v7338_v42 = vld [vmem:[%s8027_s3 + $0xfa4] ss:$16 sps:$4 sm:$0xff]   ;;  %v7341_v43 = vld [vmem:[%s8027_s3 + $0xfac] ss:$16 sps:$4 sm:$0xff]   ;;  %v7336_v44 = vld [vmem:[%s8027_s3 + $0xfa0] ss:$16 sps:$4 sm:$0xff]  }
 0x593   : > { %4638 = vmatprep.subr.bf16.mxu0 %v7266_v54  ;;  %4724 = vmatprep.subr.bf16.mxu1 %v7269_v55  ;;  %v7339_v45 = vld [vmem:[%s8027_s3 + $0xfa8] ss:$16 sps:$4 sm:$0xff]   ;;  %v7344_v46 = vld [vmem:[%s8027_s3 + $0xfc4] ss:$16 sps:$4 sm:$0xff]   ;;  %v7347_v47 = vld [vmem:[%s8027_s3 + $0xfcc] ss:$16 sps:$4 sm:$0xff]  }
 0x594   : > { %v7342_v48 = vld [vmem:[%s8027_s3 + $0xfc0] ss:$16 sps:$4 sm:$0xff]   ;;  %v7345_v50 = vld [vmem:[%s8027_s3 + $0xfc8] ss:$16 sps:$4 sm:$0xff]   ;;  %v7350_v51 = vld [vmem:[%s8027_s3 + $0xfe4] ss:$16 sps:$4 sm:$0xff]  }
 0x595   : > { %4639 = vmatpush1.bf16.msra.mxu0 %v7264_v56  ;;  %4725 = vmatpush1.bf16.msra.mxu1 %v7267_v57  ;;  %v7353_v52 = vld [vmem:[%s8027_s3 + $0xfec] ss:$16 sps:$4 sm:$0xff]   ;;  %v7348_v53 = vld [vmem:[%s8027_s3 + $0xfe0] ss:$16 sps:$4 sm:$0xff]   ;;  %v7351_v54 = vld [vmem:[%s8027_s3 + $0xfe8] ss:$16 sps:$4 sm:$0xff]  }
 0x596   : > { %4640 = vmatprep.subr.bf16.mxu0 %v7272_v58  ;;  %4726 = vmatprep.subr.bf16.mxu1 %v7275_v59  ;;  %v6133_v55 = vld [vmem:[%s8033_s24 + $0xc] sm:$0xf] }
 0x597   : > { %v3936_v56 = vrot.slane %v6133_v55, %v8234_v29  ;;  %v3944_v57 = vrot.slane %v6133_v55, %v8236_v30  ;;  %v3940_v58 = vrot.slane %v6133_v55, %v8239_v32  ;;  %v3948_v59 = vrot.slane %v6133_v55, %v8241_v33  ;;  %v7381_v55 = vld [vmem:[#allocation12 + $0xb0] sm:$0xff] (!%p6262_p7)  }
 0x599   : > { %4641 = vmatpush1.bf16.msra.mxu0 %v7270_v61  ;;  %4727 = vmatpush1.bf16.msra.mxu1 %v7273_v62 }
 0x59a   : > { %4642 = vmatprep.subr.bf16.mxu0 %v7278_v63  ;;  %4728 = vmatprep.subr.bf16.mxu1 %v7281_v0 }
 0x59d   : > { %4643 = vmatpush1.bf16.msra.mxu0 %v7276_v1  ;;  %4729 = vmatpush1.bf16.msra.mxu1 %v7279_v2 }
 0x59e   : > { %4644 = vmatprep.subr.bf16.mxu0 %v7284_v3  ;;  %4730 = vmatprep.subr.bf16.mxu1 %v7287_v4 }
 0x5a1   : > { %4645 = vmatpush1.bf16.msra.mxu0 %v7282_v5  ;;  %4731 = vmatpush1.bf16.msra.mxu1 %v7285_v6 }
 0x5a2   : > { %4646 = vmatprep.subr.bf16.mxu0 %v7290_v8  ;;  %4732 = vmatprep.subr.bf16.mxu1 %v7293_v9 }
 0x5a5   : > { %4647 = vmatpush1.bf16.msra.mxu0 %v7288_v10  ;;  %4733 = vmatpush1.bf16.msra.mxu1 %v7291_v11 }
 0x5a6   : > { %4648 = vmatprep.subr.bf16.mxu0 %v7296_v12  ;;  %4734 = vmatprep.subr.bf16.mxu1 %v7299_v13 }
 0x5a9   : > { %4649 = vmatpush1.bf16.msra.mxu0 %v7294_v14  ;;  %4735 = vmatpush1.bf16.msra.mxu1 %v7297_v60 }
 0x5aa   : > { %4650 = vmatprep.subr.bf16.mxu0 %v7302_v15  ;;  %4736 = vmatprep.subr.bf16.mxu1 %v7305_v16 }
 0x5ad   : > { %4651 = vmatpush1.bf16.msra.mxu0 %v7300_v17  ;;  %4737 = vmatpush1.bf16.msra.mxu1 %v7303_v18 }
 0x5ae   : > { %4652 = vmatprep.subr.bf16.mxu0 %v7308_v19  ;;  %4738 = vmatprep.subr.bf16.mxu1 %v7311_v20 }
 0x5b1   : > { %4653 = vmatpush1.bf16.msra.mxu0 %v7306_v21  ;;  %4739 = vmatpush1.bf16.msra.mxu1 %v7309_v22 }
 0x5b2   : > { %4654 = vmatprep.subr.bf16.mxu0 %v7314_v23  ;;  %4740 = vmatprep.subr.bf16.mxu1 %v7317_v24  ;;  %v7354_v24 = vld [vmem:[#allocation12 + $0x40] sm:$0xff] (!%p6262_p7)  }
 0x5b5   : > { %4655 = vmatpush1.bf16.msra.mxu0 %v7312_v7  ;;  %4741 = vmatpush1.bf16.msra.mxu1 %v7315_v25  ;;  %v7355_v7 = vld [vmem:[#allocation12 + $0xc0] sm:$0xff] (!%p6262_p7)  }
 0x5b6   : > { %4656 = vmatprep.subr.bf16.mxu0 %v7320_v26  ;;  %4742 = vmatprep.subr.bf16.mxu1 %v7323_v27  ;;  %v7356_v25 = vld [vmem:[#allocation12] sm:$0xff] (!%p6262_p7)   ;;  %v7358_v27 = vld [vmem:[#allocation12 + $0x48] sm:$0xff] (!%p6262_p7)  }
 0x5b7   : > { %v7357_v26 = vld [vmem:[#allocation12 + $0x80] sm:$0xff] (!%p6262_p7)  }
 0x5b9   : > { %4657 = vmatpush1.bf16.msra.mxu0 %v7318_v28  ;;  %4743 = vmatpush1.bf16.msra.mxu1 %v7321_v31  ;;  %v7359_v28 = vld [vmem:[#allocation12 + $0xc8] sm:$0xff] (!%p6262_p7)  }
 0x5ba   : > { %4658 = vmatprep.subr.bf16.mxu0 %v7326_v34  ;;  %4744 = vmatprep.subr.bf16.mxu1 %v7329_v35  ;;  %v7360_v31 = vld [vmem:[#allocation12 + $0x8] sm:$0xff] (!%p6262_p7)   ;;  %v7362_v35 = vld [vmem:[#allocation12 + $0x50] sm:$0xff] (!%p6262_p7)  }
 0x5bb   : > { %v7361_v34 = vld [vmem:[#allocation12 + $0x88] sm:$0xff] (!%p6262_p7)  }
 0x5bd   : > { %4659 = vmatpush1.bf16.msra.mxu0 %v7324_v36  ;;  %4745 = vmatpush1.bf16.msra.mxu1 %v7327_v37  ;;  %v7363_v36 = vld [vmem:[#allocation12 + $0xd0] sm:$0xff] (!%p6262_p7)  }
 0x5be   : > { %4660 = vmatprep.subr.bf16.mxu0 %v7332_v38  ;;  %4746 = vmatprep.subr.bf16.mxu1 %v7335_v39  ;;  %v7364_v37 = vld [vmem:[#allocation12 + $0x10] sm:$0xff] (!%p6262_p7)   ;;  %v7366_v39 = vld [vmem:[#allocation12 + $0x58] sm:$0xff] (!%p6262_p7)  }
 0x5bf   : > { %v7365_v38 = vld [vmem:[#allocation12 + $0x90] sm:$0xff] (!%p6262_p7)  }
 0x5c1   : > { %4661 = vmatpush1.bf16.msra.mxu0 %v7330_v40  ;;  %4747 = vmatpush1.bf16.msra.mxu1 %v7333_v41  ;;  %v7367_v40 = vld [vmem:[#allocation12 + $0xd8] sm:$0xff] (!%p6262_p7)  }
 0x5c2   : > { %4662 = vmatprep.subr.bf16.mxu0 %v7338_v42  ;;  %4748 = vmatprep.subr.bf16.mxu1 %v7341_v43  ;;  %v7368_v41 = vld [vmem:[#allocation12 + $0x18] sm:$0xff] (!%p6262_p7)   ;;  %v7370_v43 = vld [vmem:[#allocation12 + $0x60] sm:$0xff] (!%p6262_p7)  }
 0x5c3   : > { %v7369_v42 = vld [vmem:[#allocation12 + $0x98] sm:$0xff] (!%p6262_p7)  }
 0x5c5   : > { %4663 = vmatpush1.bf16.msra.mxu0 %v7336_v44  ;;  %4749 = vmatpush1.bf16.msra.mxu1 %v7339_v45  ;;  %v7371_v44 = vld [vmem:[#allocation12 + $0xe0] sm:$0xff] (!%p6262_p7)  }
 0x5c6   : > { %4664 = vmatprep.subr.bf16.mxu0 %v7344_v46  ;;  %4750 = vmatprep.subr.bf16.mxu1 %v7347_v47  ;;  %v7372_v45 = vld [vmem:[#allocation12 + $0x20] sm:$0xff] (!%p6262_p7)   ;;  %v7374_v47 = vld [vmem:[#allocation12 + $0x68] sm:$0xff] (!%p6262_p7)  }
 0x5c7   : > { %v7373_v46 = vld [vmem:[#allocation12 + $0xa0] sm:$0xff] (!%p6262_p7)  }
 0x5c9   : > { %4665 = vmatpush1.bf16.msra.mxu0 %v7342_v48  ;;  %4751 = vmatpush1.bf16.msra.mxu1 %v7345_v50  ;;  %v7375_v48 = vld [vmem:[#allocation12 + $0xe8] sm:$0xff] (!%p6262_p7)  }
 0x5ca   : > { %4666 = vmatprep.subr.bf16.mxu0 %v7350_v51  ;;  %4752 = vmatprep.subr.bf16.mxu1 %v7353_v52  ;;  %v7376_v50 = vld [vmem:[#allocation12 + $0x28] sm:$0xff] (!%p6262_p7)   ;;  %v7378_v52 = vld [vmem:[#allocation12 + $0x70] sm:$0xff] (!%p6262_p7)  }
 0x5cb   : > { %v7377_v51 = vld [vmem:[#allocation12 + $0xa8] sm:$0xff] (!%p6262_p7)  }
 0x5cd   : > { %4667 = vmatpush1.bf16.msra.mxu0 %v7348_v53  ;;  %4753 = vmatpush1.bf16.msra.mxu1 %v7351_v54  ;;  %v7379_v53 = vld [vmem:[#allocation12 + $0xf0] sm:$0xff] (!%p6262_p7)  }
 0x5ce   : > { %6304 = vmatprep.subr.bf16.mxu0 (!%p6262_p7), %v7354_v24  ;;  %6326 = vmatprep.subr.bf16.mxu1 (!%p6262_p7), %v7355_v7  ;;  %v7380_v54 = vld [vmem:[#allocation12 + $0x30] sm:$0xff] (!%p6262_p7)  }
 0x5d0   : > { %4669 = vmatmul.mubr.bf16.vlgmr.msra.gmra.mrb[12].mxu0 %v8527_v49  ;;  %4755 = vmatmul.mubr.bf16.vlgmr.msra.gmra.mrb[12].mxu1 %v8527_v49 }
 0x5d1   : > { %6305 = vmatpush3.bf16.msra.mxu0 (!%p6262_p7), %v7356_v25  ;;  %6327 = vmatpush3.bf16.msra.mxu1 (!%p6262_p7), %v7357_v26 }
 0x5d2   : > { %6306 = vmatprep.subr.bf16.mxu0 (!%p6262_p7), %v7358_v27  ;;  %6328 = vmatprep.subr.bf16.mxu1 (!%p6262_p7), %v7359_v28 }
 0x5d5   : > { %6307 = vmatpush3.bf16.msra.mxu0 (!%p6262_p7), %v7360_v31  ;;  %6329 = vmatpush3.bf16.msra.mxu1 (!%p6262_p7), %v7361_v34 }
 0x5d6   : > { %6308 = vmatprep.subr.bf16.mxu0 (!%p6262_p7), %v7362_v35  ;;  %6330 = vmatprep.subr.bf16.mxu1 (!%p6262_p7), %v7363_v36 }
 0x5d9   : > { %6309 = vmatpush3.bf16.msra.mxu0 (!%p6262_p7), %v7364_v37  ;;  %6331 = vmatpush3.bf16.msra.mxu1 (!%p6262_p7), %v7365_v38 }
 0x5da   : > { %6310 = vmatprep.subr.bf16.mxu0 (!%p6262_p7), %v7366_v39  ;;  %6332 = vmatprep.subr.bf16.mxu1 (!%p6262_p7), %v7367_v40 }
 0x5dd   : > { %6311 = vmatpush3.bf16.msra.mxu0 (!%p6262_p7), %v7368_v41  ;;  %6333 = vmatpush3.bf16.msra.mxu1 (!%p6262_p7), %v7369_v42 }
 0x5de   : > { %6312 = vmatprep.subr.bf16.mxu0 (!%p6262_p7), %v7370_v43  ;;  %6334 = vmatprep.subr.bf16.mxu1 (!%p6262_p7), %v7371_v44 }
 0x5e1   : > { %6313 = vmatpush3.bf16.msra.mxu0 (!%p6262_p7), %v7372_v45  ;;  %6335 = vmatpush3.bf16.msra.mxu1 (!%p6262_p7), %v7373_v46 }
 0x5e2   : > { %6314 = vmatprep.subr.bf16.mxu0 (!%p6262_p7), %v7374_v47  ;;  %6336 = vmatprep.subr.bf16.mxu1 (!%p6262_p7), %v7375_v48 }
 0x5e5   : > { %6315 = vmatpush3.bf16.msra.mxu0 (!%p6262_p7), %v7376_v50  ;;  %6337 = vmatpush3.bf16.msra.mxu1 (!%p6262_p7), %v7377_v51 }
 0x5e6   : > { %6316 = vmatprep.subr.bf16.mxu0 (!%p6262_p7), %v7378_v52  ;;  %6338 = vmatprep.subr.bf16.mxu1 (!%p6262_p7), %v7379_v53 }
 0x5e9   : > { %6317 = vmatpush3.bf16.msra.mxu0 (!%p6262_p7), %v7380_v54  ;;  %6339 = vmatpush3.bf16.msra.mxu1 (!%p6262_p7), %v7381_v55 }
 0x6a3   : > { %v4670_v61 = vpop.f32.mrb[12].mxu0  ;;  %v4756_v62 = vpop.f32.mrb[12].mxu1 }
 0x6a4   : > { %v6372_v63 = vadd.f32 %v4670_v61, %v3936_v56  ;;  %v6376_v0 = vadd.f32 %v4756_v62, %v3944_v57  ;;  %v4672_v1 = vpop.f32.mrb[13].mxu0  ;;  %v4758_v2 = vpop.f32.mrb[13].mxu1 }
 0x6a5   : > { %v6373_v3 = vadd.f32 %v4672_v1, %v3940_v58  ;;  %v6377_v4 = vadd.f32 %v4758_v2, %v3948_v59  ;;  %v4674_v5 = vpop.f32.mrb[14].mxu0  ;;  %v4760_v6 = vpop.f32.mrb[14].mxu1 }
 0x6a6   : > { %vm4765_vm0 = vcmp.gt.f32.partialorder %v6372_v63, 0.0  ;;  %v4773_v49 = vmul.f32 0.01, %v6372_v63  ;;  %vm4767_vm1 = vcmp.gt.f32.partialorder %v6376_v0, 0.0  ;;  %v4775_v29 = vmul.f32 0.01, %v6376_v0 }
 0x6a7   : > { %vm4766_vm2 = vcmp.gt.f32.partialorder %v6373_v3, 0.0  ;;  %v4774_v30 = vmul.f32 0.01, %v6373_v3  ;;  %vm4768_vm3 = vcmp.gt.f32.partialorder %v6377_v4, 0.0  ;;  %v4776_v32 = vmul.f32 0.01, %v6377_v4 }
 0x6a8   : > { %v4781_v8 = vsel %vm4765_vm0, %v6372_v63, %v4773_v49  ;;  %v4783_v33 = vsel %vm4767_vm1, %v6376_v0, %v4775_v29  ;;  %v6374_v9 = vadd.f32 %v4674_v5, %v3936_v56  ;;  %v6378_v10 = vadd.f32 %v4760_v6, %v3944_v57  ;;  %v4676_v11 = vpop.f32.mrb[15].mxu0  ;;  %v4762_v12 = vpop.f32.mrb[15].mxu1  ;;  %v7382_v56 = vld [vmem:[#allocation12 + $0x78] sm:$0xff] (!%p6262_p7)  }
 0x6a9   : > { %4789 = vst [vmem:[#allocation2] sm:$0xff] %v4781_v8  ;;  %4791 = vst [vmem:[#allocation2 + $0x10] sm:$0xff] %v4783_v33  ;;  %v4782_v13 = vsel %vm4766_vm2, %v6373_v3, %v4774_v30  ;;  %v4784_v14 = vsel %vm4768_vm3, %v6377_v4, %v4776_v32  ;;  %v6375_v60 = vadd.f32 %v4676_v11, %v3940_v58  ;;  %4800 = sbr.rel (%p6262_p7) target bundleno = 1943 (0x797), region = 84  ;;  %v7383_v57 = vld [vmem:[#allocation12 + $0xf8] sm:$0xff] (!%p6262_p7)   ;;  %6318 = vmatprep.subr.bf16.mxu0 (!%p6262_p7), %v7382_v56  ;;  %v6263_v8 = vld [vmem:[#allocation14] ss:$0 sm:$0xff] (!%p6262_p7) }
 0x6aa   : > { %v6379_v15 = vadd.f32 %v4762_v12, %v3948_v59  ;;  %4790 = vst [vmem:[#allocation2 + $0x8] sm:$0xff] %v4782_v13  ;;  %4792 = vst [vmem:[#allocation2 + $0x18] sm:$0xff] %v4784_v14  ;;  %vm4769_vm4 = vcmp.gt.f32.partialorder %v6374_v9, 0.0  ;;  %v4777_v16 = vmul.f32 0.01, %v6374_v9  ;;  %vm4771_vm5 = vcmp.gt.f32.partialorder %v6378_v10, 0.0  ;;  %6340 = vmatprep.subr.bf16.mxu1 (!%p6262_p7), %v7383_v57 }
 0x6ab   : > { %v4779_v17 = vmul.f32 0.01, %v6378_v10  ;;  %vm4770_vm6 = vcmp.gt.f32.partialorder %v6375_v60, 0.0  ;;  %v4778_v18 = vmul.f32 0.01, %v6375_v60  ;;  %v7384_v58 = vld [vmem:[#allocation12 + $0x38] sm:$0xff] (!%p6262_p7)  }
 0x6ac   : > { %vm4772_vm7 = vcmp.gt.f32.partialorder %v6379_v15, 0.0  ;;  %v4780_v19 = vmul.f32 0.01, %v6379_v15  ;;  %v4785_v20 = vsel %vm4769_vm4, %v6374_v9, %v4777_v16  ;;  %v7385_v59 = vld [vmem:[#allocation12 + $0xb8] sm:$0xff] (!%p6262_p7)   ;;  %6319 = vmatpush3.bf16.msra.mxu0 (!%p6262_p7), %v7384_v58 }
 0x6ad   : > { %v4787_v21 = vsel %vm4771_vm5, %v6378_v10, %v4779_v17  ;;  %4793 = vst [vmem:[#allocation2 + $0x20] sm:$0xff] %v4785_v20  ;;  %v4786_v22 = vsel %vm4770_vm6, %v6375_v60, %v4778_v18  ;;  %6341 = vmatpush3.bf16.msra.mxu1 (!%p6262_p7), %v7385_v59 }
 0x6ae   : > { %4795 = vst [vmem:[#allocation2 + $0x30] sm:$0xff] %v4787_v21  ;;  %v4788_v23 = vsel %vm4772_vm7, %v6379_v15, %v4780_v19  ;;  %4794 = vst [vmem:[#allocation2 + $0x28] sm:$0xff] %v4786_v22 }
 0x6af   : > { %4796 = vst [vmem:[#allocation2 + $0x38] sm:$0xff] %v4788_v23 }
 0x6b0   : > { %v4801_v2 = vld [vmem:[#allocation2] sm:$0xff]  ;;  %v4803_v6 = vld [vmem:[#allocation2 + $0x10] sm:$0xff] }
 0x6b1   : > { %v4802_v61 = vld [vmem:[#allocation2 + $0x8] sm:$0xff]  ;;  %v4804_v63 = vld [vmem:[#allocation2 + $0x18] sm:$0xff] }
 0x6b4   : > { %v4805_v3 = vld [vmem:[#allocation2 + $0x20] sm:$0xff] }
 0x6b5   : > { %v4806_v62 = vld [vmem:[#allocation2 + $0x28] sm:$0xff]  ;;  %v4809_v5 = vpack.c.bf16 %v4805_v3, %v4801_v2  ;;  %v4807_v49 = vld [vmem:[#allocation2 + $0x30] sm:$0xff] }
 0x6b6   : > { %v4810_v0 = vpack.c.bf16 %v4806_v62, %v4802_v61  ;;  %v4808_v1 = vld [vmem:[#allocation2 + $0x38] sm:$0xff]  ;;  %v4811_v29 = vpack.c.bf16 %v4807_v49, %v4803_v6 }
 0x6b7   : > { %v4812_v4 = vpack.c.bf16 %v4808_v1, %v4804_v63 }
 0x6b8   : > { %5108 = vmatprep.mubr.bf16.mxu0 %v4810_v0 }
 0x6b9   : > { %5149 = vmatprep.mubr.bf16.mxu1 %v4812_v4  ;;  %5109 = vmatmul.mubr.bf16.vlgmr.msra.gmra.mrb[0].mxu0 %v4809_v5 }
 0x6ba   : > { %5150 = vmatmul.mubr.bf16.vlgmr.msra.gmra.mrb[0].mxu1 %v4811_v29 }
 0x78c   : > { %v6320_v30 = vpop.f32.mrb[0].mxu0 }
 0x78d   : > { %v6342_v32 = vpop.f32.mrb[0].mxu1  ;;  %v6321_v33 = vpop.f32.mrb[1].mxu0 }
 0x78e   : > { %v6322_v9 = vadd.f32 %v6321_v33, %v6320_v30  ;;  %v6343_v10 = vpop.f32.mrb[1].mxu1  ;;  %v6323_v11 = vpop.f32.mrb[2].mxu0 }
 0x78f   : > { %v6344_v12 = vadd.f32 %v6343_v10, %v6342_v32  ;;  %v6345_v13 = vpop.f32.mrb[2].mxu1  ;;  %v6324_v14 = vpop.f32.mrb[3].mxu0 }
 0x790   : > { %v5111_v60 = vadd.f32 %v6322_v9, %v6263_v8  ;;  %v6325_v15 = vadd.f32 %v6324_v14, %v6323_v11  ;;  %v6346_v16 = vpop.f32.mrb[3].mxu1 }
 0x791   : > { %v6347_v17 = vadd.f32 %v6346_v16, %v6345_v13 }
 0x792   : > { %v5152_v18 = vadd.f32 %v6344_v12, %v5111_v60  ;;  %v5114_v19 = vadd.f32 %v6325_v15, %v6263_v8 }
 0x794   : > { %5158 = vst [vmem:[#allocation15] sm:$0xff] %v5152_v18  ;;  %v5155_v20 = vadd.f32 %v6347_v17, %v5114_v19 }
 0x796   : > { %5159 = vst [vmem:[#allocation15 + $0x8] sm:$0xff] %v5155_v20 }
 0x797 PF: > { %p6474_p3 = scmp.eq.s32.totalorder %s7766_s9, 1  ;;  %s7692_s27 = smov [#allocation15]  }
 0x798   : > { %s5169_s21 = sshll.u32 %s7692_s27, 4  ;;  %s5170_s21 = int_to_ptr.vmem [resolvable:$true] %s5169_s21 }
 0x799   : > { %s7586_s30 = scalar_lea.vmem %s5170_s21, 256  ;;  %p7593_p5 = scmp.lt.s32.totalorder %s5170_s21, %s5170_s21 }
 0x79a   : > { %p7587_p11 = scmp.ne.s32.totalorder %s5170_s21, %s7586_s30  ;;  %p7594_p8 = scmp.lt.s32.totalorder %s7586_s30, %s7586_s30 }
 0x79c   : > { %p7588_p4 = pnand %p7587_p11, %p6474_p3  ;;  %p7595_p10 = por %p7594_p8, %p7593_p5 }
 0x79e   : > { %p7589_p13 = pneg %p7588_p4 }
 0x7a0   : > { %p7596_p1 = pnand %p7595_p10, %p7589_p13 }
 0x7a2   : > { %7599 = shalt.err (!%p7596_p1)
}
 0x7a3   : > { %s7600_s0 = scalar_lea.hbm %s8647_s7, 256 }
 0x7a4   : > { %p7601_p12 = scmp.ne.s32.totalorder %s8647_s7, %s7600_s0  ;;  %p7606_p2 = scmp.lt.u32.totalorder %s7600_s0, %s8647_s7 }
 0x7a6   : > { %p7602_p9 = pnand %p7601_p12, %p6474_p3 }
 0x7a8   : > { %p7603_p0 = pneg %p7602_p9 }
 0x7aa   : > { %p7608_p6 = pnand %p7606_p2, %p7603_p0 }
 0x7ac   : > { %7611 = shalt.err (!%p7608_p6)
}
 0x7ad   : > { %s7693_s20 = smov 128   ;;  %s7694_s8 = smov 8  }
 0x7ae   : > { %6437 = dma.vmem_to_hbm [thread:$0]  (%p6474_p3), %s5170_s21, 256, %s8647_s7, [#allocation5], %s7693_s20, %s7693_s20, %s7694_s8  }
 0x7af   : > { %7653 = dma.done.wait (%p6474_p3), [#allocation5], 256  }
 0x7b0   : > { %7655 = vsyncadd (%p6474_p3), [#allocation5], 4294967040 }
 0x7b1 PF: > { %s8699_s1 = sld [smem:[#allocation22_spill]]  ;;  %s8700_s23 = sld [smem:[#allocation21_spill]] }
 0x7b2   : > { %s8701_s26 = sld [smem:[#allocation24_spill]]  ;;  %s8702_s5 = sld [smem:[#allocation23_spill]] }
 0x7b3   : > { %s8703_s24 = smov %s7662_s25  ;;  %s8705_s27 = smov %s7674_s28 }
 0x7b7   : > { %s24_s29 = sadd.s32 1, %s8699_s1   ;;  %s8704_s25 = smov %s8700_s23 }
 0x7b8   : > { %p21_p7 = scmp.ge.s32.totalorder %s24_s29, 4   ;;  %s8706_s28 = smov %s8702_s5 }
 0x7ba   :  { %23 = sbr.rel (!%p21_p7) target bundleno = 13 (0xd), region = 133 }
 0x7c1   :  { %5185 = vsyncpa [#allocation4], 1 }
 0x7c2   :  { %5187 = vsyncpa [#allocation4 + $0x1], 1 }
 0x7c3   :  { %5188 = vsyncpa [#allocation7], 1 }
 0x7c4   :  { %5189 = vsyncpa [#allocation10], 1 }
 0x7c5   :  { %5191 = vsyncpa [#allocation10 + $0x1], 1 }
 0x7c6   :  { %5192 = vsyncpa [#allocation13], 1 }
 0x7c7   :  { %5193 = vsyncpa [#allocation5], 1 }
 0x7c8   :  { %5195 = vsyncpa [#allocation5 + $0x1], 1 }

</bundles_post_ra>
